<compile_context>
chip_gen: v7x
topology: tpu7x:2x2x1
jax: 0.10.0
libtpu: 0.0.40
codegen_flags: <defaults>
</compile_context>

<pallas_src>
import functools

import jax
import jax.numpy as jnp
from jax import lax
from jax.experimental import pallas as pl
from jax.experimental.pallas import tpu as pltpu

H = W = 32          # spatial size implied by Linear(512, 40): 2*(32/2)*(32/2)
GROUP = 4           # images packed side-by-side along the 128-lane axis
WP = GROUP * W      # 128 lanes
T_MAX = 8           # group-planes (of 4 images each) processed per grid step


# ---------------------------------------------------------------------------
# Kernel 1: pools + conv2/conv3 + conv1(stride 2) + ReLU, T*GROUP images/step
# ---------------------------------------------------------------------------
def fused_front_kernel(xp_ref, sh_ref, sw_ref, w2_ref, b2_ref, w3_ref, b3_ref,
                       w1_ref, b1_ref, o_ref, *, T):
    ninf = jnp.float32(-jnp.inf)
    pinf = jnp.float32(jnp.inf)

    # Boundary masks: built once per grid step (cheap), shared by all T planes.
    hh = lax.broadcasted_iota(jnp.int32, (H, WP), 0)
    ww = lax.broadcasted_iota(jnp.int32, (H, WP), 1)
    wm = ww & (W - 1)                 # lane position within its image
    can_l = wm > 0                    # neighbor at w-1 exists (same image)
    can_r = wm < W - 1                # neighbor at w+1 exists (same image)
    can_u = hh > 0                    # neighbor at h-1 exists
    can_d = hh < H - 1                # neighbor at h+1 exists

    # Shift helpers (pltpu.roll wraps; the masks kill wrapped / cross-image
    # values).  result[h, w] = a[h, w-1] etc.
    def lsh(a):  # value from w-1
        return pltpu.roll(a, 1, axis=1)

    def rsh(a):  # value from w+1
        return pltpu.roll(a, WP - 1, axis=1)

    def ush(a):  # value from h-1
        return pltpu.roll(a, 1, axis=0)

    def dsh(a):  # value from h+1
        return pltpu.roll(a, H - 1, axis=0)

    # Separable 3x3 pools: MaxPool2d(3,1,1) pads with -inf; min pool +inf.
    def row_max(a, l, r):
        return jnp.maximum(jnp.maximum(jnp.where(can_l, l, ninf), a),
                           jnp.where(can_r, r, ninf))

    def row_min(a, l, r):
        return jnp.minimum(jnp.minimum(jnp.where(can_l, l, pinf), a),
                           jnp.where(can_r, r, pinf))

    def col_max(a):
        return jnp.maximum(jnp.maximum(jnp.where(can_u, ush(a), ninf), a),
                           jnp.where(can_d, dsh(a), ninf))

    def col_min(a):
        return jnp.minimum(jnp.minimum(jnp.where(can_u, ush(a), pinf), a),
                           jnp.where(can_d, dsh(a), pinf))

    # 3x3 depth-1 conv (zero padding), reusing the caller's lane shifts.
    def conv3(a, l, r, w_ref, b_ref):
        zl = jnp.where(can_l, l, 0.0)
        zr = jnp.where(can_r, r, 0.0)
        rc0 = w_ref[0] * zl + w_ref[1] * a + w_ref[2] * zr
        rc1 = w_ref[3] * zl + w_ref[4] * a + w_ref[5] * zr
        rc2 = w_ref[6] * zl + w_ref[7] * a + w_ref[8] * zr
        return (jnp.where(can_u, ush(rc0), 0.0) + rc1 +
                jnp.where(can_d, dsh(rc2), 0.0) + b_ref[0])

    # Unrolled loop over the T lane-packed planes of this grid step.
    for t in range(T):
        x = xp_ref[0, t]              # (32, 128): 4 lane-packed 32x32 images

        xl, xr = lsh(x), rsh(x)
        a1 = col_max(row_max(x, xl, xr))
        a2 = col_min(row_min(x, xl, xr))

        # conv1 row accumulators acc[o][kh]; channel-major accumulation keeps
        # vreg pressure low (a channel's shifted planes die right after use).
        acc = [[None, None, None], [None, None, None]]

        def accum_conv1(cidx, chan, acc=acc):
            cl, cr = lsh(chan), rsh(chan)
            zl = jnp.where(can_l, cl, 0.0)
            zr = jnp.where(can_r, cr, 0.0)
            for o in range(2):
                for kh in range(3):
                    base = ((o * 4 + cidx) * 3 + kh) * 3
                    term = (w1_ref[base + 0] * zl + w1_ref[base + 1] * chan +
                            w1_ref[base + 2] * zr)
                    acc[o][kh] = term if acc[o][kh] is None else acc[o][kh] + term

        # channel 0: a11 = maxpool(a1); channel 1: a12 = minpool(conv2(a1))
        a1l, a1r = lsh(a1), rsh(a1)
        a11 = col_max(row_max(a1, a1l, a1r))
        c2 = conv3(a1, a1l, a1r, w2_ref, b2_ref)
        accum_conv1(0, a11)
        c2l, c2r = lsh(c2), rsh(c2)
        accum_conv1(1, col_min(row_min(c2, c2l, c2r)))

        # channel 3: a22 = minpool(a2); channel 2: a21 = maxpool(conv3(a2))
        a2l, a2r = lsh(a2), rsh(a2)
        a22 = col_min(row_min(a2, a2l, a2r))
        c3 = conv3(a2, a2l, a2r, w3_ref, b3_ref)
        accum_conv1(3, a22)
        c3l, c3r = lsh(c3), rsh(c3)
        accum_conv1(2, col_max(row_max(c3, c3l, c3r)))

        # conv1 column combine + stride-2 subsample + ReLU, per output channel.
        for o in range(2):
            yfull = (jnp.where(can_u, ush(acc[o][0]), 0.0) + acc[o][1] +
                     jnp.where(can_d, dsh(acc[o][2]), 0.0) + b1_ref[o])
            # Even-(h, w) selection with two tiny MXU matmuls (selectors are
            # resident VMEM inputs).  ReLU commutes with the 0/1 selection so
            # it runs on (16, 64) instead of (32, 128).
            sub = jnp.dot(sh_ref[...], yfull,
                          preferred_element_type=jnp.float32)      # (16, 128)
            yds = jnp.dot(sub, sw_ref[...],
                          preferred_element_type=jnp.float32)      # (16, 64)
            yds = jnp.maximum(yds, 0.0)
            for b in range(GROUP):
                # (B, 2, 16, 16) layout => wrapper reshape to (B, 512) is free
                # and matches torch.reshape order (o*256 + ho*16 + wo).
                o_ref[GROUP * t + b, o] = yds[:, 16 * b:16 * (b + 1)]


# ---------------------------------------------------------------------------
# Kernel 2: MLP head: relu(Linear(512,40)) -> leaky_relu(Linear(40,20))
# ---------------------------------------------------------------------------
def mlp_kernel(a6_ref, wl_ref, bl_ref, wf_ref, bf_ref, o_ref):
    h = jnp.dot(a6_ref[...], wl_ref[...],
                preferred_element_type=jnp.float32) + bl_ref[...]
    h = jnp.maximum(h, 0.0)
    o = jnp.dot(h, wf_ref[...], preferred_element_type=jnp.float32) + bf_ref[...]
    o_ref[...] = jnp.where(o > 0, o, 0.01 * o)   # LeakyReLU(0.01)


# ---------------------------------------------------------------------------
# One-time parameter prep (hoisted out of the forward pass)
# ---------------------------------------------------------------------------
def prepare_params(params):
    (w1, b1, w2, b2, w3, b3, wl, bl, wf, bf) = params
    return (w1.reshape(-1).astype(jnp.float32),      # (72,)  [o,c,kh,kw]
            b1.astype(jnp.float32),                  # (2,)
            w2.reshape(-1).astype(jnp.float32),      # (9,)
            b2.astype(jnp.float32),                  # (1,)
            w3.reshape(-1).astype(jnp.float32),      # (9,)
            b3.astype(jnp.float32),                  # (1,)
            wl.T.astype(jnp.float32),                # (512, 40)
            bl.reshape(1, -1).astype(jnp.float32),   # (1, 40)
            wf.T.astype(jnp.float32),                # (40, 20)
            bf.reshape(1, -1).astype(jnp.float32))   # (1, 20)


# ---------------------------------------------------------------------------
# Forward wrapper
# ---------------------------------------------------------------------------
def minmaxnet_forward(x, prepped):
    (w1f, b1, w2f, b2, w3f, b3, wlT, blr, wfT, bfr) = prepped
    B = x.shape[0]

    # Per-step tile: T group-planes of GROUP lane-packed images.  T is capped
    # so large batches keep >= 8 grid steps (megacore on v7x) while small
    # batches get minimal padding.
    T = min(T_MAX, pl.cdiv(B, GROUP))
    step_imgs = GROUP * T
    Bp = pl.cdiv(B, step_imgs) * step_imgs
    if Bp > 512:                        # keep Bp a multiple of the MLP row tile
        Bp = pl.cdiv(Bp, 512) * 512     # (512 is a multiple of step_imgs == 32)
    n_steps = Bp // step_imgs

    xs = x[:, 0]                                   # (B, 32, 32) single channel
    if Bp != B:
        xs = jnp.pad(xs, ((0, Bp - B), (0, 0), (0, 0)))
    # Lane-pack GROUP images per (32, 128) plane, T planes per grid step.
    xp = (xs.reshape(n_steps, T, GROUP, H, W)
            .transpose(0, 1, 3, 2, 4)
            .reshape(n_steps, T, H, WP))

    # Hoisted stride-2 selection constants (resident VMEM inputs).
    hsel = (jnp.arange(H)[None, :] ==
            2 * jnp.arange(16)[:, None]).astype(jnp.float32)           # (16, 32)
    cc = jnp.arange(GROUP * 16)
    wsel = (jnp.arange(WP)[:, None] ==
            ((cc // 16) * W + (cc % 16) * 2)[None, :]).astype(jnp.float32)  # (128, 64)

    smem = pl.BlockSpec(memory_space=pltpu.MemorySpace.SMEM)

    # Per-step VMEM: input 16KB*T*2 + output ~64KB*T*2 (lane-padded) +
    # selectors ~150KB  =>  ~1.4 MiB at T=8: comfortably under the default
    # scoped-VMEM limit on every generation, so no vmem_limit override needed.
    a5 = pl.pallas_call(
        functools.partial(fused_front_kernel, T=T),
        out_shape=jax.ShapeDtypeStruct((Bp, 2, 16, 16), jnp.float32),
        grid=(n_steps,),
        in_specs=[
            pl.BlockSpec((1, T, H, WP), lambda g: (g, 0, 0, 0)),
            pl.BlockSpec((16, H), lambda g: (0, 0)),
            pl.BlockSpec((WP, GROUP * 16), lambda g: (0, 0)),
            smem, smem, smem, smem, smem, smem,
        ],
        out_specs=pl.BlockSpec((step_imgs, 2, 16, 16), lambda g: (g, 0, 0, 0)),
        compiler_params=pltpu.CompilerParams(
            dimension_semantics=("parallel",)),
    )(xp, hsel, wsel, w2f, b2, w3f, b3, w1f, b1)

    a6 = a5.reshape(Bp, 512)   # contiguous: free reshape, matches torch order

    tbm = Bp if Bp <= 512 else 512      # big row tiles amortize step overhead
    out = pl.pallas_call(
        mlp_kernel,
        out_shape=jax.ShapeDtypeStruct((Bp, 20), jnp.float32),
        grid=(Bp // tbm,),
        in_specs=[
            pl.BlockSpec((tbm, 512), lambda g: (g, 0)),
            pl.BlockSpec((512, 40), lambda g: (0, 0)),
            pl.BlockSpec((1, 40), lambda g: (0, 0)),
            pl.BlockSpec((40, 20), lambda g: (0, 0)),
            pl.BlockSpec((1, 20), lambda g: (0, 0)),
        ],
        out_specs=pl.BlockSpec((tbm, 20), lambda g: (g, 0)),
        compiler_params=pltpu.CompilerParams(
            dimension_semantics=("parallel",)),
    )(a6, wlT, blr, wfT, bfr)
    return out[:B]


# ---------------------------------------------------------------------------
# Pure-JAX reference (mirrors the PyTorch forward) for a sanity check
# ---------------------------------------------------------------------------
def reference_forward(x, params):
    (w1, b1, w2, b2, w3, b3, wl, bl, wf, bf) = params

    def maxpool(t):
        return lax.reduce_window(t, -jnp.inf, lax.max, (1, 1, 3, 3),
                                 (1, 1, 1, 1),
                                 [(0, 0), (0, 0), (1, 1), (1, 1)])

    def conv(t, w, b, stride):
        y = lax.conv_general_dilated(
            t, w, (stride, stride), [(1, 1), (1, 1)],
            dimension_numbers=('NCHW', 'OIHW', 'NCHW'))
        return y + b.reshape(1, -1, 1, 1)

    a1 = maxpool(x)
    a2 = -maxpool(-x)
    a11 = maxpool(a1)
    a12 = -maxpool(-conv(a1, w2, b2, 1))
    a21 = maxpool(conv(a2, w3, b3, 1))
    a22 = -maxpool(-a2)
    a3 = jnp.concatenate([a11, a12, a21, a22], axis=1)
    a5 = jnp.maximum(conv(a3, w1, b1, 2), 0.0)
    a6 = a5.reshape(x.shape[0], 512)
    a7 = jnp.maximum(a6 @ wl.T + bl, 0.0)
    o = a7 @ wf.T + bf
    return jnp.where(o > 0, o, 0.01 * o)


if __name__ == "__main__":
    key = jax.random.PRNGKey(0)
    ks = jax.random.split(key, 11)

    # Deterministic synthetic parameters (shapes from MinMaxNet.__init__)
    w1 = 0.10 * jax.random.normal(ks[0], (2, 4, 3, 3), jnp.float32)   # conv1
    b1 = 0.10 * jax.random.normal(ks[1], (2,), jnp.float32)
    w2 = 0.10 * jax.random.normal(ks[2], (1, 1, 3, 3), jnp.float32)   # conv2
    b2 = 0.10 * jax.random.normal(ks[3], (1,), jnp.float32)
    w3 = 0.10 * jax.random.normal(ks[4], (1, 1, 3, 3), jnp.float32)   # conv3
    b3 = 0.10 * jax.random.normal(ks[5], (1,), jnp.float32)
    wl = 0.05 * jax.random.normal(ks[6], (40, 512), jnp.float32)      # linear
    bl = 0.05 * jax.random.normal(ks[7], (40,), jnp.float32)
    wf = 0.05 * jax.random.normal(ks[8], (20, 40), jnp.float32)       # final
    bf = 0.05 * jax.random.normal(ks[9], (20,), jnp.float32)
    params = (w1, b1, w2, b2, w3, b3, wl, bl, wf, bf)

    x = jax.random.normal(ks[10], (2, 1, H, W), jnp.float32)  # NCHW

    prepped = prepare_params(params)       # one-time parameter prep
    fwd = jax.jit(minmaxnet_forward)

    out = jax.block_until_ready(fwd(x, prepped))
    ref = jax.block_until_ready(reference_forward(x, params))

    assert out.shape == (2, 20) and out.dtype == jnp.float32
    assert jnp.allclose(out, ref, rtol=1e-3, atol=1e-3), (
        float(jnp.max(jnp.abs(out - ref))))
    print("KERNEL_OK")
</pallas_src>

<mosaic_0001>
module attributes {stable_mosaic.version = 11 : i64} {
  func.func @fused_front_kernel(%arg0: i32, %arg1: memref<1x1x32x128xf32, #tpu.memory_space<vmem>>, %arg2: memref<16x32xf32, #tpu.memory_space<vmem>>, %arg3: memref<128x64xf32, #tpu.memory_space<vmem>>, %arg4: memref<9xf32, #tpu.memory_space<smem>>, %arg5: memref<1xf32, #tpu.memory_space<smem>>, %arg6: memref<9xf32, #tpu.memory_space<smem>>, %arg7: memref<1xf32, #tpu.memory_space<smem>>, %arg8: memref<72xf32, #tpu.memory_space<smem>>, %arg9: memref<2xf32, #tpu.memory_space<smem>>, %arg10: memref<4x2x16x16xf32, #tpu.memory_space<vmem>>) attributes {dimension_semantics = [#tpu.dimension_semantics<parallel>], iteration_bounds = array<i64: 1>, scalar_prefetch = 0 : i64, scratch_operands = 0 : i64, tpu.core_type = #tpu.core_type<tc>, window_params = [{transform_indices = @transform_0, window_bounds = array<i64: 1, 1, 32, 128>}, {pipeline_mode = #tpu.pipeline_mode<synchronous>, transform_indices = @transform_1, window_bounds = array<i64: 16, 32>}, {pipeline_mode = #tpu.pipeline_mode<synchronous>, transform_indices = @transform_2, window_bounds = array<i64: 128, 64>}, {transform_indices = @transform_3, window_bounds = array<i64: 9>}, {transform_indices = @transform_4, window_bounds = array<i64: 1>}, {transform_indices = @transform_5, window_bounds = array<i64: 9>}, {transform_indices = @transform_6, window_bounds = array<i64: 1>}, {transform_indices = @transform_7, window_bounds = array<i64: 72>}, {transform_indices = @transform_8, window_bounds = array<i64: 2>}, {transform_indices = @transform_9, window_bounds = array<i64: 4, 2, 16, 16>}]} {
    %0 = tpu.iota {dimensions = array<i32: 0>} : vector<32x128xi32>
    %1 = tpu.iota {dimensions = array<i32: 1>} : vector<32x128xi32>
    %c31_i32 = arith.constant 31 : i32
    %2 = vector.broadcast %c31_i32 : i32 to vector<32x128xi32>
    %3 = arith.andi %1, %2 : vector<32x128xi32>
    %c0_i32 = arith.constant 0 : i32
    %4 = vector.broadcast %c0_i32 : i32 to vector<32x128xi32>
    %5 = arith.cmpi sgt, %3, %4 : vector<32x128xi32>
    %c31_i32_0 = arith.constant 31 : i32
    %6 = vector.broadcast %c31_i32_0 : i32 to vector<32x128xi32>
    %7 = arith.cmpi slt, %3, %6 : vector<32x128xi32>
    %c0_i32_1 = arith.constant 0 : i32
    %8 = vector.broadcast %c0_i32_1 : i32 to vector<32x128xi32>
    %9 = arith.cmpi sgt, %0, %8 : vector<32x128xi32>
    %c31_i32_2 = arith.constant 31 : i32
    %10 = vector.broadcast %c31_i32_2 : i32 to vector<32x128xi32>
    %11 = arith.cmpi slt, %0, %10 : vector<32x128xi32>
    %c0 = arith.constant 0 : index
    %c0_3 = arith.constant 0 : index
    %c0_4 = arith.constant 0 : index
    %c0_5 = arith.constant 0 : index
    %12 = vector.load %arg1[%c0, %c0_3, %c0_4, %c0_5] : memref<1x1x32x128xf32, #tpu.memory_space<vmem>>, vector<1x1x32x128xf32>
    %13 = vector.shape_cast %12 : vector<1x1x32x128xf32> to vector<32x128xf32>
    %c1_i32 = arith.constant 1 : i32
    %14 = tpu.dynamic_rotate %13 by %c1_i32 dim 1 : vector<32x128xf32>, i32 -> vector<32x128xf32>
    %c127_i32 = arith.constant 127 : i32
    %15 = tpu.dynamic_rotate %13 by %c127_i32 dim 1 : vector<32x128xf32>, i32 -> vector<32x128xf32>
    %cst = arith.constant 0xFF800000 : f32
    %16 = vector.broadcast %cst : f32 to vector<32x128xf32>
    %17 = arith.select %5, %14, %16 : vector<32x128xi1>, vector<32x128xf32>
    %18 = arith.maximumf %17, %13 : vector<32x128xf32>
    %cst_6 = arith.constant 0xFF800000 : f32
    %19 = vector.broadcast %cst_6 : f32 to vector<32x128xf32>
    %20 = arith.select %7, %15, %19 : vector<32x128xi1>, vector<32x128xf32>
    %21 = arith.maximumf %18, %20 : vector<32x128xf32>
    %c1_i32_7 = arith.constant 1 : i32
    %22 = tpu.dynamic_rotate %21 by %c1_i32_7 dim 0 : vector<32x128xf32>, i32 -> vector<32x128xf32>
    %cst_8 = arith.constant 0xFF800000 : f32
    %23 = vector.broadcast %cst_8 : f32 to vector<32x128xf32>
    %24 = arith.select %9, %22, %23 : vector<32x128xi1>, vector<32x128xf32>
    %25 = arith.maximumf %24, %21 : vector<32x128xf32>
    %c31_i32_9 = arith.constant 31 : i32
    %26 = tpu.dynamic_rotate %21 by %c31_i32_9 dim 0 : vector<32x128xf32>, i32 -> vector<32x128xf32>
    %cst_10 = arith.constant 0xFF800000 : f32
    %27 = vector.broadcast %cst_10 : f32 to vector<32x128xf32>
    %28 = arith.select %11, %26, %27 : vector<32x128xi1>, vector<32x128xf32>
    %29 = arith.maximumf %25, %28 : vector<32x128xf32>
    %cst_11 = arith.constant 0x7F800000 : f32
    %30 = vector.broadcast %cst_11 : f32 to vector<32x128xf32>
    %31 = arith.select %5, %14, %30 : vector<32x128xi1>, vector<32x128xf32>
    %32 = arith.minimumf %31, %13 : vector<32x128xf32>
    %cst_12 = arith.constant 0x7F800000 : f32
    %33 = vector.broadcast %cst_12 : f32 to vector<32x128xf32>
    %34 = arith.select %7, %15, %33 : vector<32x128xi1>, vector<32x128xf32>
    %35 = arith.minimumf %32, %34 : vector<32x128xf32>
    %c1_i32_13 = arith.constant 1 : i32
    %36 = tpu.dynamic_rotate %35 by %c1_i32_13 dim 0 : vector<32x128xf32>, i32 -> vector<32x128xf32>
    %cst_14 = arith.constant 0x7F800000 : f32
    %37 = vector.broadcast %cst_14 : f32 to vector<32x128xf32>
    %38 = arith.select %9, %36, %37 : vector<32x128xi1>, vector<32x128xf32>
    %39 = arith.minimumf %38, %35 : vector<32x128xf32>
    %c31_i32_15 = arith.constant 31 : i32
    %40 = tpu.dynamic_rotate %35 by %c31_i32_15 dim 0 : vector<32x128xf32>, i32 -> vector<32x128xf32>
    %cst_16 = arith.constant 0x7F800000 : f32
    %41 = vector.broadcast %cst_16 : f32 to vector<32x128xf32>
    %42 = arith.select %11, %40, %41 : vector<32x128xi1>, vector<32x128xf32>
    %43 = arith.minimumf %39, %42 : vector<32x128xf32>
    %c1_i32_17 = arith.constant 1 : i32
    %44 = tpu.dynamic_rotate %29 by %c1_i32_17 dim 1 : vector<32x128xf32>, i32 -> vector<32x128xf32>
    %c127_i32_18 = arith.constant 127 : i32
    %45 = tpu.dynamic_rotate %29 by %c127_i32_18 dim 1 : vector<32x128xf32>, i32 -> vector<32x128xf32>
    %cst_19 = arith.constant 0xFF800000 : f32
    %46 = vector.broadcast %cst_19 : f32 to vector<32x128xf32>
    %47 = arith.select %5, %44, %46 : vector<32x128xi1>, vector<32x128xf32>
    %48 = arith.maximumf %47, %29 : vector<32x128xf32>
    %cst_20 = arith.constant 0xFF800000 : f32
    %49 = vector.broadcast %cst_20 : f32 to vector<32x128xf32>
    %50 = arith.select %7, %45, %49 : vector<32x128xi1>, vector<32x128xf32>
    %51 = arith.maximumf %48, %50 : vector<32x128xf32>
    %c1_i32_21 = arith.constant 1 : i32
    %52 = tpu.dynamic_rotate %51 by %c1_i32_21 dim 0 : vector<32x128xf32>, i32 -> vector<32x128xf32>
    %cst_22 = arith.constant 0xFF800000 : f32
    %53 = vector.broadcast %cst_22 : f32 to vector<32x128xf32>
    %54 = arith.select %9, %52, %53 : vector<32x128xi1>, vector<32x128xf32>
    %55 = arith.maximumf %54, %51 : vector<32x128xf32>
    %c31_i32_23 = arith.constant 31 : i32
    %56 = tpu.dynamic_rotate %51 by %c31_i32_23 dim 0 : vector<32x128xf32>, i32 -> vector<32x128xf32>
    %cst_24 = arith.constant 0xFF800000 : f32
    %57 = vector.broadcast %cst_24 : f32 to vector<32x128xf32>
    %58 = arith.select %11, %56, %57 : vector<32x128xi1>, vector<32x128xf32>
    %59 = arith.maximumf %55, %58 : vector<32x128xf32>
    %cst_25 = arith.constant 0.000000e+00 : f32
    %60 = vector.broadcast %cst_25 : f32 to vector<32x128xf32>
    %61 = arith.select %5, %44, %60 : vector<32x128xi1>, vector<32x128xf32>
    %cst_26 = arith.constant 0.000000e+00 : f32
    %62 = vector.broadcast %cst_26 : f32 to vector<32x128xf32>
    %63 = arith.select %7, %45, %62 : vector<32x128xi1>, vector<32x128xf32>
    %c0_27 = arith.constant 0 : index
    %64 = memref.load %arg4[%c0_27] : memref<9xf32, #tpu.memory_space<smem>>
    %65 = vector.broadcast %64 : f32 to vector<32x128xf32>
    %66 = arith.mulf %65, %61 : vector<32x128xf32>
    %c1 = arith.constant 1 : index
    %67 = memref.load %arg4[%c1] : memref<9xf32, #tpu.memory_space<smem>>
    %68 = vector.broadcast %67 : f32 to vector<32x128xf32>
    %69 = arith.mulf %68, %29 : vector<32x128xf32>
    %70 = arith.addf %66, %69 : vector<32x128xf32>
    %c2 = arith.constant 2 : index
    %71 = memref.load %arg4[%c2] : memref<9xf32, #tpu.memory_space<smem>>
    %72 = vector.broadcast %71 : f32 to vector<32x128xf32>
    %73 = arith.mulf %72, %63 : vector<32x128xf32>
    %74 = arith.addf %70, %73 : vector<32x128xf32>
    %c3 = arith.constant 3 : index
    %75 = memref.load %arg4[%c3] : memref<9xf32, #tpu.memory_space<smem>>
    %76 = vector.broadcast %75 : f32 to vector<32x128xf32>
    %77 = arith.mulf %76, %61 : vector<32x128xf32>
    %c4 = arith.constant 4 : index
    %78 = memref.load %arg4[%c4] : memref<9xf32, #tpu.memory_space<smem>>
    %79 = vector.broadcast %78 : f32 to vector<32x128xf32>
    %80 = arith.mulf %79, %29 : vector<32x128xf32>
    %81 = arith.addf %77, %80 : vector<32x128xf32>
    %c5 = arith.constant 5 : index
    %82 = memref.load %arg4[%c5] : memref<9xf32, #tpu.memory_space<smem>>
    %83 = vector.broadcast %82 : f32 to vector<32x128xf32>
    %84 = arith.mulf %83, %63 : vector<32x128xf32>
    %85 = arith.addf %81, %84 : vector<32x128xf32>
    %c6 = arith.constant 6 : index
    %86 = memref.load %arg4[%c6] : memref<9xf32, #tpu.memory_space<smem>>
    %87 = vector.broadcast %86 : f32 to vector<32x128xf32>
    %88 = arith.mulf %87, %61 : vector<32x128xf32>
    %c7 = arith.constant 7 : index
    %89 = memref.load %arg4[%c7] : memref<9xf32, #tpu.memory_space<smem>>
    %90 = vector.broadcast %89 : f32 to vector<32x128xf32>
    %91 = arith.mulf %90, %29 : vector<32x128xf32>
    %92 = arith.addf %88, %91 : vector<32x128xf32>
    %c8 = arith.constant 8 : index
    %93 = memref.load %arg4[%c8] : memref<9xf32, #tpu.memory_space<smem>>
    %94 = vector.broadcast %93 : f32 to vector<32x128xf32>
    %95 = arith.mulf %94, %63 : vector<32x128xf32>
    %96 = arith.addf %92, %95 : vector<32x128xf32>
    %c1_i32_28 = arith.constant 1 : i32
    %97 = tpu.dynamic_rotate %74 by %c1_i32_28 dim 0 : vector<32x128xf32>, i32 -> vector<32x128xf32>
    %cst_29 = arith.constant 0.000000e+00 : f32
    %98 = vector.broadcast %cst_29 : f32 to vector<32x128xf32>
    %99 = arith.select %9, %97, %98 : vector<32x128xi1>, vector<32x128xf32>
    %100 = arith.addf %99, %85 : vector<32x128xf32>
    %c31_i32_30 = arith.constant 31 : i32
    %101 = tpu.dynamic_rotate %96 by %c31_i32_30 dim 0 : vector<32x128xf32>, i32 -> vector<32x128xf32>
    %cst_31 = arith.constant 0.000000e+00 : f32
    %102 = vector.broadcast %cst_31 : f32 to vector<32x128xf32>
    %103 = arith.select %11, %101, %102 : vector<32x128xi1>, vector<32x128xf32>
    %104 = arith.addf %100, %103 : vector<32x128xf32>
    %c0_32 = arith.constant 0 : index
    %105 = memref.load %arg5[%c0_32] : memref<1xf32, #tpu.memory_space<smem>>
    %106 = vector.broadcast %105 : f32 to vector<32x128xf32>
    %107 = arith.addf %104, %106 : vector<32x128xf32>
    %c1_i32_33 = arith.constant 1 : i32
    %108 = tpu.dynamic_rotate %59 by %c1_i32_33 dim 1 : vector<32x128xf32>, i32 -> vector<32x128xf32>
    %c127_i32_34 = arith.constant 127 : i32
    %109 = tpu.dynamic_rotate %59 by %c127_i32_34 dim 1 : vector<32x128xf32>, i32 -> vector<32x128xf32>
    %cst_35 = arith.constant 0.000000e+00 : f32
    %110 = vector.broadcast %cst_35 : f32 to vector<32x128xf32>
    %111 = arith.select %5, %108, %110 : vector<32x128xi1>, vector<32x128xf32>
    %cst_36 = arith.constant 0.000000e+00 : f32
    %112 = vector.broadcast %cst_36 : f32 to vector<32x128xf32>
    %113 = arith.select %7, %109, %112 : vector<32x128xi1>, vector<32x128xf32>
    %c0_37 = arith.constant 0 : index
    %114 = memref.load %arg8[%c0_37] : memref<72xf32, #tpu.memory_space<smem>>
    %115 = vector.broadcast %114 : f32 to vector<32x128xf32>
    %116 = arith.mulf %115, %111 : vector<32x128xf32>
    %c1_38 = arith.constant 1 : index
    %117 = memref.load %arg8[%c1_38] : memref<72xf32, #tpu.memory_space<smem>>
    %118 = vector.broadcast %117 : f32 to vector<32x128xf32>
    %119 = arith.mulf %118, %59 : vector<32x128xf32>
    %120 = arith.addf %116, %119 : vector<32x128xf32>
    %c2_39 = arith.constant 2 : index
    %121 = memref.load %arg8[%c2_39] : memref<72xf32, #tpu.memory_space<smem>>
    %122 = vector.broadcast %121 : f32 to vector<32x128xf32>
    %123 = arith.mulf %122, %113 : vector<32x128xf32>
    %124 = arith.addf %120, %123 : vector<32x128xf32>
    %c3_40 = arith.constant 3 : index
    %125 = memref.load %arg8[%c3_40] : memref<72xf32, #tpu.memory_space<smem>>
    %126 = vector.broadcast %125 : f32 to vector<32x128xf32>
    %127 = arith.mulf %126, %111 : vector<32x128xf32>
    %c4_41 = arith.constant 4 : index
    %128 = memref.load %arg8[%c4_41] : memref<72xf32, #tpu.memory_space<smem>>
    %129 = vector.broadcast %128 : f32 to vector<32x128xf32>
    %130 = arith.mulf %129, %59 : vector<32x128xf32>
    %131 = arith.addf %127, %130 : vector<32x128xf32>
    %c5_42 = arith.constant 5 : index
    %132 = memref.load %arg8[%c5_42] : memref<72xf32, #tpu.memory_space<smem>>
    %133 = vector.broadcast %132 : f32 to vector<32x128xf32>
    %134 = arith.mulf %133, %113 : vector<32x128xf32>
    %135 = arith.addf %131, %134 : vector<32x128xf32>
    %c6_43 = arith.constant 6 : index
    %136 = memref.load %arg8[%c6_43] : memref<72xf32, #tpu.memory_space<smem>>
    %137 = vector.broadcast %136 : f32 to vector<32x128xf32>
    %138 = arith.mulf %137, %111 : vector<32x128xf32>
    %c7_44 = arith.constant 7 : index
    %139 = memref.load %arg8[%c7_44] : memref<72xf32, #tpu.memory_space<smem>>
    %140 = vector.broadcast %139 : f32 to vector<32x128xf32>
    %141 = arith.mulf %140, %59 : vector<32x128xf32>
    %142 = arith.addf %138, %141 : vector<32x128xf32>
    %c8_45 = arith.constant 8 : index
    %143 = memref.load %arg8[%c8_45] : memref<72xf32, #tpu.memory_space<smem>>
    %144 = vector.broadcast %143 : f32 to vector<32x128xf32>
    %145 = arith.mulf %144, %113 : vector<32x128xf32>
    %146 = arith.addf %142, %145 : vector<32x128xf32>
    %c36 = arith.constant 36 : index
    %147 = memref.load %arg8[%c36] : memref<72xf32, #tpu.memory_space<smem>>
    %148 = vector.broadcast %147 : f32 to vector<32x128xf32>
    %149 = arith.mulf %148, %111 : vector<32x128xf32>
    %c37 = arith.constant 37 : index
    %150 = memref.load %arg8[%c37] : memref<72xf32, #tpu.memory_space<smem>>
    %151 = vector.broadcast %150 : f32 to vector<32x128xf32>
    %152 = arith.mulf %151, %59 : vector<32x128xf32>
    %153 = arith.addf %149, %152 : vector<32x128xf32>
    %c38 = arith.constant 38 : index
    %154 = memref.load %arg8[%c38] : memref<72xf32, #tpu.memory_space<smem>>
    %155 = vector.broadcast %154 : f32 to vector<32x128xf32>
    %156 = arith.mulf %155, %113 : vector<32x128xf32>
    %157 = arith.addf %153, %156 : vector<32x128xf32>
    %c39 = arith.constant 39 : index
    %158 = memref.load %arg8[%c39] : memref<72xf32, #tpu.memory_space<smem>>
    %159 = vector.broadcast %158 : f32 to vector<32x128xf32>
    %160 = arith.mulf %159, %111 : vector<32x128xf32>
    %c40 = arith.constant 40 : index
    %161 = memref.load %arg8[%c40] : memref<72xf32, #tpu.memory_space<smem>>
    %162 = vector.broadcast %161 : f32 to vector<32x128xf32>
    %163 = arith.mulf %162, %59 : vector<32x128xf32>
    %164 = arith.addf %160, %163 : vector<32x128xf32>
    %c41 = arith.constant 41 : index
    %165 = memref.load %arg8[%c41] : memref<72xf32, #tpu.memory_space<smem>>
    %166 = vector.broadcast %165 : f32 to vector<32x128xf32>
    %167 = arith.mulf %166, %113 : vector<32x128xf32>
    %168 = arith.addf %164, %167 : vector<32x128xf32>
    %c42 = arith.constant 42 : index
    %169 = memref.load %arg8[%c42] : memref<72xf32, #tpu.memory_space<smem>>
    %170 = vector.broadcast %169 : f32 to vector<32x128xf32>
    %171 = arith.mulf %170, %111 : vector<32x128xf32>
    %c43 = arith.constant 43 : index
    %172 = memref.load %arg8[%c43] : memref<72xf32, #tpu.memory_space<smem>>
    %173 = vector.broadcast %172 : f32 to vector<32x128xf32>
    %174 = arith.mulf %173, %59 : vector<32x128xf32>
    %175 = arith.addf %171, %174 : vector<32x128xf32>
    %c44 = arith.constant 44 : index
    %176 = memref.load %arg8[%c44] : memref<72xf32, #tpu.memory_space<smem>>
    %177 = vector.broadcast %176 : f32 to vector<32x128xf32>
    %178 = arith.mulf %177, %113 : vector<32x128xf32>
    %179 = arith.addf %175, %178 : vector<32x128xf32>
    %c1_i32_46 = arith.constant 1 : i32
    %180 = tpu.dynamic_rotate %107 by %c1_i32_46 dim 1 : vector<32x128xf32>, i32 -> vector<32x128xf32>
    %c127_i32_47 = arith.constant 127 : i32
    %181 = tpu.dynamic_rotate %107 by %c127_i32_47 dim 1 : vector<32x128xf32>, i32 -> vector<32x128xf32>
    %cst_48 = arith.constant 0x7F800000 : f32
    %182 = vector.broadcast %cst_48 : f32 to vector<32x128xf32>
    %183 = arith.select %5, %180, %182 : vector<32x128xi1>, vector<32x128xf32>
    %184 = arith.minimumf %183, %107 : vector<32x128xf32>
    %cst_49 = arith.constant 0x7F800000 : f32
    %185 = vector.broadcast %cst_49 : f32 to vector<32x128xf32>
    %186 = arith.select %7, %181, %185 : vector<32x128xi1>, vector<32x128xf32>
    %187 = arith.minimumf %184, %186 : vector<32x128xf32>
    %c1_i32_50 = arith.constant 1 : i32
    %188 = tpu.dynamic_rotate %187 by %c1_i32_50 dim 0 : vector<32x128xf32>, i32 -> vector<32x128xf32>
    %cst_51 = arith.constant 0x7F800000 : f32
    %189 = vector.broadcast %cst_51 : f32 to vector<32x128xf32>
    %190 = arith.select %9, %188, %189 : vector<32x128xi1>, vector<32x128xf32>
    %191 = arith.minimumf %190, %187 : vector<32x128xf32>
    %c31_i32_52 = arith.constant 31 : i32
    %192 = tpu.dynamic_rotate %187 by %c31_i32_52 dim 0 : vector<32x128xf32>, i32 -> vector<32x128xf32>
    %cst_53 = arith.constant 0x7F800000 : f32
    %193 = vector.broadcast %cst_53 : f32 to vector<32x128xf32>
    %194 = arith.select %11, %192, %193 : vector<32x128xi1>, vector<32x128xf32>
    %195 = arith.minimumf %191, %194 : vector<32x128xf32>
    %c1_i32_54 = arith.constant 1 : i32
    %196 = tpu.dynamic_rotate %195 by %c1_i32_54 dim 1 : vector<32x128xf32>, i32 -> vector<32x128xf32>
    %c127_i32_55 = arith.constant 127 : i32
    %197 = tpu.dynamic_rotate %195 by %c127_i32_55 dim 1 : vector<32x128xf32>, i32 -> vector<32x128xf32>
    %cst_56 = arith.constant 0.000000e+00 : f32
    %198 = vector.broadcast %cst_56 : f32 to vector<32x128xf32>
    %199 = arith.select %5, %196, %198 : vector<32x128xi1>, vector<32x128xf32>
    %cst_57 = arith.constant 0.000000e+00 : f32
    %200 = vector.broadcast %cst_57 : f32 to vector<32x128xf32>
    %201 = arith.select %7, %197, %200 : vector<32x128xi1>, vector<32x128xf32>
    %c9 = arith.constant 9 : index
    %202 = memref.load %arg8[%c9] : memref<72xf32, #tpu.memory_space<smem>>
    %203 = vector.broadcast %202 : f32 to vector<32x128xf32>
    %204 = arith.mulf %203, %199 : vector<32x128xf32>
    %c10 = arith.constant 10 : index
    %205 = memref.load %arg8[%c10] : memref<72xf32, #tpu.memory_space<smem>>
    %206 = vector.broadcast %205 : f32 to vector<32x128xf32>
    %207 = arith.mulf %206, %195 : vector<32x128xf32>
    %208 = arith.addf %204, %207 : vector<32x128xf32>
    %c11 = arith.constant 11 : index
    %209 = memref.load %arg8[%c11] : memref<72xf32, #tpu.memory_space<smem>>
    %210 = vector.broadcast %209 : f32 to vector<32x128xf32>
    %211 = arith.mulf %210, %201 : vector<32x128xf32>
    %212 = arith.addf %208, %211 : vector<32x128xf32>
    %213 = arith.addf %124, %212 : vector<32x128xf32>
    %c12 = arith.constant 12 : index
    %214 = memref.load %arg8[%c12] : memref<72xf32, #tpu.memory_space<smem>>
    %215 = vector.broadcast %214 : f32 to vector<32x128xf32>
    %216 = arith.mulf %215, %199 : vector<32x128xf32>
    %c13 = arith.constant 13 : index
    %217 = memref.load %arg8[%c13] : memref<72xf32, #tpu.memory_space<smem>>
    %218 = vector.broadcast %217 : f32 to vector<32x128xf32>
    %219 = arith.mulf %218, %195 : vector<32x128xf32>
    %220 = arith.addf %216, %219 : vector<32x128xf32>
    %c14 = arith.constant 14 : index
    %221 = memref.load %arg8[%c14] : memref<72xf32, #tpu.memory_space<smem>>
    %222 = vector.broadcast %221 : f32 to vector<32x128xf32>
    %223 = arith.mulf %222, %201 : vector<32x128xf32>
    %224 = arith.addf %220, %223 : vector<32x128xf32>
    %225 = arith.addf %135, %224 : vector<32x128xf32>
    %c15 = arith.constant 15 : index
    %226 = memref.load %arg8[%c15] : memref<72xf32, #tpu.memory_space<smem>>
    %227 = vector.broadcast %226 : f32 to vector<32x128xf32>
    %228 = arith.mulf %227, %199 : vector<32x128xf32>
    %c16 = arith.constant 16 : index
    %229 = memref.load %arg8[%c16] : memref<72xf32, #tpu.memory_space<smem>>
    %230 = vector.broadcast %229 : f32 to vector<32x128xf32>
    %231 = arith.mulf %230, %195 : vector<32x128xf32>
    %232 = arith.addf %228, %231 : vector<32x128xf32>
    %c17 = arith.constant 17 : index
    %233 = memref.load %arg8[%c17] : memref<72xf32, #tpu.memory_space<smem>>
    %234 = vector.broadcast %233 : f32 to vector<32x128xf32>
    %235 = arith.mulf %234, %201 : vector<32x128xf32>
    %236 = arith.addf %232, %235 : vector<32x128xf32>
    %237 = arith.addf %146, %236 : vector<32x128xf32>
    %c45 = arith.constant 45 : index
    %238 = memref.load %arg8[%c45] : memref<72xf32, #tpu.memory_space<smem>>
    %239 = vector.broadcast %238 : f32 to vector<32x128xf32>
    %240 = arith.mulf %239, %199 : vector<32x128xf32>
    %c46 = arith.constant 46 : index
    %241 = memref.load %arg8[%c46] : memref<72xf32, #tpu.memory_space<smem>>
    %242 = vector.broadcast %241 : f32 to vector<32x128xf32>
    %243 = arith.mulf %242, %195 : vector<32x128xf32>
    %244 = arith.addf %240, %243 : vector<32x128xf32>
    %c47 = arith.constant 47 : index
    %245 = memref.load %arg8[%c47] : memref<72xf32, #tpu.memory_space<smem>>
    %246 = vector.broadcast %245 : f32 to vector<32x128xf32>
    %247 = arith.mulf %246, %201 : vector<32x128xf32>
    %248 = arith.addf %244, %247 : vector<32x128xf32>
    %249 = arith.addf %157, %248 : vector<32x128xf32>
    %c48 = arith.constant 48 : index
    %250 = memref.load %arg8[%c48] : memref<72xf32, #tpu.memory_space<smem>>
    %251 = vector.broadcast %250 : f32 to vector<32x128xf32>
    %252 = arith.mulf %251, %199 : vector<32x128xf32>
    %c49 = arith.constant 49 : index
    %253 = memref.load %arg8[%c49] : memref<72xf32, #tpu.memory_space<smem>>
    %254 = vector.broadcast %253 : f32 to vector<32x128xf32>
    %255 = arith.mulf %254, %195 : vector<32x128xf32>
    %256 = arith.addf %252, %255 : vector<32x128xf32>
    %c50 = arith.constant 50 : index
    %257 = memref.load %arg8[%c50] : memref<72xf32, #tpu.memory_space<smem>>
    %258 = vector.broadcast %257 : f32 to vector<32x128xf32>
    %259 = arith.mulf %258, %201 : vector<32x128xf32>
    %260 = arith.addf %256, %259 : vector<32x128xf32>
    %261 = arith.addf %168, %260 : vector<32x128xf32>
    %c51 = arith.constant 51 : index
    %262 = memref.load %arg8[%c51] : memref<72xf32, #tpu.memory_space<smem>>
    %263 = vector.broadcast %262 : f32 to vector<32x128xf32>
    %264 = arith.mulf %263, %199 : vector<32x128xf32>
    %c52 = arith.constant 52 : index
    %265 = memref.load %arg8[%c52] : memref<72xf32, #tpu.memory_space<smem>>
    %266 = vector.broadcast %265 : f32 to vector<32x128xf32>
    %267 = arith.mulf %266, %195 : vector<32x128xf32>
    %268 = arith.addf %264, %267 : vector<32x128xf32>
    %c53 = arith.constant 53 : index
    %269 = memref.load %arg8[%c53] : memref<72xf32, #tpu.memory_space<smem>>
    %270 = vector.broadcast %269 : f32 to vector<32x128xf32>
    %271 = arith.mulf %270, %201 : vector<32x128xf32>
    %272 = arith.addf %268, %271 : vector<32x128xf32>
    %273 = arith.addf %179, %272 : vector<32x128xf32>
    %c1_i32_58 = arith.constant 1 : i32
    %274 = tpu.dynamic_rotate %43 by %c1_i32_58 dim 1 : vector<32x128xf32>, i32 -> vector<32x128xf32>
    %c127_i32_59 = arith.constant 127 : i32
    %275 = tpu.dynamic_rotate %43 by %c127_i32_59 dim 1 : vector<32x128xf32>, i32 -> vector<32x128xf32>
    %cst_60 = arith.constant 0x7F800000 : f32
    %276 = vector.broadcast %cst_60 : f32 to vector<32x128xf32>
    %277 = arith.select %5, %274, %276 : vector<32x128xi1>, vector<32x128xf32>
    %278 = arith.minimumf %277, %43 : vector<32x128xf32>
    %cst_61 = arith.constant 0x7F800000 : f32
    %279 = vector.broadcast %cst_61 : f32 to vector<32x128xf32>
    %280 = arith.select %7, %275, %279 : vector<32x128xi1>, vector<32x128xf32>
    %281 = arith.minimumf %278, %280 : vector<32x128xf32>
    %c1_i32_62 = arith.constant 1 : i32
    %282 = tpu.dynamic_rotate %281 by %c1_i32_62 dim 0 : vector<32x128xf32>, i32 -> vector<32x128xf32>
    %cst_63 = arith.constant 0x7F800000 : f32
    %283 = vector.broadcast %cst_63 : f32 to vector<32x128xf32>
    %284 = arith.select %9, %282, %283 : vector<32x128xi1>, vector<32x128xf32>
    %285 = arith.minimumf %284, %281 : vector<32x128xf32>
    %c31_i32_64 = arith.constant 31 : i32
    %286 = tpu.dynamic_rotate %281 by %c31_i32_64 dim 0 : vector<32x128xf32>, i32 -> vector<32x128xf32>
    %cst_65 = arith.constant 0x7F800000 : f32
    %287 = vector.broadcast %cst_65 : f32 to vector<32x128xf32>
    %288 = arith.select %11, %286, %287 : vector<32x128xi1>, vector<32x128xf32>
    %289 = arith.minimumf %285, %288 : vector<32x128xf32>
    %cst_66 = arith.constant 0.000000e+00 : f32
    %290 = vector.broadcast %cst_66 : f32 to vector<32x128xf32>
    %291 = arith.select %5, %274, %290 : vector<32x128xi1>, vector<32x128xf32>
    %cst_67 = arith.constant 0.000000e+00 : f32
    %292 = vector.broadcast %cst_67 : f32 to vector<32x128xf32>
    %293 = arith.select %7, %275, %292 : vector<32x128xi1>, vector<32x128xf32>
    %c0_68 = arith.constant 0 : index
    %294 = memref.load %arg6[%c0_68] : memref<9xf32, #tpu.memory_space<smem>>
    %295 = vector.broadcast %294 : f32 to vector<32x128xf32>
    %296 = arith.mulf %295, %291 : vector<32x128xf32>
    %c1_69 = arith.constant 1 : index
    %297 = memref.load %arg6[%c1_69] : memref<9xf32, #tpu.memory_space<smem>>
    %298 = vector.broadcast %297 : f32 to vector<32x128xf32>
    %299 = arith.mulf %298, %43 : vector<32x128xf32>
    %300 = arith.addf %296, %299 : vector<32x128xf32>
    %c2_70 = arith.constant 2 : index
    %301 = memref.load %arg6[%c2_70] : memref<9xf32, #tpu.memory_space<smem>>
    %302 = vector.broadcast %301 : f32 to vector<32x128xf32>
    %303 = arith.mulf %302, %293 : vector<32x128xf32>
    %304 = arith.addf %300, %303 : vector<32x128xf32>
    %c3_71 = arith.constant 3 : index
    %305 = memref.load %arg6[%c3_71] : memref<9xf32, #tpu.memory_space<smem>>
    %306 = vector.broadcast %305 : f32 to vector<32x128xf32>
    %307 = arith.mulf %306, %291 : vector<32x128xf32>
    %c4_72 = arith.constant 4 : index
    %308 = memref.load %arg6[%c4_72] : memref<9xf32, #tpu.memory_space<smem>>
    %309 = vector.broadcast %308 : f32 to vector<32x128xf32>
    %310 = arith.mulf %309, %43 : vector<32x128xf32>
    %311 = arith.addf %307, %310 : vector<32x128xf32>
    %c5_73 = arith.constant 5 : index
    %312 = memref.load %arg6[%c5_73] : memref<9xf32, #tpu.memory_space<smem>>
    %313 = vector.broadcast %312 : f32 to vector<32x128xf32>
    %314 = arith.mulf %313, %293 : vector<32x128xf32>
    %315 = arith.addf %311, %314 : vector<32x128xf32>
    %c6_74 = arith.constant 6 : index
    %316 = memref.load %arg6[%c6_74] : memref<9xf32, #tpu.memory_space<smem>>
    %317 = vector.broadcast %316 : f32 to vector<32x128xf32>
    %318 = arith.mulf %317, %291 : vector<32x128xf32>
    %c7_75 = arith.constant 7 : index
    %319 = memref.load %arg6[%c7_75] : memref<9xf32, #tpu.memory_space<smem>>
    %320 = vector.broadcast %319 : f32 to vector<32x128xf32>
    %321 = arith.mulf %320, %43 : vector<32x128xf32>
    %322 = arith.addf %318, %321 : vector<32x128xf32>
    %c8_76 = arith.constant 8 : index
    %323 = memref.load %arg6[%c8_76] : memref<9xf32, #tpu.memory_space<smem>>
    %324 = vector.broadcast %323 : f32 to vector<32x128xf32>
    %325 = arith.mulf %324, %293 : vector<32x128xf32>
    %326 = arith.addf %322, %325 : vector<32x128xf32>
    %c1_i32_77 = arith.constant 1 : i32
    %327 = tpu.dynamic_rotate %304 by %c1_i32_77 dim 0 : vector<32x128xf32>, i32 -> vector<32x128xf32>
    %cst_78 = arith.constant 0.000000e+00 : f32
    %328 = vector.broadcast %cst_78 : f32 to vector<32x128xf32>
    %329 = arith.select %9, %327, %328 : vector<32x128xi1>, vector<32x128xf32>
    %330 = arith.addf %329, %315 : vector<32x128xf32>
    %c31_i32_79 = arith.constant 31 : i32
    %331 = tpu.dynamic_rotate %326 by %c31_i32_79 dim 0 : vector<32x128xf32>, i32 -> vector<32x128xf32>
    %cst_80 = arith.constant 0.000000e+00 : f32
    %332 = vector.broadcast %cst_80 : f32 to vector<32x128xf32>
    %333 = arith.select %11, %331, %332 : vector<32x128xi1>, vector<32x128xf32>
    %334 = arith.addf %330, %333 : vector<32x128xf32>
    %c0_81 = arith.constant 0 : index
    %335 = memref.load %arg7[%c0_81] : memref<1xf32, #tpu.memory_space<smem>>
    %336 = vector.broadcast %335 : f32 to vector<32x128xf32>
    %337 = arith.addf %334, %336 : vector<32x128xf32>
    %c1_i32_82 = arith.constant 1 : i32
    %338 = tpu.dynamic_rotate %289 by %c1_i32_82 dim 1 : vector<32x128xf32>, i32 -> vector<32x128xf32>
    %c127_i32_83 = arith.constant 127 : i32
    %339 = tpu.dynamic_rotate %289 by %c127_i32_83 dim 1 : vector<32x128xf32>, i32 -> vector<32x128xf32>
    %cst_84 = arith.constant 0.000000e+00 : f32
    %340 = vector.broadcast %cst_84 : f32 to vector<32x128xf32>
    %341 = arith.select %5, %338, %340 : vector<32x128xi1>, vector<32x128xf32>
    %cst_85 = arith.constant 0.000000e+00 : f32
    %342 = vector.broadcast %cst_85 : f32 to vector<32x128xf32>
    %343 = arith.select %7, %339, %342 : vector<32x128xi1>, vector<32x128xf32>
    %c27 = arith.constant 27 : index
    %344 = memref.load %arg8[%c27] : memref<72xf32, #tpu.memory_space<smem>>
    %345 = vector.broadcast %344 : f32 to vector<32x128xf32>
    %346 = arith.mulf %345, %341 : vector<32x128xf32>
    %c28 = arith.constant 28 : index
    %347 = memref.load %arg8[%c28] : memref<72xf32, #tpu.memory_space<smem>>
    %348 = vector.broadcast %347 : f32 to vector<32x128xf32>
    %349 = arith.mulf %348, %289 : vector<32x128xf32>
    %350 = arith.addf %346, %349 : vector<32x128xf32>
    %c29 = arith.constant 29 : index
    %351 = memref.load %arg8[%c29] : memref<72xf32, #tpu.memory_space<smem>>
    %352 = vector.broadcast %351 : f32 to vector<32x128xf32>
    %353 = arith.mulf %352, %343 : vector<32x128xf32>
    %354 = arith.addf %350, %353 : vector<32x128xf32>
    %355 = arith.addf %213, %354 : vector<32x128xf32>
    %c30 = arith.constant 30 : index
    %356 = memref.load %arg8[%c30] : memref<72xf32, #tpu.memory_space<smem>>
    %357 = vector.broadcast %356 : f32 to vector<32x128xf32>
    %358 = arith.mulf %357, %341 : vector<32x128xf32>
    %c31 = arith.constant 31 : index
    %359 = memref.load %arg8[%c31] : memref<72xf32, #tpu.memory_space<smem>>
    %360 = vector.broadcast %359 : f32 to vector<32x128xf32>
    %361 = arith.mulf %360, %289 : vector<32x128xf32>
    %362 = arith.addf %358, %361 : vector<32x128xf32>
    %c32 = arith.constant 32 : index
    %363 = memref.load %arg8[%c32] : memref<72xf32, #tpu.memory_space<smem>>
    %364 = vector.broadcast %363 : f32 to vector<32x128xf32>
    %365 = arith.mulf %364, %343 : vector<32x128xf32>
    %366 = arith.addf %362, %365 : vector<32x128xf32>
    %367 = arith.addf %225, %366 : vector<32x128xf32>
    %c33 = arith.constant 33 : index
    %368 = memref.load %arg8[%c33] : memref<72xf32, #tpu.memory_space<smem>>
    %369 = vector.broadcast %368 : f32 to vector<32x128xf32>
    %370 = arith.mulf %369, %341 : vector<32x128xf32>
    %c34 = arith.constant 34 : index
    %371 = memref.load %arg8[%c34] : memref<72xf32, #tpu.memory_space<smem>>
    %372 = vector.broadcast %371 : f32 to vector<32x128xf32>
    %373 = arith.mulf %372, %289 : vector<32x128xf32>
    %374 = arith.addf %370, %373 : vector<32x128xf32>
    %c35 = arith.constant 35 : index
    %375 = memref.load %arg8[%c35] : memref<72xf32, #tpu.memory_space<smem>>
    %376 = vector.broadcast %375 : f32 to vector<32x128xf32>
    %377 = arith.mulf %376, %343 : vector<32x128xf32>
    %378 = arith.addf %374, %377 : vector<32x128xf32>
    %379 = arith.addf %237, %378 : vector<32x128xf32>
    %c63 = arith.constant 63 : index
    %380 = memref.load %arg8[%c63] : memref<72xf32, #tpu.memory_space<smem>>
    %381 = vector.broadcast %380 : f32 to vector<32x128xf32>
    %382 = arith.mulf %381, %341 : vector<32x128xf32>
    %c64 = arith.constant 64 : index
    %383 = memref.load %arg8[%c64] : memref<72xf32, #tpu.memory_space<smem>>
    %384 = vector.broadcast %383 : f32 to vector<32x128xf32>
    %385 = arith.mulf %384, %289 : vector<32x128xf32>
    %386 = arith.addf %382, %385 : vector<32x128xf32>
    %c65 = arith.constant 65 : index
    %387 = memref.load %arg8[%c65] : memref<72xf32, #tpu.memory_space<smem>>
    %388 = vector.broadcast %387 : f32 to vector<32x128xf32>
    %389 = arith.mulf %388, %343 : vector<32x128xf32>
    %390 = arith.addf %386, %389 : vector<32x128xf32>
    %391 = arith.addf %249, %390 : vector<32x128xf32>
    %c66 = arith.constant 66 : index
    %392 = memref.load %arg8[%c66] : memref<72xf32, #tpu.memory_space<smem>>
    %393 = vector.broadcast %392 : f32 to vector<32x128xf32>
    %394 = arith.mulf %393, %341 : vector<32x128xf32>
    %c67 = arith.constant 67 : index
    %395 = memref.load %arg8[%c67] : memref<72xf32, #tpu.memory_space<smem>>
    %396 = vector.broadcast %395 : f32 to vector<32x128xf32>
    %397 = arith.mulf %396, %289 : vector<32x128xf32>
    %398 = arith.addf %394, %397 : vector<32x128xf32>
    %c68 = arith.constant 68 : index
    %399 = memref.load %arg8[%c68] : memref<72xf32, #tpu.memory_space<smem>>
    %400 = vector.broadcast %399 : f32 to vector<32x128xf32>
    %401 = arith.mulf %400, %343 : vector<32x128xf32>
    %402 = arith.addf %398, %401 : vector<32x128xf32>
    %403 = arith.addf %261, %402 : vector<32x128xf32>
    %c69 = arith.constant 69 : index
    %404 = memref.load %arg8[%c69] : memref<72xf32, #tpu.memory_space<smem>>
    %405 = vector.broadcast %404 : f32 to vector<32x128xf32>
    %406 = arith.mulf %405, %341 : vector<32x128xf32>
    %c70 = arith.constant 70 : index
    %407 = memref.load %arg8[%c70] : memref<72xf32, #tpu.memory_space<smem>>
    %408 = vector.broadcast %407 : f32 to vector<32x128xf32>
    %409 = arith.mulf %408, %289 : vector<32x128xf32>
    %410 = arith.addf %406, %409 : vector<32x128xf32>
    %c71 = arith.constant 71 : index
    %411 = memref.load %arg8[%c71] : memref<72xf32, #tpu.memory_space<smem>>
    %412 = vector.broadcast %411 : f32 to vector<32x128xf32>
    %413 = arith.mulf %412, %343 : vector<32x128xf32>
    %414 = arith.addf %410, %413 : vector<32x128xf32>
    %415 = arith.addf %273, %414 : vector<32x128xf32>
    %c1_i32_86 = arith.constant 1 : i32
    %416 = tpu.dynamic_rotate %337 by %c1_i32_86 dim 1 : vector<32x128xf32>, i32 -> vector<32x128xf32>
    %c127_i32_87 = arith.constant 127 : i32
    %417 = tpu.dynamic_rotate %337 by %c127_i32_87 dim 1 : vector<32x128xf32>, i32 -> vector<32x128xf32>
    %cst_88 = arith.constant 0xFF800000 : f32
    %418 = vector.broadcast %cst_88 : f32 to vector<32x128xf32>
    %419 = arith.select %5, %416, %418 : vector<32x128xi1>, vector<32x128xf32>
    %420 = arith.maximumf %419, %337 : vector<32x128xf32>
    %cst_89 = arith.constant 0xFF800000 : f32
    %421 = vector.broadcast %cst_89 : f32 to vector<32x128xf32>
    %422 = arith.select %7, %417, %421 : vector<32x128xi1>, vector<32x128xf32>
    %423 = arith.maximumf %420, %422 : vector<32x128xf32>
    %c1_i32_90 = arith.constant 1 : i32
    %424 = tpu.dynamic_rotate %423 by %c1_i32_90 dim 0 : vector<32x128xf32>, i32 -> vector<32x128xf32>
    %cst_91 = arith.constant 0xFF800000 : f32
    %425 = vector.broadcast %cst_91 : f32 to vector<32x128xf32>
    %426 = arith.select %9, %424, %425 : vector<32x128xi1>, vector<32x128xf32>
    %427 = arith.maximumf %426, %423 : vector<32x128xf32>
    %c31_i32_92 = arith.constant 31 : i32
    %428 = tpu.dynamic_rotate %423 by %c31_i32_92 dim 0 : vector<32x128xf32>, i32 -> vector<32x128xf32>
    %cst_93 = arith.constant 0xFF800000 : f32
    %429 = vector.broadcast %cst_93 : f32 to vector<32x128xf32>
    %430 = arith.select %11, %428, %429 : vector<32x128xi1>, vector<32x128xf32>
    %431 = arith.maximumf %427, %430 : vector<32x128xf32>
    %c1_i32_94 = arith.constant 1 : i32
    %432 = tpu.dynamic_rotate %431 by %c1_i32_94 dim 1 : vector<32x128xf32>, i32 -> vector<32x128xf32>
    %c127_i32_95 = arith.constant 127 : i32
    %433 = tpu.dynamic_rotate %431 by %c127_i32_95 dim 1 : vector<32x128xf32>, i32 -> vector<32x128xf32>
    %cst_96 = arith.constant 0.000000e+00 : f32
    %434 = vector.broadcast %cst_96 : f32 to vector<32x128xf32>
    %435 = arith.select %5, %432, %434 : vector<32x128xi1>, vector<32x128xf32>
    %cst_97 = arith.constant 0.000000e+00 : f32
    %436 = vector.broadcast %cst_97 : f32 to vector<32x128xf32>
    %437 = arith.select %7, %433, %436 : vector<32x128xi1>, vector<32x128xf32>
    %c18 = arith.constant 18 : index
    %438 = memref.load %arg8[%c18] : memref<72xf32, #tpu.memory_space<smem>>
    %439 = vector.broadcast %438 : f32 to vector<32x128xf32>
    %440 = arith.mulf %439, %435 : vector<32x128xf32>
    %c19 = arith.constant 19 : index
    %441 = memref.load %arg8[%c19] : memref<72xf32, #tpu.memory_space<smem>>
    %442 = vector.broadcast %441 : f32 to vector<32x128xf32>
    %443 = arith.mulf %442, %431 : vector<32x128xf32>
    %444 = arith.addf %440, %443 : vector<32x128xf32>
    %c20 = arith.constant 20 : index
    %445 = memref.load %arg8[%c20] : memref<72xf32, #tpu.memory_space<smem>>
    %446 = vector.broadcast %445 : f32 to vector<32x128xf32>
    %447 = arith.mulf %446, %437 : vector<32x128xf32>
    %448 = arith.addf %444, %447 : vector<32x128xf32>
    %449 = arith.addf %355, %448 : vector<32x128xf32>
    %c21 = arith.constant 21 : index
    %450 = memref.load %arg8[%c21] : memref<72xf32, #tpu.memory_space<smem>>
    %451 = vector.broadcast %450 : f32 to vector<32x128xf32>
    %452 = arith.mulf %451, %435 : vector<32x128xf32>
    %c22 = arith.constant 22 : index
    %453 = memref.load %arg8[%c22] : memref<72xf32, #tpu.memory_space<smem>>
    %454 = vector.broadcast %453 : f32 to vector<32x128xf32>
    %455 = arith.mulf %454, %431 : vector<32x128xf32>
    %456 = arith.addf %452, %455 : vector<32x128xf32>
    %c23 = arith.constant 23 : index
    %457 = memref.load %arg8[%c23] : memref<72xf32, #tpu.memory_space<smem>>
    %458 = vector.broadcast %457 : f32 to vector<32x128xf32>
    %459 = arith.mulf %458, %437 : vector<32x128xf32>
    %460 = arith.addf %456, %459 : vector<32x128xf32>
    %461 = arith.addf %367, %460 : vector<32x128xf32>
    %c24 = arith.constant 24 : index
    %462 = memref.load %arg8[%c24] : memref<72xf32, #tpu.memory_space<smem>>
    %463 = vector.broadcast %462 : f32 to vector<32x128xf32>
    %464 = arith.mulf %463, %435 : vector<32x128xf32>
    %c25 = arith.constant 25 : index
    %465 = memref.load %arg8[%c25] : memref<72xf32, #tpu.memory_space<smem>>
    %466 = vector.broadcast %465 : f32 to vector<32x128xf32>
    %467 = arith.mulf %466, %431 : vector<32x128xf32>
    %468 = arith.addf %464, %467 : vector<32x128xf32>
    %c26 = arith.constant 26 : index
    %469 = memref.load %arg8[%c26] : memref<72xf32, #tpu.memory_space<smem>>
    %470 = vector.broadcast %469 : f32 to vector<32x128xf32>
    %471 = arith.mulf %470, %437 : vector<32x128xf32>
    %472 = arith.addf %468, %471 : vector<32x128xf32>
    %473 = arith.addf %379, %472 : vector<32x128xf32>
    %c54 = arith.constant 54 : index
    %474 = memref.load %arg8[%c54] : memref<72xf32, #tpu.memory_space<smem>>
    %475 = vector.broadcast %474 : f32 to vector<32x128xf32>
    %476 = arith.mulf %475, %435 : vector<32x128xf32>
    %c55 = arith.constant 55 : index
    %477 = memref.load %arg8[%c55] : memref<72xf32, #tpu.memory_space<smem>>
    %478 = vector.broadcast %477 : f32 to vector<32x128xf32>
    %479 = arith.mulf %478, %431 : vector<32x128xf32>
    %480 = arith.addf %476, %479 : vector<32x128xf32>
    %c56 = arith.constant 56 : index
    %481 = memref.load %arg8[%c56] : memref<72xf32, #tpu.memory_space<smem>>
    %482 = vector.broadcast %481 : f32 to vector<32x128xf32>
    %483 = arith.mulf %482, %437 : vector<32x128xf32>
    %484 = arith.addf %480, %483 : vector<32x128xf32>
    %485 = arith.addf %391, %484 : vector<32x128xf32>
    %c57 = arith.constant 57 : index
    %486 = memref.load %arg8[%c57] : memref<72xf32, #tpu.memory_space<smem>>
    %487 = vector.broadcast %486 : f32 to vector<32x128xf32>
    %488 = arith.mulf %487, %435 : vector<32x128xf32>
    %c58 = arith.constant 58 : index
    %489 = memref.load %arg8[%c58] : memref<72xf32, #tpu.memory_space<smem>>
    %490 = vector.broadcast %489 : f32 to vector<32x128xf32>
    %491 = arith.mulf %490, %431 : vector<32x128xf32>
    %492 = arith.addf %488, %491 : vector<32x128xf32>
    %c59 = arith.constant 59 : index
    %493 = memref.load %arg8[%c59] : memref<72xf32, #tpu.memory_space<smem>>
    %494 = vector.broadcast %493 : f32 to vector<32x128xf32>
    %495 = arith.mulf %494, %437 : vector<32x128xf32>
    %496 = arith.addf %492, %495 : vector<32x128xf32>
    %497 = arith.addf %403, %496 : vector<32x128xf32>
    %c60 = arith.constant 60 : index
    %498 = memref.load %arg8[%c60] : memref<72xf32, #tpu.memory_space<smem>>
    %499 = vector.broadcast %498 : f32 to vector<32x128xf32>
    %500 = arith.mulf %499, %435 : vector<32x128xf32>
    %c61 = arith.constant 61 : index
    %501 = memref.load %arg8[%c61] : memref<72xf32, #tpu.memory_space<smem>>
    %502 = vector.broadcast %501 : f32 to vector<32x128xf32>
    %503 = arith.mulf %502, %431 : vector<32x128xf32>
    %504 = arith.addf %500, %503 : vector<32x128xf32>
    %c62 = arith.constant 62 : index
    %505 = memref.load %arg8[%c62] : memref<72xf32, #tpu.memory_space<smem>>
    %506 = vector.broadcast %505 : f32 to vector<32x128xf32>
    %507 = arith.mulf %506, %437 : vector<32x128xf32>
    %508 = arith.addf %504, %507 : vector<32x128xf32>
    %509 = arith.addf %415, %508 : vector<32x128xf32>
    %c1_i32_98 = arith.constant 1 : i32
    %510 = tpu.dynamic_rotate %449 by %c1_i32_98 dim 0 : vector<32x128xf32>, i32 -> vector<32x128xf32>
    %cst_99 = arith.constant 0.000000e+00 : f32
    %511 = vector.broadcast %cst_99 : f32 to vector<32x128xf32>
    %512 = arith.select %9, %510, %511 : vector<32x128xi1>, vector<32x128xf32>
    %513 = arith.addf %512, %461 : vector<32x128xf32>
    %c31_i32_100 = arith.constant 31 : i32
    %514 = tpu.dynamic_rotate %473 by %c31_i32_100 dim 0 : vector<32x128xf32>, i32 -> vector<32x128xf32>
    %cst_101 = arith.constant 0.000000e+00 : f32
    %515 = vector.broadcast %cst_101 : f32 to vector<32x128xf32>
    %516 = arith.select %11, %514, %515 : vector<32x128xi1>, vector<32x128xf32>
    %517 = arith.addf %513, %516 : vector<32x128xf32>
    %c0_102 = arith.constant 0 : index
    %518 = memref.load %arg9[%c0_102] : memref<2xf32, #tpu.memory_space<smem>>
    %519 = vector.broadcast %518 : f32 to vector<32x128xf32>
    %520 = arith.addf %517, %519 : vector<32x128xf32>
    %c0_103 = arith.constant 0 : index
    %c0_104 = arith.constant 0 : index
    %521 = vector.load %arg2[%c0_103, %c0_104] : memref<16x32xf32, #tpu.memory_space<vmem>>, vector<16x32xf32>
    %cst_105 = arith.constant dense<0.000000e+00> : vector<16x128xf32>
    %522 = tpu.matmul %521, %520, %cst_105 {dimension_numbers = #tpu.dot_dimension_numbers<[1], [0], [0], [1], [0, 0, 1, 1], [], []>} : vector<16x32xf32>, vector<32x128xf32>, vector<16x128xf32> -> vector<16x128xf32>
    %c0_106 = arith.constant 0 : index
    %c0_107 = arith.constant 0 : index
    %523 = vector.load %arg3[%c0_106, %c0_107] : memref<128x64xf32, #tpu.memory_space<vmem>>, vector<128x64xf32>
    %cst_108 = arith.constant dense<0.000000e+00> : vector<16x64xf32>
    %524 = tpu.matmul %522, %523, %cst_108 {dimension_numbers = #tpu.dot_dimension_numbers<[1], [0], [0], [1], [0, 0, 1, 1], [], []>} : vector<16x128xf32>, vector<128x64xf32>, vector<16x64xf32> -> vector<16x64xf32>
    %cst_109 = arith.constant 0.000000e+00 : f32
    %525 = vector.broadcast %cst_109 : f32 to vector<16x64xf32>
    %526 = arith.maximumf %524, %525 : vector<16x64xf32>
    %527 = vector.extract_strided_slice %526 {offsets = [0, 0], sizes = [16, 16], strides = [1, 1]} : vector<16x64xf32> to vector<16x16xf32>
    %c0_110 = arith.constant 0 : index
    %c0_111 = arith.constant 0 : index
    %c0_112 = arith.constant 0 : index
    %c0_113 = arith.constant 0 : index
    %528 = vector.load %arg10[%c0_110, %c0_111, %c0_112, %c0_113] : memref<4x2x16x16xf32, #tpu.memory_space<vmem>>, vector<1x1x16x16xf32>
    %529 = vector.shape_cast %528 : vector<1x1x16x16xf32> to vector<16x16xf32>
    %530 = vector.shape_cast %527 : vector<16x16xf32> to vector<1x1x16x16xf32>
    tpu.vector_store %arg10[%c0_110, %c0_111, %c0_112, %c0_113], %530 {strides = array<i32>} : memref<4x2x16x16xf32, #tpu.memory_space<vmem>>, vector<1x1x16x16xf32>,
    %531 = vector.extract_strided_slice %526 {offsets = [0, 16], sizes = [16, 16], strides = [1, 1]} : vector<16x64xf32> to vector<16x16xf32>
    %c1_114 = arith.constant 1 : index
    %c0_115 = arith.constant 0 : index
    %c0_116 = arith.constant 0 : index
    %c0_117 = arith.constant 0 : index
    %532 = vector.load %arg10[%c1_114, %c0_115, %c0_116, %c0_117] : memref<4x2x16x16xf32, #tpu.memory_space<vmem>>, vector<1x1x16x16xf32>
    %533 = vector.shape_cast %532 : vector<1x1x16x16xf32> to vector<16x16xf32>
    %534 = vector.shape_cast %531 : vector<16x16xf32> to vector<1x1x16x16xf32>
    tpu.vector_store %arg10[%c1_114, %c0_115, %c0_116, %c0_117], %534 {strides = array<i32>} : memref<4x2x16x16xf32, #tpu.memory_space<vmem>>, vector<1x1x16x16xf32>,
    %535 = vector.extract_strided_slice %526 {offsets = [0, 32], sizes = [16, 16], strides = [1, 1]} : vector<16x64xf32> to vector<16x16xf32>
    %c2_118 = arith.constant 2 : index
    %c0_119 = arith.constant 0 : index
    %c0_120 = arith.constant 0 : index
    %c0_121 = arith.constant 0 : index
    %536 = vector.load %arg10[%c2_118, %c0_119, %c0_120, %c0_121] : memref<4x2x16x16xf32, #tpu.memory_space<vmem>>, vector<1x1x16x16xf32>
    %537 = vector.shape_cast %536 : vector<1x1x16x16xf32> to vector<16x16xf32>
    %538 = vector.shape_cast %535 : vector<16x16xf32> to vector<1x1x16x16xf32>
    tpu.vector_store %arg10[%c2_118, %c0_119, %c0_120, %c0_121], %538 {strides = array<i32>} : memref<4x2x16x16xf32, #tpu.memory_space<vmem>>, vector<1x1x16x16xf32>,
    %539 = vector.extract_strided_slice %526 {offsets = [0, 48], sizes = [16, 16], strides = [1, 1]} : vector<16x64xf32> to vector<16x16xf32>
    %c3_122 = arith.constant 3 : index
    %c0_123 = arith.constant 0 : index
    %c0_124 = arith.constant 0 : index
    %c0_125 = arith.constant 0 : index
    %540 = vector.load %arg10[%c3_122, %c0_123, %c0_124, %c0_125] : memref<4x2x16x16xf32, #tpu.memory_space<vmem>>, vector<1x1x16x16xf32>
    %541 = vector.shape_cast %540 : vector<1x1x16x16xf32> to vector<16x16xf32>
    %542 = vector.shape_cast %539 : vector<16x16xf32> to vector<1x1x16x16xf32>
    tpu.vector_store %arg10[%c3_122, %c0_123, %c0_124, %c0_125], %542 {strides = array<i32>} : memref<4x2x16x16xf32, #tpu.memory_space<vmem>>, vector<1x1x16x16xf32>,
    %c1_i32_126 = arith.constant 1 : i32
    %543 = tpu.dynamic_rotate %485 by %c1_i32_126 dim 0 : vector<32x128xf32>, i32 -> vector<32x128xf32>
    %cst_127 = arith.constant 0.000000e+00 : f32
    %544 = vector.broadcast %cst_127 : f32 to vector<32x128xf32>
    %545 = arith.select %9, %543, %544 : vector<32x128xi1>, vector<32x128xf32>
    %546 = arith.addf %545, %497 : vector<32x128xf32>
    %c31_i32_128 = arith.constant 31 : i32
    %547 = tpu.dynamic_rotate %509 by %c31_i32_128 dim 0 : vector<32x128xf32>, i32 -> vector<32x128xf32>
    %cst_129 = arith.constant 0.000000e+00 : f32
    %548 = vector.broadcast %cst_129 : f32 to vector<32x128xf32>
    %549 = arith.select %11, %547, %548 : vector<32x128xi1>, vector<32x128xf32>
    %550 = arith.addf %546, %549 : vector<32x128xf32>
    %c1_130 = arith.constant 1 : index
    %551 = memref.load %arg9[%c1_130] : memref<2xf32, #tpu.memory_space<smem>>
    %552 = vector.broadcast %551 : f32 to vector<32x128xf32>
    %553 = arith.addf %550, %552 : vector<32x128xf32>
    %c0_131 = arith.constant 0 : index
    %c0_132 = arith.constant 0 : index
    %554 = vector.load %arg2[%c0_131, %c0_132] : memref<16x32xf32, #tpu.memory_space<vmem>>, vector<16x32xf32>
    %cst_133 = arith.constant dense<0.000000e+00> : vector<16x128xf32>
    %555 = tpu.matmul %554, %553, %cst_133 {dimension_numbers = #tpu.dot_dimension_numbers<[1], [0], [0], [1], [0, 0, 1, 1], [], []>} : vector<16x32xf32>, vector<32x128xf32>, vector<16x128xf32> -> vector<16x128xf32>
    %c0_134 = arith.constant 0 : index
    %c0_135 = arith.constant 0 : index
    %556 = vector.load %arg3[%c0_134, %c0_135] : memref<128x64xf32, #tpu.memory_space<vmem>>, vector<128x64xf32>
    %cst_136 = arith.constant dense<0.000000e+00> : vector<16x64xf32>
    %557 = tpu.matmul %555, %556, %cst_136 {dimension_numbers = #tpu.dot_dimension_numbers<[1], [0], [0], [1], [0, 0, 1, 1], [], []>} : vector<16x128xf32>, vector<128x64xf32>, vector<16x64xf32> -> vector<16x64xf32>
    %cst_137 = arith.constant 0.000000e+00 : f32
    %558 = vector.broadcast %cst_137 : f32 to vector<16x64xf32>
    %559 = arith.maximumf %557, %558 : vector<16x64xf32>
    %560 = vector.extract_strided_slice %559 {offsets = [0, 0], sizes = [16, 16], strides = [1, 1]} : vector<16x64xf32> to vector<16x16xf32>
    %c0_138 = arith.constant 0 : index
    %c1_139 = arith.constant 1 : index
    %c0_140 = arith.constant 0 : index
    %c0_141 = arith.constant 0 : index
    %561 = vector.load %arg10[%c0_138, %c1_139, %c0_140, %c0_141] : memref<4x2x16x16xf32, #tpu.memory_space<vmem>>, vector<1x1x16x16xf32>
    %562 = vector.shape_cast %561 : vector<1x1x16x16xf32> to vector<16x16xf32>
    %563 = vector.shape_cast %560 : vector<16x16xf32> to vector<1x1x16x16xf32>
    tpu.vector_store %arg10[%c0_138, %c1_139, %c0_140, %c0_141], %563 {strides = array<i32>} : memref<4x2x16x16xf32, #tpu.memory_space<vmem>>, vector<1x1x16x16xf32>,
    %564 = vector.extract_strided_slice %559 {offsets = [0, 16], sizes = [16, 16], strides = [1, 1]} : vector<16x64xf32> to vector<16x16xf32>
    %c1_142 = arith.constant 1 : index
    %c1_143 = arith.constant 1 : index
    %c0_144 = arith.constant 0 : index
    %c0_145 = arith.constant 0 : index
    %565 = vector.load %arg10[%c1_142, %c1_143, %c0_144, %c0_145] : memref<4x2x16x16xf32, #tpu.memory_space<vmem>>, vector<1x1x16x16xf32>
    %566 = vector.shape_cast %565 : vector<1x1x16x16xf32> to vector<16x16xf32>
    %567 = vector.shape_cast %564 : vector<16x16xf32> to vector<1x1x16x16xf32>
    tpu.vector_store %arg10[%c1_142, %c1_143, %c0_144, %c0_145], %567 {strides = array<i32>} : memref<4x2x16x16xf32, #tpu.memory_space<vmem>>, vector<1x1x16x16xf32>,
    %568 = vector.extract_strided_slice %559 {offsets = [0, 32], sizes = [16, 16], strides = [1, 1]} : vector<16x64xf32> to vector<16x16xf32>
    %c2_146 = arith.constant 2 : index
    %c1_147 = arith.constant 1 : index
    %c0_148 = arith.constant 0 : index
    %c0_149 = arith.constant 0 : index
    %569 = vector.load %arg10[%c2_146, %c1_147, %c0_148, %c0_149] : memref<4x2x16x16xf32, #tpu.memory_space<vmem>>, vector<1x1x16x16xf32>
    %570 = vector.shape_cast %569 : vector<1x1x16x16xf32> to vector<16x16xf32>
    %571 = vector.shape_cast %568 : vector<16x16xf32> to vector<1x1x16x16xf32>
    tpu.vector_store %arg10[%c2_146, %c1_147, %c0_148, %c0_149], %571 {strides = array<i32>} : memref<4x2x16x16xf32, #tpu.memory_space<vmem>>, vector<1x1x16x16xf32>,
    %572 = vector.extract_strided_slice %559 {offsets = [0, 48], sizes = [16, 16], strides = [1, 1]} : vector<16x64xf32> to vector<16x16xf32>
    %c3_150 = arith.constant 3 : index
    %c1_151 = arith.constant 1 : index
    %c0_152 = arith.constant 0 : index
    %c0_153 = arith.constant 0 : index
    %573 = vector.load %arg10[%c3_150, %c1_151, %c0_152, %c0_153] : memref<4x2x16x16xf32, #tpu.memory_space<vmem>>, vector<1x1x16x16xf32>
    %574 = vector.shape_cast %573 : vector<1x1x16x16xf32> to vector<16x16xf32>
    %575 = vector.shape_cast %572 : vector<16x16xf32> to vector<1x1x16x16xf32>
    tpu.vector_store %arg10[%c3_150, %c1_151, %c0_152, %c0_153], %575 {strides = array<i32>} : memref<4x2x16x16xf32, #tpu.memory_space<vmem>>, vector<1x1x16x16xf32>,
    return
  }
  func.func @transform_0(%arg0: i32) -> (i32, i32, i32, i32) {
    %c0_i32 = arith.constant 0 : i32
    %c0_i32_0 = arith.constant 0 : i32
    %c0_i32_1 = arith.constant 0 : i32
    %c0_i32_2 = arith.constant 0 : i32
    return %arg0, %c0_i32, %c0_i32_0, %c0_i32_1 : i32, i32, i32, i32
  }
  func.func @transform_1(%arg0: i32) -> (i32, i32) {
    %c0_i32 = arith.constant 0 : i32
    %c0_i32_0 = arith.constant 0 : i32
    %c0_i32_1 = arith.constant 0 : i32
    return %c0_i32, %c0_i32_0 : i32, i32
  }
  func.func @transform_2(%arg0: i32) -> (i32, i32) {
    %c0_i32 = arith.constant 0 : i32
    %c0_i32_0 = arith.constant 0 : i32
    %c0_i32_1 = arith.constant 0 : i32
    return %c0_i32, %c0_i32_0 : i32, i32
  }
  func.func @transform_3(%arg0: i32) -> i32 {
    %c0_i32 = arith.constant 0 : i32
    %c0_i32_0 = arith.constant 0 : i32
    return %c0_i32 : i32
  }
  func.func @transform_4(%arg0: i32) -> i32 {
    %c0_i32 = arith.constant 0 : i32
    %c0_i32_0 = arith.constant 0 : i32
    return %c0_i32 : i32
  }
  func.func @transform_5(%arg0: i32) -> i32 {
    %c0_i32 = arith.constant 0 : i32
    %c0_i32_0 = arith.constant 0 : i32
    return %c0_i32 : i32
  }
  func.func @transform_6(%arg0: i32) -> i32 {
    %c0_i32 = arith.constant 0 : i32
    %c0_i32_0 = arith.constant 0 : i32
    return %c0_i32 : i32
  }
  func.func @transform_7(%arg0: i32) -> i32 {
    %c0_i32 = arith.constant 0 : i32
    %c0_i32_0 = arith.constant 0 : i32
    return %c0_i32 : i32
  }
  func.func @transform_8(%arg0: i32) -> i32 {
    %c0_i32 = arith.constant 0 : i32
    %c0_i32_0 = arith.constant 0 : i32
    return %c0_i32 : i32
  }
  func.func @transform_9(%arg0: i32) -> (i32, i32, i32, i32) {
    %c0_i32 = arith.constant 0 : i32
    %c0_i32_0 = arith.constant 0 : i32
    %c0_i32_1 = arith.constant 0 : i32
    %c0_i32_2 = arith.constant 0 : i32
    return %arg0, %c0_i32, %c0_i32_0, %c0_i32_1 : i32, i32, i32, i32
  }
}

module attributes {stable_mosaic.version = 11 : i64} {
  func.func @mlp_kernel(%arg0: i32, %arg1: memref<4x512xf32, #tpu.memory_space<vmem>>, %arg2: memref<512x40xf32, #tpu.memory_space<vmem>>, %arg3: memref<1x40xf32, #tpu.memory_space<vmem>>, %arg4: memref<40x20xf32, #tpu.memory_space<vmem>>, %arg5: memref<1x20xf32, #tpu.memory_space<vmem>>, %arg6: memref<4x20xf32, #tpu.memory_space<vmem>>) attributes {dimension_semantics = [#tpu.dimension_semantics<parallel>], iteration_bounds = array<i64: 1>, scalar_prefetch = 0 : i64, scratch_operands = 0 : i64, tpu.core_type = #tpu.core_type<tc>, window_params = [{transform_indices = @transform_0, window_bounds = array<i64: 4, 512>}, {pipeline_mode = #tpu.pipeline_mode<synchronous>, transform_indices = @transform_1, window_bounds = array<i64: 512, 40>}, {pipeline_mode = #tpu.pipeline_mode<synchronous>, transform_indices = @transform_2, window_bounds = array<i64: 1, 40>}, {pipeline_mode = #tpu.pipeline_mode<synchronous>, transform_indices = @transform_3, window_bounds = array<i64: 40, 20>}, {pipeline_mode = #tpu.pipeline_mode<synchronous>, transform_indices = @transform_4, window_bounds = array<i64: 1, 20>}, {transform_indices = @transform_5, window_bounds = array<i64: 4, 20>}]} {
    %c0 = arith.constant 0 : index
    %c0_0 = arith.constant 0 : index
    %0 = vector.load %arg1[%c0, %c0_0] : memref<4x512xf32, #tpu.memory_space<vmem>>, vector<4x512xf32>
    %c0_1 = arith.constant 0 : index
    %c0_2 = arith.constant 0 : index
    %1 = vector.load %arg2[%c0_1, %c0_2] : memref<512x40xf32, #tpu.memory_space<vmem>>, vector<512x40xf32>
    %cst = arith.constant dense<0.000000e+00> : vector<4x40xf32>
    %2 = tpu.matmul %0, %1, %cst {dimension_numbers = #tpu.dot_dimension_numbers<[1], [0], [0], [1], [0, 0, 1, 1], [], []>} : vector<4x512xf32>, vector<512x40xf32>, vector<4x40xf32> -> vector<4x40xf32>
    %c0_3 = arith.constant 0 : index
    %c0_4 = arith.constant 0 : index
    %3 = vector.load %arg3[%c0_3, %c0_4] : memref<1x40xf32, #tpu.memory_space<vmem>>, vector<1x40xf32>
    %4 = vector.broadcast %3 : vector<1x40xf32> to vector<4x40xf32>
    %5 = arith.addf %2, %4 : vector<4x40xf32>
    %cst_5 = arith.constant 0.000000e+00 : f32
    %6 = vector.broadcast %cst_5 : f32 to vector<4x40xf32>
    %7 = arith.maximumf %5, %6 : vector<4x40xf32>
    %c0_6 = arith.constant 0 : index
    %c0_7 = arith.constant 0 : index
    %8 = vector.load %arg4[%c0_6, %c0_7] : memref<40x20xf32, #tpu.memory_space<vmem>>, vector<40x20xf32>
    %cst_8 = arith.constant dense<0.000000e+00> : vector<4x20xf32>
    %9 = tpu.matmul %7, %8, %cst_8 {dimension_numbers = #tpu.dot_dimension_numbers<[1], [0], [0], [1], [0, 0, 1, 1], [], []>} : vector<4x40xf32>, vector<40x20xf32>, vector<4x20xf32> -> vector<4x20xf32>
    %c0_9 = arith.constant 0 : index
    %c0_10 = arith.constant 0 : index
    %10 = vector.load %arg5[%c0_9, %c0_10] : memref<1x20xf32, #tpu.memory_space<vmem>>, vector<1x20xf32>
    %11 = vector.broadcast %10 : vector<1x20xf32> to vector<4x20xf32>
    %12 = arith.addf %9, %11 : vector<4x20xf32>
    %cst_11 = arith.constant 0.000000e+00 : f32
    %13 = vector.broadcast %cst_11 : f32 to vector<4x20xf32>
    %14 = arith.cmpf ogt, %12, %13 : vector<4x20xf32>
    %cst_12 = arith.constant 0.00999999977 : f32
    %15 = vector.broadcast %cst_12 : f32 to vector<4x20xf32>
    %16 = arith.mulf %15, %12 : vector<4x20xf32>
    %17 = arith.select %14, %12, %16 : vector<4x20xi1>, vector<4x20xf32>
    %c0_13 = arith.constant 0 : index
    %c0_14 = arith.constant 0 : index
    %18 = vector.load %arg6[%c0_13, %c0_14] : memref<4x20xf32, #tpu.memory_space<vmem>>, vector<4x20xf32>
    tpu.vector_store %arg6[%c0_13, %c0_14], %17 {strides = array<i32>} : memref<4x20xf32, #tpu.memory_space<vmem>>, vector<4x20xf32>,
    return
  }
  func.func @transform_0(%arg0: i32) -> (i32, i32) {
    %c0_i32 = arith.constant 0 : i32
    %c0_i32_0 = arith.constant 0 : i32
    return %arg0, %c0_i32 : i32, i32
  }
  func.func @transform_1(%arg0: i32) -> (i32, i32) {
    %c0_i32 = arith.constant 0 : i32
    %c0_i32_0 = arith.constant 0 : i32
    %c0_i32_1 = arith.constant 0 : i32
    return %c0_i32, %c0_i32_0 : i32, i32
  }
  func.func @transform_2(%arg0: i32) -> (i32, i32) {
    %c0_i32 = arith.constant 0 : i32
    %c0_i32_0 = arith.constant 0 : i32
    %c0_i32_1 = arith.constant 0 : i32
    return %c0_i32, %c0_i32_0 : i32, i32
  }
  func.func @transform_3(%arg0: i32) -> (i32, i32) {
    %c0_i32 = arith.constant 0 : i32
    %c0_i32_0 = arith.constant 0 : i32
    %c0_i32_1 = arith.constant 0 : i32
    return %c0_i32, %c0_i32_0 : i32, i32
  }
  func.func @transform_4(%arg0: i32) -> (i32, i32) {
    %c0_i32 = arith.constant 0 : i32
    %c0_i32_0 = arith.constant 0 : i32
    %c0_i32_1 = arith.constant 0 : i32
    return %c0_i32, %c0_i32_0 : i32, i32
  }
  func.func @transform_5(%arg0: i32) -> (i32, i32) {
    %c0_i32 = arith.constant 0 : i32
    %c0_i32_0 = arith.constant 0 : i32
    return %arg0, %c0_i32 : i32, i32
  }
}

</mosaic_0001>

<bundles_post_ra>
// kernel: minmaxnet_forward.3
= control target key start
LH: loop header
LB: loop body
LE: loop exit
PB: predicated region body
PF: predicated region fallthrough
CT: control target
= control target key end

     0   :  { %vm504_vm0 = vmmov 0   ;;  %vm252_vm1 = vcmask 326656   ;;  %vm329_vm3 = vcmask 158720   ;;  %s757_s1 = inlined_call_operand.vmem [shape: f32[512,40], index: 1, kind: input, shape index: {}]   ;;  %s758_s0 = inlined_call_operand.vmem [shape: f32[4,512], index: 0, kind: input, shape index: {}]   ;;  %s759_s3 = inlined_call_operand.vmem [shape: f32[40,20], index: 3, kind: input, shape index: {}]   ;;  %s760_s2 = inlined_call_operand.vmem [shape: f32[1,40], index: 2, kind: input, shape index: {}]   ;;  %s761_s4 = inlined_call_operand.vmem [shape: f32[1,20], index: 4, kind: input, shape index: {}]   ;;  %s762_s5 = inlined_call_operand.vmem [shape: f32[4,20], index: 5, kind: output, shape index: {}]  }
   0x1   :  { %v38_v0 = vld [vmem:[%s757_s1 + $0x80] sm:$0xff]  ;;  %v39_v1 = vld [vmem:[%s757_s1 + $0x88] sm:$0xff]  ;;  %v40_v11 = vld [vmem:[%s757_s1 + $0x90] sm:$0xff] }
   0x2   :  { %v22_v2 = vld [vmem:[%s757_s1] sm:$0xff]  ;;  %v427_v3 = vpack.c.bf16 %v39_v1, %v38_v0  ;;  %v23_v4 = vld [vmem:[%s757_s1 + $0x8] sm:$0xff]  ;;  %v41_v13 = vld [vmem:[%s757_s1 + $0x98] sm:$0xff] }
   0x3   :  { %v70_v5 = vld [vmem:[%s757_s1 + $0x180] sm:$0xff]  ;;  %v71_v6 = vld [vmem:[%s757_s1 + $0x188] sm:$0xff]  ;;  %v429_v7 = vpack.c.bf16 %v23_v4, %v22_v2  ;;  %v24_v14 = vld [vmem:[%s757_s1 + $0x10] sm:$0xff]  ;;  %v431_v16 = vpack.c.bf16 %v41_v13, %v40_v11 }
   0x4   :  { %v459_v8 = vpack.c.bf16 %v71_v6, %v70_v5  ;;  %v54_v9 = vld [vmem:[%s757_s1 + $0x100] sm:$0xff]  ;;  %v55_v10 = vld [vmem:[%s757_s1 + $0x108] sm:$0xff]  ;;  %428 = vmatprep.subr.bf16.mxu0 %v427_v3  ;;  %v25_v15 = vld [vmem:[%s757_s1 + $0x18] sm:$0xff] }
   0x5   :  { %v461_v12 = vpack.c.bf16 %v55_v10, %v54_v9  ;;  %430 = vmatpush3.bf16.msra.mxu0 %v429_v7  ;;  %v433_v17 = vpack.c.bf16 %v25_v15, %v24_v14  ;;  %v72_v18 = vld [vmem:[%s757_s1 + $0x190] sm:$0xff]  ;;  %v73_v19 = vld [vmem:[%s757_s1 + $0x198] sm:$0xff]  ;;  %v42_v23 = vld [vmem:[%s757_s1 + $0xa0] sm:$0xff] }
   0x6   :  { %460 = vmatprep.subr.bf16.mxu1 %v459_v8  ;;  %v56_v20 = vld [vmem:[%s757_s1 + $0x110] sm:$0xff]  ;;  %v463_v21 = vpack.c.bf16 %v73_v19, %v72_v18  ;;  %v57_v22 = vld [vmem:[%s757_s1 + $0x118] sm:$0xff]  ;;  %v43_v24 = vld [vmem:[%s757_s1 + $0xa8] sm:$0xff]  ;;  %432 = vmatprep.subr.bf16.mxu0 %v431_v16 }
   0x7   :  { %462 = vmatpush3.bf16.msra.mxu1 %v461_v12  ;;  %v465_v25 = vpack.c.bf16 %v57_v22, %v56_v20  ;;  %v435_v26 = vpack.c.bf16 %v43_v24, %v42_v23  ;;  %v26_v27 = vld [vmem:[%s757_s1 + $0x20] sm:$0xff]  ;;  %v27_v28 = vld [vmem:[%s757_s1 + $0x28] sm:$0xff]  ;;  %v44_v35 = vld [vmem:[%s757_s1 + $0xb0] sm:$0xff] }
   0x8   :  { %v74_v29 = vld [vmem:[%s757_s1 + $0x1a0] sm:$0xff]  ;;  %464 = vmatprep.subr.bf16.mxu1 %v463_v21  ;;  %v75_v30 = vld [vmem:[%s757_s1 + $0x1a8] sm:$0xff]  ;;  %v437_v33 = vpack.c.bf16 %v27_v28, %v26_v27  ;;  %v45_v36 = vld [vmem:[%s757_s1 + $0xb8] sm:$0xff] }
   0x9   :  { %v58_v31 = vld [vmem:[%s757_s1 + $0x120] sm:$0xff]  ;;  %v59_v32 = vld [vmem:[%s757_s1 + $0x128] sm:$0xff]  ;;  %434 = vmatpush3.bf16.msra.mxu0 %v433_v17  ;;  %v467_v34 = vpack.c.bf16 %v75_v30, %v74_v29  ;;  %v28_v37 = vld [vmem:[%s757_s1 + $0x30] sm:$0xff]  ;;  %v439_v39 = vpack.c.bf16 %v45_v36, %v44_v35 }
   0xa   :  { %436 = vmatprep.subr.bf16.mxu0 %v435_v26  ;;  %v469_v38 = vpack.c.bf16 %v59_v32, %v58_v31  ;;  %v29_v40 = vld [vmem:[%s757_s1 + $0x38] sm:$0xff]  ;;  %v76_v41 = vld [vmem:[%s757_s1 + $0x1b0] sm:$0xff]  ;;  %v46_v46 = vld [vmem:[%s757_s1 + $0xc0] sm:$0xff] }
   0xb   :  { %466 = vmatpush3.bf16.msra.mxu1 %v465_v25  ;;  %v77_v42 = vld [vmem:[%s757_s1 + $0x1b8] sm:$0xff]  ;;  %v60_v44 = vld [vmem:[%s757_s1 + $0x130] sm:$0xff]  ;;  %v47_v47 = vld [vmem:[%s757_s1 + $0xc8] sm:$0xff]  ;;  %v441_v48 = vpack.c.bf16 %v29_v40, %v28_v37 }
   0xc   :  { %468 = vmatprep.subr.bf16.mxu1 %v467_v34  ;;  %v471_v43 = vpack.c.bf16 %v77_v42, %v76_v41  ;;  %v61_v45 = vld [vmem:[%s757_s1 + $0x138] sm:$0xff]  ;;  %v78_v49 = vld [vmem:[%s757_s1 + $0x1c0] sm:$0xff]  ;;  %v79_v50 = vld [vmem:[%s757_s1 + $0x1c8] sm:$0xff]  ;;  %v443_v52 = vpack.c.bf16 %v47_v47, %v46_v46 }
   0xd   :  { %438 = vmatpush3.bf16.msra.mxu0 %v437_v33  ;;  %v473_v51 = vpack.c.bf16 %v61_v45, %v60_v44  ;;  %v30_v53 = vld [vmem:[%s757_s1 + $0x40] sm:$0xff]  ;;  %v31_v54 = vld [vmem:[%s757_s1 + $0x48] sm:$0xff]  ;;  %v475_v56 = vpack.c.bf16 %v79_v50, %v78_v49  ;;  %v48_v58 = vld [vmem:[%s757_s1 + $0xd0] sm:$0xff] }
   0xe   :  { %440 = vmatprep.subr.bf16.mxu0 %v439_v39  ;;  %v62_v55 = vld [vmem:[%s757_s1 + $0x140] sm:$0xff]  ;;  %v63_v57 = vld [vmem:[%s757_s1 + $0x148] sm:$0xff]  ;;  %v49_v59 = vld [vmem:[%s757_s1 + $0xd8] sm:$0xff]  ;;  %v445_v62 = vpack.c.bf16 %v31_v54, %v30_v53  ;;  %v502_v39 = vmov 0.0|0.0  }
   0xf   :  { %470 = vmatpush3.bf16.msra.mxu1 %v469_v38  ;;  %v80_v60 = vld [vmem:[%s757_s1 + $0x1d0] sm:$0xff]  ;;  %v81_v61 = vld [vmem:[%s757_s1 + $0x1d8] sm:$0xff]  ;;  %v477_v63 = vpack.c.bf16 %v63_v57, %v62_v55  ;;  %v447_v0 = vpack.c.bf16 %v49_v59, %v48_v58  ;;  %v50_v6 = vld [vmem:[%s757_s1 + $0xe0] sm:$0xff] }
  0x10   :  { %472 = vmatprep.subr.bf16.mxu1 %v471_v43  ;;  %v32_v1 = vld [vmem:[%s757_s1 + $0x50] sm:$0xff]  ;;  %v33_v2 = vld [vmem:[%s757_s1 + $0x58] sm:$0xff]  ;;  %v479_v4 = vpack.c.bf16 %v81_v61, %v80_v60  ;;  %v51_v7 = vld [vmem:[%s757_s1 + $0xe8] sm:$0xff]  ;;  %v503_v43 = vmov 0.0  }
  0x11   :  { %442 = vmatpush3.bf16.msra.mxu0 %v441_v48  ;;  %v64_v3 = vld [vmem:[%s757_s1 + $0x150] sm:$0xff]  ;;  %v65_v5 = vld [vmem:[%s757_s1 + $0x158] sm:$0xff]  ;;  %v82_v8 = vld [vmem:[%s757_s1 + $0x1e0] sm:$0xff]  ;;  %v449_v10 = vpack.c.bf16 %v33_v2, %v32_v1  ;;  %v451_v14 = vpack.c.bf16 %v51_v7, %v50_v6 }
  0x12   :  { %444 = vmatprep.subr.bf16.mxu0 %v443_v52  ;;  %v83_v9 = vld [vmem:[%s757_s1 + $0x1e8] sm:$0xff]  ;;  %v34_v11 = vld [vmem:[%s757_s1 + $0x60] sm:$0xff]  ;;  %v481_v13 = vpack.c.bf16 %v65_v5, %v64_v3  ;;  %v52_v20 = vld [vmem:[%s757_s1 + $0xf0] sm:$0xff] }
  0x13   :  { %474 = vmatpush3.bf16.msra.mxu1 %v473_v51  ;;  %v35_v12 = vld [vmem:[%s757_s1 + $0x68] sm:$0xff]  ;;  %v66_v15 = vld [vmem:[%s757_s1 + $0x160] sm:$0xff]  ;;  %v483_v18 = vpack.c.bf16 %v83_v9, %v82_v8  ;;  %v53_v21 = vld [vmem:[%s757_s1 + $0xf8] sm:$0xff] }
  0x14   :  { %476 = vmatprep.subr.bf16.mxu1 %v475_v56  ;;  %v20_v16 = vld [vmem:[%s758_s0] sm:$0xff]  ;;  %v21_v17 = vld [vmem:[%s758_s0 + $0x8] sm:$0xff]  ;;  %v84_v24 = vld [vmem:[%s757_s1 + $0x1f0] sm:$0xff]  ;;  %v453_v26 = vpack.c.bf16 %v35_v12, %v34_v11  ;;  %v455_v28 = vpack.c.bf16 %v53_v21, %v52_v20 }
  0x15   :  { %446 = vmatpush3.bf16.msra.mxu0 %v445_v62  ;;  %v67_v19 = vld [vmem:[%s757_s1 + $0x168] sm:$0xff]  ;;  %v95_v22 = vcombine.high %v20_v16, %v20_v16  ;;  %v96_v23 = vcombine.high %v21_v17, %v21_v17  ;;  %v85_v25 = vld [vmem:[%s757_s1 + $0x1f8] sm:$0xff]  ;;  %v36_v29 = vld [vmem:[%s757_s1 + $0x70] sm:$0xff] }
  0x16   :  { %448 = vmatprep.subr.bf16.mxu0 %v447_v0  ;;  %v485_v27 = vpack.c.bf16 %v67_v19, %v66_v15  ;;  %v37_v30 = vld [vmem:[%s757_s1 + $0x78] sm:$0xff]  ;;  %v487_v31 = vpack.c.bf16 %v85_v25, %v84_v24  ;;  %v68_v32 = vld [vmem:[%s757_s1 + $0x170] sm:$0xff]  ;;  %v240_v36 = vld [vmem:[%s759_s3] sm:$0xff] }
  0x17   :  { %478 = vmatpush3.bf16.msra.mxu1 %v477_v63  ;;  %163 = vmatprep.mubr.f32.mxu0 %v95_v22  ;;  %v69_v33 = vld [vmem:[%s757_s1 + $0x178] sm:$0xff]  ;;  %v457_v34 = vpack.c.bf16 %v37_v30, %v36_v29  ;;  %v241_v37 = vld [vmem:[%s759_s3 + $0x8] sm:$0xff]  ;;  %v242_v40 = vld [vmem:[%s759_s3 + $0x10] sm:$0xff] }
  0x18   :  { %480 = vmatprep.subr.bf16.mxu1 %v479_v4  ;;  %233 = vmatprep.mubr.f32.mxu1 %v96_v23  ;;  %v489_v35 = vpack.c.bf16 %v69_v33, %v68_v32  ;;  %v492_v38 = vpack.c.bf16 %v241_v37, %v240_v36  ;;  %v243_v41 = vld [vmem:[%s759_s3 + $0x18] sm:$0xff]  ;;  %v244_v44 = vld [vmem:[%s759_s3 + $0x20] sm:$0xff] }
  0x19   :  { %450 = vmatpush3.bf16.msra.mxu0 %v449_v10  ;;  %v495_v42 = vpack.c.bf16 %v243_v41, %v242_v40  ;;  %v335_v46 = vld [vmem:[%s760_s2] ss:$0 sm:$0xff] }
  0x1a   :  { %452 = vmatprep.subr.bf16.mxu0 %v451_v14  ;;  %v336_v55 = vld [vmem:[%s761_s4] ss:$0 sm:$0xff] }
  0x1b   :  { %482 = vmatpush3.bf16.msra.mxu1 %v481_v13 }
  0x1c   :  { %484 = vmatprep.subr.bf16.mxu1 %v483_v18 }
  0x1d   :  { %454 = vmatpush3.bf16.msra.mxu0 %v453_v26 }
  0x1e   :  { %456 = vmatprep.subr.bf16.mxu0 %v455_v28 }
  0x1f   :  { %486 = vmatpush3.bf16.msra.mxu1 %v485_v27 }
  0x20   :  { %488 = vmatprep.subr.bf16.mxu1 %v487_v31 }
  0x21   :  { %458 = vmatpush3.bf16.msra.mxu0 %v457_v34 }
  0x22   :  { %491 = vmatprep.subr.bf16.mxu0 %v502_v39 }
  0x23   :  { %490 = vmatpush3.bf16.msra.mxu1 %v489_v35 }
  0x24   :  { %164 = vmatmul.mubr.f32.vlgmr.msra.gmra.mrb[0].mxu0 %v20_v16 }
  0x25   :  { %493 = vmatpush3.bf16.msra.mxu0 %v492_v38  ;;  %424 = vmatprep.mubr.msk.f32.mxu0 %vm504_vm0, %v503_v43 }
  0x26   :  { %234 = vmatmul.mubr.f32.vlgmr.msra.gmra.mrb[0].mxu1 %v21_v17  ;;  %494 = vmatprep.subr.bf16.mxu0 %v502_v39 }
  0x29   :  { %496 = vmatpush3.bf16.msra.mxu0 %v495_v42 }
  0x2a   :  { %422 = vmatprep.subr.mxu0 %v503_v43 }
  0x2d   :  { %423 = vmatpush3.msra.mxu0 %v244_v44 }
  0xf7   :  { %v370_v45 = vpop.f32.mrb[0].mxu0 }
  0xf8   :  { %v371_v47 = vpop.f32.mrb[1].mxu0 }
  0xf9   :  { %v405_v48 = vpop.f32.mrb[0].mxu1  ;;  %v372_v49 = vadd.f32 %v371_v47, %v370_v45 }
  0xfa   :  { %v406_v50 = vpop.f32.mrb[1].mxu1 }
  0xfb   :  { %v407_v51 = vadd.f32 %v406_v50, %v405_v48  ;;  %v166_v52 = vadd.f32 %v372_v49, %v335_v46 }
  0xfd   :  { %v236_v53 = vadd.f32 %v407_v51, %v166_v52 }
  0xff   :  { %v239_v54 = vmax.f32 %v236_v53, 0.0 }
 0x101   :  { %425 = vmatmul.mubr.msk.f32.vlgmr.msra.gmra.mrb[2].mxu0 %vm252_vm1, %v239_v54 }
 0x1d4   :  { %v322_v56 = vpop.f32.mrb[2].mxu0 }
 0x1d5   :  { %v323_v57 = vadd.f32 %v336_v55, %v322_v56  ;;  %v426_v58 = vpop.f32.mrb[3].mxu0 }
 0x1d7   :  { %vm326_vm2 = vcmp.gt.f32.partialorder %v323_v57, 0.0  ;;  %v327_v59 = vmul.f32 0.01, %v323_v57 }
 0x1d9   :  { %v328_v60 = vsel %vm326_vm2, %v323_v57, %v327_v59 }
 0x1da   :  { %330 = vst.msk [vmem:[%s762_s5] sm:$0xf] %vm329_vm3, %v328_v60 }

// kernel: minmaxnet_forward.2
= control target key start
LH: loop header
LB: loop body
LE: loop exit
PB: predicated region body
PF: predicated region fallthrough
CT: control target
= control target key end

     0   :  { %s5082_s0 = inlined_call_operand.vmem [shape: f32[1,1,32,128], index: 0, kind: input, shape index: {}]   ;;  %s5083_s1 = inlined_call_operand.vmem [shape: f32[16,32], index: 1, kind: input, shape index: {}]   ;;  %s5084_s2 = inlined_call_operand.vmem [shape: f32[128,64], index: 2, kind: input, shape index: {}]   ;;  %s5085_s3 = inlined_call_operand.vmem [shape: f32[9], index: 3, kind: input, shape index: {}]   ;;  %s5086_s4 = inlined_call_operand.<no memory space> [shape: f32[1], index: 4, kind: input, shape index: {}]   ;;  %s5087_s5 = inlined_call_operand.vmem [shape: f32[9], index: 5, kind: input, shape index: {}]   ;;  %s5088_s6 = inlined_call_operand.<no memory space> [shape: f32[1], index: 6, kind: input, shape index: {}]   ;;  %s5089_s7 = inlined_call_operand.vmem [shape: f32[72], index: 7, kind: input, shape index: {}]   ;;  %s5090_s8 = inlined_call_operand.vmem [shape: f32[2], index: 8, kind: input, shape index: {}]   ;;  %s5091_s9 = inlined_call_operand.vmem [shape: f32[4,2,16,16], index: 9, kind: output, shape index: {}]  }
   0x1   :  { %5181 = sst [smem:[#allocation113_spill]] %s5083_s1 }
   0x2   :  { %5182 = sst [smem:[#allocation114_spill]] %s5084_s2 }
   0x3   :  { %5183 = sst [smem:[#allocation115_spill]] %s5091_s9 }
   0x4   :  { %16 = vsyncpa [#allocation5], 0 }
   0x5   :  { %17 = vsyncpa [#allocation7], 0  ;;  %s43_s11 = sshll.u32 %s5087_s5, 4  ;;  %s44_s11 = int_to_ptr.vmem [resolvable:$true] %s43_s11 }
   0x6   :  { %18 = vsyncpa [#allocation10], 0  ;;  %s31_s14 = sshll.u32 %s5085_s3, 4  ;;  %s2349_s15 = scalar_lea.vmem %s44_s11, 16  ;;  %s32_s14 = int_to_ptr.vmem [resolvable:$true] %s31_s14 }
   0x7   :  { %p2350_p0 = scmp.ne.s32.totalorder %s44_s11, %s2349_s15  ;;  %p2354_p1 = scmp.lt.s32.totalorder %s44_s11, %s44_s11 }
   0x8   :  { %p2355_p2 = scmp.lt.s32.totalorder %s2349_s15, %s2349_s15 }
   0xa   :  { %p2356_p3 = por %p2355_p2, %p2354_p1 }
   0xc   :  { %p2357_p4 = pnand %p2356_p3, %p2350_p0 }
   0xe   :  { %2360 = shalt.err (!%p2357_p4)
}
   0xf   :  { %s2403_s16 = smov [#allocation6]   ;;  %s2361_s17 = scalar_lea.vmem %s32_s14, 16 }
  0x10   :  { %46 = dma.vmem_to_smem %s44_s11, 16, %s2403_s16, [#allocation7]  }
  0x11   :  { %p2362_p5 = scmp.ne.s32.totalorder %s32_s14, %s2361_s17  ;;  %p2366_p6 = scmp.lt.s32.totalorder %s32_s14, %s32_s14 }
  0x12   :  { %p2367_p7 = scmp.lt.s32.totalorder %s2361_s17, %s2361_s17 }
  0x14   :  { %p2368_p8 = por %p2367_p7, %p2366_p6 }
  0x16   :  { %p2369_p9 = pnand %p2368_p8, %p2362_p5 }
  0x18   :  { %2372 = shalt.err (!%p2369_p9)
}
  0x19   :  { %s2404_s5 = smov [#allocation4]   ;;  %s55_s19 = sshll.u32 %s5089_s7, 4  ;;  %s56_s19 = int_to_ptr.vmem [resolvable:$true] %s55_s19 }
  0x1a   :  { %34 = dma.vmem_to_smem %s32_s14, 16, %s2404_s5, [#allocation5]  }
  0x1b   :  { %s65_s22 = sshll.u32 %s5090_s8, 4  ;;  %s2373_s23 = scalar_lea.vmem %s56_s19, 16  ;;  %s66_s22 = int_to_ptr.vmem [resolvable:$true] %s65_s22 }
  0x1c   :  { %p2374_p10 = scmp.ne.s32.totalorder %s56_s19, %s2373_s23  ;;  %p2378_p11 = scmp.lt.s32.totalorder %s56_s19, %s56_s19 }
  0x1d   :  { %p2379_p12 = scmp.lt.s32.totalorder %s2373_s23, %s2373_s23 }
  0x1f   :  { %p2380_p13 = por %p2379_p12, %p2378_p11 }
  0x21   :  { %p2381_p0 = pnand %p2380_p13, %p2374_p10 }
  0x23   :  { %2384 = shalt.err (!%p2381_p0)
}
  0x24   :  { %s2405_s24 = smov [#allocation8]   ;;  %s2385_s25 = scalar_lea.vmem %s66_s22, 16 }
  0x25   :  { %58 = dma.vmem_to_smem %s56_s19, 16, %s2405_s24, [#allocation7]  }
  0x26   :  { %p2386_p1 = scmp.ne.s32.totalorder %s66_s22, %s2385_s25  ;;  %p2390_p2 = scmp.lt.s32.totalorder %s66_s22, %s66_s22 }
  0x27   :  { %p2391_p3 = scmp.lt.s32.totalorder %s2385_s25, %s2385_s25 }
  0x29   :  { %p2392_p4 = por %p2391_p3, %p2390_p2 }
  0x2b   :  { %p2393_p5 = pnand %p2392_p4, %p2386_p1 }
  0x2d   :  { %2396 = shalt.err (!%p2393_p5)
}
  0x2e   :  { %s2406_s7 = smov [#allocation9]  }
  0x2f   :  { %68 = dma.vmem_to_smem %s66_s22, 16, %s2406_s7, [#allocation10]  }
  0x30   :  { %2397 = dma.done.wait [#allocation5], 16  }
  0x31   :  { %2398 = vsyncadd [#allocation5], 4294967280 }
  0x32   :  { %2399 = dma.done.wait [#allocation7], 32  }
  0x33   :  { %2400 = vsyncadd [#allocation7], 4294967264 }
  0x34   :  { %2401 = dma.done.wait [#allocation10], 16  }
  0x35   :  { %2402 = vsyncadd [#allocation10], 4294967280 }
  0x36   :  { %81 = sfence }
  0x37   :  { %v102_v0 = vld [vmem:[%s5082_s0 + $0x10] sm:$0xff]  ;;  %v2480_v1 = vld [vmem:[%s5082_s0] sm:$0xff]  ;;  %s5117_s29 = smov 1   ;;  %v101_v2 = vld [vmem:[%s5082_s0 + $0x8] sm:$0xff]  ;;  %s5120_s13 = smov 127   ;;  %v82_v4 = vlaneseq  ;;  %vm1554_vm6 = vcmask 261120  }
  0x38   :  { %108 = vrot.lane.b32.xlu1 %v102_v0, %s5117_s29  ;;  %104 = vrot.lane.b32.xlu0 %v2480_v1, %s5117_s29  ;;  %v2491_v3 = vld [vmem:[%s5082_s0 + $0x18] sm:$0xff]  ;;  %s2014_s0 = sld [smem:[#allocation4 + $0x1]]  ;;  %s2017_s14 = sld [smem:[#allocation4 + $0x4]]  ;;  %vm1729_vm7 = vcmask 130048  }
  0x39   :  { %v88_v5 = vand.u32 127, %v82_v4  ;;  %v2532_v26 = vshrl.u32 %v82_v4, 7  ;;  %s2020_s15 = sld [smem:[#allocation4 + $0x7]]  ;;  %s2057_s16 = sld [smem:[#allocation6 + $0x1]] }
  0x3a   :  { %s2060_s17 = sld [smem:[#allocation6 + $0x4]]  ;;  %s2063_s5 = sld [smem:[#allocation6 + $0x7]] }
  0x3b   :  { %v89_v8 = vand.u32 31, %v88_v5  ;;  %5188 = vst [vmem:[#allocation14_spill] sm:$0xff] %v2532_v26  ;;  %v2547_v38 = vadd.s32 24, %v2532_v26  ;;  %vm157_vm2 = vcmp.lt.s32.totalorder %v2532_v26, 7  ;;  %vm140_vm3 = vcmp.lt.s32.totalorder %v2532_v26, 1  ;;  %s290_s3 = sld [smem:[#allocation4]] }
  0x3c   :  { %106 = vrot.lane.b32.xlu1 %v101_v2, %s5117_s29  ;;  %110 = vrot.lane.b32.xlu0 %v2491_v3, %s5117_s29  ;;  %vm92_vm5 = vcmp.gt.s32.totalorder %v2532_v26, 0  ;;  %s2016_s18 = sld [smem:[#allocation4 + $0x3]]  ;;  %s2019_s19 = sld [smem:[#allocation4 + $0x6]] }
  0x3d   :  { %vm2504_vm0 = vcmp.gt.s32.totalorder %v89_v8, 0  ;;  %vm2508_vm1 = vcmp.lt.s32.totalorder %v89_v8, 31  ;;  %5189 = vst [vmem:[#allocation15_spill] sm:$0xff] %v2547_v38  ;;  %vm99_vm4 = vcmp.lt.s32.totalorder %v2547_v38, 31  ;;  %s2015_s20 = sld [smem:[#allocation4 + $0x2]]  ;;  %s2018_s21 = sld [smem:[#allocation4 + $0x5]] }
  0x3e   :  { %s2021_s22 = sld [smem:[#allocation4 + $0x8]]  ;;  %s2674_s24 = sld [smem:[#allocation6 + $0x3]] }
  0x3f   :  { %s926_s23 = sld [smem:[#allocation6]]  ;;  %s2678_s25 = sld [smem:[#allocation6 + $0x6]] }
  0x40   :  { %118 = vrot.lane.b32.xlu1 %v2491_v3, %s5120_s13  ;;  %112 = vrot.lane.b32.xlu0 %v2480_v1, %s5120_s13  ;;  %s2698_s7 = sld [smem:[#allocation6 + $0x2]]  ;;  %s2715_s8 = sld [smem:[#allocation6 + $0x5]] }
  0x41   :  { %s2732_s26 = sld [smem:[#allocation6 + $0x8]]  ;;  %s3387_s11 = sld [smem:[#allocation8 + $0x7]] }
  0x42   :  { %s3389_s12 = sld [smem:[#allocation8 + $0x25]]  ;;  %s3521_s27 = sld [smem:[#allocation8 + $0x29]] }
  0x43   :  { %s3536_s28 = sld [smem:[#allocation8 + $0x2c]]  ;;  %s3538_s30 = sld [smem:[#allocation8 + $0xa]] }
  0x44   :  { %114 = vrot.lane.b32.xlu1 %v101_v2, %s5120_s13  ;;  %116 = vrot.lane.b32.xlu0 %v102_v0, %s5120_s13  ;;  %s3556_s10 = sld [smem:[#allocation8 + $0xd]]  ;;  %s3699_s9 = sld [smem:[#allocation8 + $0x41]] }
  0x45   :  { %s3701_s2 = sld [smem:[#allocation8 + $0x44]]  ;;  %s3721_s1 = sld [smem:[#allocation8 + $0x13]] }
  0x4a   :  { %5266 = sst [smem:[#allocation41_spill]] %s3699_s9  ;;  %s3799_s9 = sld [smem:[#allocation8 + $0x33]] }
  0x4b   :  { %5267 = sst [smem:[#allocation42_spill]] %s3701_s2  ;;  %s5278_s2 = smov 1  }
  0x4c   :  { %5273 = sst [smem:[#allocation44_spill]] %s3721_s1  ;;  %s3741_s1 = sld [smem:[#allocation8 + $0x9]] }
  0x52   :  { %5279 = sst [smem:[#allocation45_spill]] %s3741_s1  ;;  %s3765_s1 = sld [smem:[#allocation8 + $0xf]] }
  0x58   :  { %5287 = sst [smem:[#allocation52_spill]] %s3765_s1 }
  0x59   :  { %s3785_s1 = sld [smem:[#allocation8 + $0x30]] }
  0xaa   :  { %v109_v6 = vpop.permute.xlu1 %108  ;;  %v2502_v7 = vpop.permute.xlu0 %104 }
  0xab   :  { %v120_v15 = vsel %vm2504_vm0, %v2502_v7, -inf  ;;  %v122_v24 = vsel %vm2504_vm0, %v109_v6, -inf  ;;  %v172_v27 = vsel %vm2504_vm0, %v109_v6, inf  ;;  %v170_v51 = vsel %vm2504_vm0, %v2502_v7, inf }
  0xac   :  { %v124_v19 = vmax.f32 %v120_v15, %v2480_v1  ;;  %v126_v34 = vmax.f32 %v122_v24, %v102_v0  ;;  %v176_v37 = vmin.f32 %v172_v27, %v102_v0  ;;  %v174_v4 = vmin.f32 %v170_v51, %v2480_v1 }
  0xad   :  { %v349_v51 = vstv %s2020_s15  ;;  %s3403_s15 = sld [smem:[#allocation8 + $0x1c]] }
  0xae   :  { %v107_v9 = vpop.permute.xlu1 %106  ;;  %v111_v10 = vpop.permute.xlu0 %110 }
  0xaf   :  { %v123_v16 = vsel %vm2504_vm0, %v111_v10, -inf  ;;  %v121_v20 = vsel %vm2504_vm0, %v107_v9, -inf  ;;  %v171_v25 = vsel %vm2504_vm0, %v107_v9, inf  ;;  %v173_v47 = vsel %vm2504_vm0, %v111_v10, inf }
  0xb0   :  { %v127_v21 = vmax.f32 %v123_v16, %v2491_v3  ;;  %v125_v31 = vmax.f32 %v121_v20, %v101_v2  ;;  %v175_v35 = vmin.f32 %v171_v25, %v101_v2  ;;  %v177_v58 = vmin.f32 %v173_v47, %v2491_v3 }
  0xb2   :  { %v119_v12 = vpop.permute.xlu1 %118  ;;  %v2512_v14 = vpop.permute.xlu0 %112 }
  0xb3   :  { %v131_v17 = vsel %vm2508_vm1, %v119_v12, -inf  ;;  %v128_v18 = vsel %vm2508_vm1, %v2512_v14, -inf  ;;  %v181_v59 = vsel %vm2508_vm1, %v119_v12, inf  ;;  %v178_v63 = vsel %vm2508_vm1, %v2512_v14, inf }
  0xb4   :  { %v135_v28 = vmax.f32 %v127_v21, %v131_v17  ;;  %v2536_v29 = vmax.f32 %v124_v19, %v128_v18  ;;  %v185_v7 = vmin.f32 %v177_v58, %v181_v59  ;;  %v182_v10 = vmin.f32 %v174_v4, %v178_v63 }
  0xb5   :  { %v2690_v58 = vstv %s2015_s20  ;;  %v2703_v4 = vstv %s926_s23  ;;  %s3448_s20 = sld [smem:[#allocation8 + $0x3]]  ;;  %s3463_s23 = sld [smem:[#allocation8 + $0x27]] }
  0xb6   :  { %v115_v22 = vpop.permute.xlu1 %114  ;;  %v117_v23 = vpop.permute.xlu0 %116  ;;  %v156_v40 = vrot.slane %v135_v28, 1  ;;  %v153_v41 = vrot.slane %v2536_v29, 1  ;;  %v139_v48 = vrot.slane %v135_v28, 7  ;;  %v136_v49 = vrot.slane %v2536_v29, 7 }
  0xb7   :  { %v129_v30 = vsel %vm2508_vm1, %v115_v22, -inf  ;;  %v179_v32 = vsel %vm2508_vm1, %v115_v22, inf  ;;  %v130_v33 = vsel %vm2508_vm1, %v117_v23, -inf  ;;  %v180_v36 = vsel %vm2508_vm1, %v117_v23, inf }
  0xb8   :  { %v133_v39 = vmax.f32 %v125_v31, %v129_v30  ;;  %v2550_v42 = vmin.f32 %v175_v35, %v179_v32  ;;  %v134_v43 = vmax.f32 %v126_v34, %v130_v33  ;;  %v2553_v45 = vmin.f32 %v176_v37, %v180_v36 }
  0xb9   :  { %v161_v52 = vsel %vm157_vm2, %v156_v40, %v153_v41  ;;  %v144_v9 = vsel %vm140_vm3, %v139_v48, %v136_v49  ;;  %v205_v16 = vrot.slane %v185_v7, 1  ;;  %v189_v18 = vrot.slane %v185_v7, 7 }
  0xba   :  { %v137_v44 = vrot.slane %v133_v39, 7  ;;  %v138_v46 = vrot.slane %v134_v43, 7  ;;  %v155_v50 = vrot.slane %v134_v43, 1  ;;  %v187_v53 = vrot.slane %v2550_v42, 7 }
  0xbb   :  { %v188_v57 = vrot.slane %v2553_v45, 7  ;;  %v165_v62 = vsel %vm99_vm4, %v161_v52, -inf  ;;  %v154_v0 = vrot.slane %v133_v39, 1  ;;  %v204_v12 = vrot.slane %v2553_v45, 1 }
  0xbc   :  { %v143_v54 = vsel %vm140_vm3, %v136_v49, %v137_v44  ;;  %v141_v55 = vsel %vm140_vm3, %v138_v46, %v139_v48  ;;  %v142_v56 = vsel %vm140_vm3, %v137_v44, %v138_v46  ;;  %v158_v2 = vsel %vm157_vm2, %v155_v50, %v156_v40 }
  0xbd   :  { %v151_v60 = vmax.f32 %v142_v56, %v134_v43  ;;  %v152_v61 = vmax.f32 %v141_v55, %v135_v28  ;;  %v150_v5 = vmax.f32 %v143_v54, %v133_v39  ;;  %v191_v8 = vsel %vm140_vm3, %v187_v53, %v188_v57 }
  0xbe   :  { %v159_v1 = vsel %vm157_vm2, %v154_v0, %v155_v50  ;;  %v200_v15 = vmin.f32 %v191_v8, %v2553_v45  ;;  %v145_v17 = vsel %vm92_vm5, %v144_v9, -inf  ;;  %v186_v19 = vrot.slane %v182_v10, 7 }
  0xbf   :  { %v2584_v3 = vmax.f32 %v151_v60, %v158_v2  ;;  %v2586_v6 = vmax.f32 %v152_v61, %v165_v62  ;;  %v2600_v14 = vmax.f32 %v150_v5, %v159_v1  ;;  %v206_v20 = vsel %vm157_vm2, %v204_v12, %v205_v16 }
  0xc0   :  { %v149_v21 = vmax.f32 %v145_v17, %v2536_v29  ;;  %v202_v22 = vrot.slane %v182_v10, 1  ;;  %v2612_v23 = vmin.f32 %v200_v15, %v206_v20  ;;  %v160_v24 = vsel %vm157_vm2, %v153_v41, %v154_v0 }
  0xc1   :  { %5190 = vst [vmem:[#allocation16_spill] sm:$0xff] %v2584_v3  ;;  %5191 = vst [vmem:[#allocation17_spill] sm:$0xff] %v2586_v6  ;;  %222 = vrot.lane.b32.xlu0 %v2584_v3, %s5117_s29  ;;  %224 = vrot.lane.b32.xlu1 %v2586_v6, %s5117_s29  ;;  %v190_v25 = vsel %vm140_vm3, %v188_v57, %v189_v18  ;;  %v193_v27 = vsel %vm140_vm3, %v189_v18, %v186_v19  ;;  %v203_v33 = vrot.slane %v2550_v42, 1 }
  0xc2   :  { %5192 = vst [vmem:[#allocation18_spill] sm:$0xff] %v2600_v14  ;;  %5193 = vst [vmem:[#allocation19_spill] sm:$0xff] %v2612_v23  ;;  %v209_v28 = vsel %vm157_vm2, %v205_v16, %v202_v22  ;;  %v2626_v29 = vmax.f32 %v149_v21, %v160_v24  ;;  %v201_v30 = vmin.f32 %v190_v25, %v185_v7  ;;  %v194_v31 = vsel %vm92_vm5, %v193_v27, inf }
  0xc3   :  { %v192_v32 = vsel %vm140_vm3, %v186_v19, %v187_v53  ;;  %v213_v34 = vsel %vm99_vm4, %v209_v28, inf  ;;  %v198_v35 = vmin.f32 %v194_v31, %v182_v10  ;;  %v208_v39 = vsel %vm157_vm2, %v202_v22, %v203_v33 }
  0xc4   :  { %5194 = vst [vmem:[#allocation20_spill] sm:$0xff] %v2626_v29  ;;  %v199_v36 = vmin.f32 %v192_v32, %v2550_v42  ;;  %v2640_v37 = vmin.f32 %v201_v30, %v213_v34  ;;  %v207_v40 = vsel %vm157_vm2, %v203_v33, %v204_v12  ;;  %v297_v48 = vstv %s2014_s0  ;;  %s3397_s0 = sld [smem:[#allocation8 + $0x28]] }
  0xc5   :  { %230 = vrot.lane.b32.xlu0 %v2584_v3, %s5120_s13  ;;  %220 = vrot.lane.b32.xlu1 %v2600_v14, %s5117_s29  ;;  %v2650_v41 = vmin.f32 %v198_v35, %v208_v39  ;;  %v323_v49 = vstv %s2017_s14  ;;  %v933_v52 = vstv %s2057_s16  ;;  %v300_v59 = vmul.f32 %v297_v48, %v2584_v3  ;;  %s3399_s14 = sld [smem:[#allocation8 + $0x2b]]  ;;  %s3405_s16 = sld [smem:[#allocation8 + $0x1f]] }
  0xc6   :  { %5195 = vst [vmem:[#allocation21_spill] sm:$0xff] %v2640_v37  ;;  %v2652_v43 = vmin.f32 %v199_v36, %v207_v40  ;;  %v2682_v53 = vstv %s2060_s17  ;;  %v985_v54 = vstv %s2063_s5  ;;  %v2684_v55 = vstv %s290_s3  ;;  %s3408_s17 = sld [smem:[#allocation8 + $0x22]]  ;;  %s3410_s5 = sld [smem:[#allocation8 + $0x40]] }
  0xc7   :  { %5196 = vst [vmem:[#allocation22_spill] sm:$0xff] %v2650_v41  ;;  %5204 = vst [vmem:[#allocation30_spill] sm:$0xff] %v2682_v53  ;;  %v2686_v56 = vstv %s2016_s18  ;;  %v2688_v57 = vstv %s2019_s19  ;;  %v326_v60 = vmul.f32 %v323_v49, %v2584_v3  ;;  %v2694_v61 = vstv %s2018_s21  ;;  %s3417_s3 = sld [smem:[#allocation8 + $0x43]]  ;;  %s3419_s18 = sld [smem:[#allocation8 + $0x46]] }
  0xc8   :  { %5197 = vst [vmem:[#allocation23_spill] sm:$0xff] %v2652_v43  ;;  %v2696_v62 = vstv %s2021_s22  ;;  %v352_v63 = vmul.f32 %v349_v51, %v2584_v3  ;;  %v301_v0 = vmul.f32 %v297_v48, %v2586_v6  ;;  %v327_v2 = vmul.f32 %v323_v49, %v2586_v6  ;;  %s3436_s19 = sld [smem:[#allocation8]]  ;;  %s3450_s21 = sld [smem:[#allocation8 + $0x6]] }
  0xc9   :  { %858 = vrot.lane.b32.xlu0 %v2612_v23, %s5117_s29  ;;  %232 = vrot.lane.b32.xlu1 %v2586_v6, %s5120_s13  ;;  %v353_v7 = vmul.f32 %v349_v51, %v2586_v6  ;;  %v299_v8 = vmul.f32 %v297_v48, %v2600_v14  ;;  %v2710_v9 = vmul.f32 %v323_v49, %v2600_v14  ;;  %v2724_v15 = vstv %s2674_s24  ;;  %s3461_s22 = sld [smem:[#allocation8 + $0x24]]  ;;  %s3478_s24 = sld [smem:[#allocation8 + $0x2a]] }
  0xca   :  { %v2713_v10 = vmul.f32 %v349_v51, %v2600_v14  ;;  %v2721_v12 = vmul.f32 %v933_v52, %v2612_v23  ;;  %v2728_v16 = vmul.f32 %v2682_v53, %v2612_v23  ;;  %v2735_v18 = vstv %s2678_s25  ;;  %s3480_s25 = sld [smem:[#allocation8 + $0x2]] }
  0xcb   :  { %5205 = vst [vmem:[#allocation31_spill] sm:$0xff] %v2710_v9  ;;  %v2738_v19 = vmul.f32 %v985_v54, %v2612_v23  ;;  %v2741_v20 = vmul.f32 %v297_v48, %v2626_v29  ;;  %v2744_v21 = vmul.f32 %v323_v49, %v2626_v29  ;;  %v2750_v24 = vmul.f32 %v349_v51, %v2626_v29 }
  0xcc   :  { %v2753_v25 = vmul.f32 %v933_v52, %v2640_v37  ;;  %v2757_v27 = vmul.f32 %v2682_v53, %v2640_v37  ;;  %v2764_v31 = vmul.f32 %v985_v54, %v2640_v37  ;;  %v2767_v32 = vmul.f32 %v933_v52, %v2650_v41 }
  0xcd   :  { %218 = vrot.lane.b32.xlu0 %v2626_v29, %s5117_s29  ;;  %228 = vrot.lane.b32.xlu1 %v2600_v14, %s5120_s13  ;;  %v2777_v36 = vmul.f32 %v2682_v53, %v2650_v41  ;;  %v2780_v39 = vmul.f32 %v985_v54, %v2650_v41  ;;  %v2784_v48 = vmul.f32 %v933_v52, %v2652_v43  ;;  %v2790_v51 = vstv %s2698_s7  ;;  %s3488_s7 = sld [smem:[#allocation8 + $0x5]] }
  0xce   :  { %v2787_v49 = vmul.f32 %v985_v54, %v2652_v43  ;;  %v2805_v14 = vstv %s2715_s8  ;;  %v2809_v53 = vstv %s2732_s26  ;;  %s3490_s8 = sld [smem:[#allocation8 + $0x8]]  ;;  %s3519_s26 = sld [smem:[#allocation8 + $0x26]]  ;;  %v3794_v26 = vstv %s3450_s21 }
  0xcf   :  { %s3834_s21 = sld [smem:[#allocation8 + $0xb]] }
  0xd1   :  { %226 = vrot.lane.b32.xlu0 %v2626_v29, %s5120_s13  ;;  %860 = vrot.lane.b32.xlu1 %v2640_v37, %s5117_s29 }
  0xd5   :  { %854 = vrot.lane.b32.xlu0 %v2650_v41, %s5117_s29  ;;  %856 = vrot.lane.b32.xlu1 %v2652_v43, %s5117_s29 }
  0xd9   :  { %862 = vrot.lane.b32.xlu0 %v2650_v41, %s5120_s13  ;;  %868 = vrot.lane.b32.xlu1 %v2640_v37, %s5120_s13 }
  0xdd   :  { %866 = vrot.lane.b32.xlu0 %v2612_v23, %s5120_s13  ;;  %864 = vrot.lane.b32.xlu1 %v2652_v43, %s5120_s13  ;;  %v2814_v43 = vstv %s5086_s4  ;;  %s3380_s4 = sld [smem:[#allocation8 + $0x1]] }
 0x133   :  { %v2666_v42 = vpop.permute.xlu0 %222  ;;  %v2668_v44 = vpop.permute.xlu1 %224 }
 0x134   :  { %5198 = vst [vmem:[#allocation24_spill] sm:$0xff] %v2666_v42  ;;  %5199 = vst [vmem:[#allocation25_spill] sm:$0xff] %v2668_v44  ;;  %v284_v1 = vsel %vm2504_vm0, %v2666_v42, 0.0  ;;  %v285_v30 = vsel %vm2504_vm0, %v2668_v44, 0.0  ;;  %v2829_v44 = vstv %s5088_s6  ;;  %s3382_s6 = sld [smem:[#allocation8 + $0x4]] }
 0x135   :  { %v294_v28 = vmul.f32 %v2684_v55, %v284_v1  ;;  %v346_v33 = vmul.f32 %v2688_v57, %v284_v1  ;;  %v320_v23 = vmul.f32 %v2686_v56, %v284_v1  ;;  %v295_v3 = vmul.f32 %v2684_v55, %v285_v30 }
 0x136   :  { %v321_v37 = vmul.f32 %v2686_v56, %v285_v30  ;;  %v347_v1 = vmul.f32 %v2688_v57, %v285_v30 }
 0x137   :  { %v2670_v45 = vpop.permute.xlu0 %230  ;;  %v2672_v46 = vpop.permute.xlu1 %220  ;;  %v304_v52 = vadd.f32 %v300_v59, %v294_v28  ;;  %v305_v30 = vadd.f32 %v301_v0, %v295_v3 }
 0x138   :  { %5200 = vst [vmem:[#allocation26_spill] sm:$0xff] %v2670_v45  ;;  %5201 = vst [vmem:[#allocation27_spill] sm:$0xff] %v2672_v46  ;;  %v288_v22 = vsel %vm2508_vm1, %v2670_v45, 0.0  ;;  %v283_v34 = vsel %vm2504_vm0, %v2672_v46, 0.0  ;;  %v356_v46 = vadd.f32 %v352_v63, %v346_v33  ;;  %v330_v33 = vadd.f32 %v326_v60, %v320_v23 }
 0x139   :  { %v310_v40 = vmul.f32 %v2690_v58, %v288_v22  ;;  %v362_v42 = vmul.f32 %v2696_v62, %v288_v22  ;;  %v293_v54 = vmul.f32 %v2684_v55, %v283_v34  ;;  %v336_v59 = vmul.f32 %v2694_v61, %v288_v22 }
 0x13a   :  { %v331_v6 = vadd.f32 %v327_v2, %v321_v37  ;;  %v357_v9 = vadd.f32 %v353_v7, %v347_v1  ;;  %v2838_v3 = vmul.f32 %v2686_v56, %v283_v34 }
 0x13b   :  { %v2676_v47 = vpop.permute.xlu0 %858  ;;  %v2680_v50 = vpop.permute.xlu1 %232  ;;  %v303_v22 = vadd.f32 %v299_v8, %v293_v54  ;;  %v340_v0 = vadd.f32 %v336_v59, %v330_v33 }
 0x13c   :  { %5202 = vst [vmem:[#allocation28_spill] sm:$0xff] %v2676_v47  ;;  %5203 = vst [vmem:[#allocation29_spill] sm:$0xff] %v2680_v50  ;;  %v289_v28 = vsel %vm2508_vm1, %v2680_v50, 0.0  ;;  %v920_v50 = vsel %vm2504_vm0, %v2676_v47, 0.0 }
 0x13d   :  { %5208 = vst [vmem:[#allocation34_spill] sm:$0xff] %v2838_v3  ;;  %v311_v23 = vmul.f32 %v2690_v58, %v289_v28  ;;  %v363_v37 = vmul.f32 %v2696_v62, %v289_v28  ;;  %v930_v7 = vmul.f32 %v2703_v4, %v920_v50  ;;  %v956_v8 = vmul.f32 %v2724_v15, %v920_v50 }
 0x13e   :  { %v337_v33 = vmul.f32 %v2694_v61, %v289_v28 }
 0x13f   :  { %v2705_v5 = vpop.permute.xlu0 %218  ;;  %v2730_v17 = vpop.permute.xlu1 %228 }
 0x140   :  { %5206 = vst [vmem:[#allocation32_spill] sm:$0xff] %v2730_v17  ;;  %v2798_v41 = vsel %vm2508_vm1, %v2730_v17, 0.0  ;;  %v2816_v17 = vadd.f32 %v310_v40, %v304_v52  ;;  %v2831_v40 = vadd.f32 %v362_v42, %v356_v46  ;;  %v345_v52 = vmul.f32 %v2688_v57, %v283_v34 }
 0x141   :  { %v309_v63 = vmul.f32 %v2690_v58, %v2798_v41  ;;  %v282_v46 = vsel %vm2504_vm0, %v2705_v5, 0.0  ;;  %v982_v34 = vmul.f32 %v2735_v18, %v920_v50  ;;  %v361_v54 = vmul.f32 %v2696_v62, %v2798_v41 }
 0x142   :  { %v355_v59 = vadd.f32 %v2713_v10, %v345_v52  ;;  %v2863_v42 = vadd.f32 %v363_v37, %v357_v9  ;;  %v292_v47 = vmul.f32 %v2684_v55, %v282_v46  ;;  %v318_v10 = vmul.f32 %v2686_v56, %v282_v46 }
 0x143   :  { %v2773_v35 = vpop.permute.xlu0 %226  ;;  %v2800_v45 = vpop.permute.xlu1 %860  ;;  %v2848_v2 = vadd.f32 %v309_v63, %v303_v22  ;;  %v2861_v22 = vadd.f32 %v311_v23, %v305_v30  ;;  %v344_v28 = vmul.f32 %v2688_v57, %v282_v46  ;;  %v940_v9 = vadd.f32 %v2721_v12, %v930_v7 }
 0x144   :  { %v286_v50 = vsel %vm2508_vm1, %v2773_v35, 0.0  ;;  %v921_v30 = vsel %vm2504_vm0, %v2800_v45, 0.0  ;;  %v2879_v55 = vadd.f32 %v2728_v16, %v956_v8  ;;  %v992_v23 = vadd.f32 %v2738_v19, %v982_v34 }
 0x145   :  { %v5109_v52 = vrot.slane %v2848_v2, 7  ;;  %v2882_v37 = vadd.f32 %v361_v54, %v355_v59  ;;  %v2886_v56 = vadd.f32 %v337_v33, %v331_v6  ;;  %v308_v57 = vmul.f32 %v2690_v58, %v286_v50 }
 0x146   :  { %v360_v46 = vmul.f32 %v2696_v62, %v286_v50  ;;  %v5110_v16 = vrot.slane %v2863_v42, 1  ;;  %v302_v19 = vadd.f32 %v2741_v20, %v292_v47  ;;  %v983_v7 = vmul.f32 %v2735_v18, %v921_v30 }
 0x147   :  { %v2824_v29 = vpop.permute.xlu0 %854  ;;  %v2842_v60 = vpop.permute.xlu1 %856  ;;  %v328_v8 = vadd.f32 %v2744_v21, %v318_v10  ;;  %v354_v6 = vadd.f32 %v2750_v24, %v344_v28  ;;  %v334_v58 = vmul.f32 %v2694_v61, %v286_v50  ;;  %v5212_v62 = vrot.slane %v2816_v17, 7 }
 0x148   :  { %5207 = vst [vmem:[#allocation33_spill] sm:$0xff] %v2824_v29  ;;  %5209 = vst [vmem:[#allocation35_spill] sm:$0xff] %v2842_v60  ;;  %v918_v1 = vsel %vm2504_vm0, %v2824_v29, 0.0  ;;  %v2918_v24 = vadd.f32 %v308_v57, %v302_v19  ;;  %v2925_v50 = vsel %vm2504_vm0, %v2842_v60, 0.0  ;;  %v931_v28 = vmul.f32 %v2703_v4, %v921_v30 }
 0x149   :  { %v373_v34 = vsel %vm140_vm3, %v5109_v52, %v5212_v62  ;;  %v980_v59 = vmul.f32 %v2735_v18, %v918_v1  ;;  %v2920_v33 = vadd.f32 %v360_v46, %v354_v6  ;;  %v993_v62 = vadd.f32 %v2764_v31, %v983_v7 }
 0x14a   :  { %v382_v10 = vadd.f32 %v373_v34, %v340_v0  ;;  %v928_v52 = vmul.f32 %v2703_v4, %v918_v1  ;;  %v5214_v54 = vrot.slane %v2831_v40, 1  ;;  %v929_v34 = vmul.f32 %v2703_v4, %v2925_v50 }
 0x14b   :  { %v2869_v3 = vpop.permute.xlu0 %862  ;;  %v2884_v63 = vpop.permute.xlu1 %868  ;;  %v990_v7 = vadd.f32 %v2780_v39, %v980_v59  ;;  %v338_v39 = vadd.f32 %v334_v58, %v328_v8  ;;  %v941_v4 = vadd.f32 %v2753_v25, %v931_v28  ;;  %v957_v59 = vmul.f32 %v2724_v15, %v921_v30 }
 0x14c   :  { %5210 = vst [vmem:[#allocation36_spill] sm:$0xff] %v2869_v3  ;;  %5211 = vst [vmem:[#allocation37_spill] sm:$0xff] %v2884_v63  ;;  %v2911_v47 = vsel %vm2508_vm1, %v2869_v3, 0.0  ;;  %v925_v20 = vsel %vm2508_vm1, %v2884_v63, 0.0  ;;  %v388_v57 = vsel %vm157_vm2, %v5214_v54, %v5110_v16  ;;  %v938_v63 = vadd.f32 %v2767_v32, %v928_v52 }
 0x14d   :  { %v996_v19 = vmul.f32 %v2809_v53, %v2911_v47  ;;  %v999_v0 = vmul.f32 %v2809_v53, %v925_v20  ;;  %v398_v6 = vadd.f32 %v388_v57, %v382_v10  ;;  %v944_v16 = vmul.f32 %v2790_v51, %v2911_v47 }
 0x14e   :  { %v947_v60 = vmul.f32 %v2790_v51, %v925_v20  ;;  %v939_v8 = vadd.f32 %v2784_v48, %v929_v34  ;;  %v981_v25 = vmul.f32 %v2735_v18, %v2925_v50  ;;  %v384_v32 = vrot.slane %v2920_v33, 1 }
 0x14f   :  { %v2916_v21 = vpop.permute.xlu0 %866  ;;  %v2936_v46 = vpop.permute.xlu1 %864  ;;  %v2953_v10 = vadd.f32 %v2814_v43, %v398_v6  ;;  %v2963_v3 = vadd.f32 %v996_v19, %v990_v7  ;;  %v1003_v29 = vadd.f32 %v999_v0, %v993_v62  ;;  %v2976_v52 = vadd.f32 %v944_v16, %v938_v63 }
 0x150   :  { %5213 = vst [vmem:[#allocation38_spill] sm:$0xff] %v2916_v21  ;;  %5215 = vst [vmem:[#allocation39_spill] sm:$0xff] %v2936_v46  ;;  %v924_v31 = vsel %vm2508_vm1, %v2916_v21, 0.0  ;;  %v2958_v57 = vsel %vm2508_vm1, %v2936_v46, 0.0  ;;  %v368_v46 = vrot.slane %v2918_v24, 7  ;;  %v973_v58 = vmul.f32 %v2805_v14, %v925_v20 }
 0x151   :  { %v946_v12 = vmul.f32 %v2790_v51, %v924_v31  ;;  %v998_v54 = vmul.f32 %v2809_v53, %v924_v31  ;;  %590 = vrot.lane.b32.xlu0 %v2953_v10, %s5117_s29  ;;  %v945_v6 = vmul.f32 %v2790_v51, %v2958_v57  ;;  %v5216_v24 = vrot.slane %v2861_v22, 7 }
 0x152   :  { %v5217_v48 = vrot.slane %v2816_v17, 7  ;;  %v954_v63 = vmul.f32 %v2724_v15, %v918_v1  ;;  %v1023_v16 = vrot.slane %v1003_v29, 1  ;;  %v991_v20 = vadd.f32 %v2787_v49, %v981_v25 }
 0x153   :  { %v950_v21 = vadd.f32 %v946_v12, %v940_v9  ;;  %v2973_v30 = vadd.f32 %v998_v54, %v992_v23  ;;  %v951_v9 = vadd.f32 %v947_v60, %v941_v4  ;;  %v972_v12 = vmul.f32 %v2805_v14, %v924_v31 }
 0x154   :  { %v2980_v51 = vadd.f32 %v945_v6, %v939_v8  ;;  %v372_v18 = vsel %vm140_vm3, %v5217_v48, %v5216_v24  ;;  %v967_v23 = vadd.f32 %v2757_v27, %v957_v59  ;;  %v1020_v60 = vrot.slane %v2963_v3, 1 }
 0x155   :  { %v1006_v28 = vrot.slane %v950_v21, 7  ;;  %598 = vrot.lane.b32.xlu0 %v2953_v10, %s5120_s13  ;;  %v1022_v21 = vrot.slane %v2973_v30, 1  ;;  %v997_v17 = vmul.f32 %v2809_v53, %v2958_v57  ;;  %v1007_v62 = vrot.slane %v951_v9, 7 }
 0x156   :  { %v1005_v33 = vrot.slane %v2980_v51, 7  ;;  %v976_v27 = vadd.f32 %v972_v12, %v2879_v55  ;;  %v383_v1 = vadd.f32 %v372_v18, %v2886_v56  ;;  %v5218_v3 = vrot.slane %v2863_v42, 1  ;;  %v5221_v18 = vld [vmem:[#allocation34_spill] sm:$0xff] }
 0x157   :  { %v1004_v19 = vrot.slane %v2976_v52, 7  ;;  %v977_v49 = vadd.f32 %v973_v58, %v967_v23  ;;  %v1008_v56 = vsel %vm140_vm3, %v1006_v28, %v1007_v62  ;;  %v1027_v42 = vsel %vm157_vm2, %v1023_v16, %v1020_v60  ;;  %v5222_v23 = vld [vmem:[#allocation31_spill] sm:$0xff] }
 0x158   :  { %v391_v29 = vsel %vm157_vm2, %v5218_v3, %v384_v32  ;;  %v1009_v53 = vsel %vm140_vm3, %v1005_v33, %v1006_v28  ;;  %v3015_v7 = vadd.f32 %v997_v17, %v991_v20  ;;  %v1024_v34 = vsel %vm157_vm2, %v1022_v21, %v1023_v16  ;;  %v5223_v20 = vld [vmem:[#allocation25_spill] sm:$0xff]  ;;  %v5224_v17 = vld [vmem:[#allocation20_spill] sm:$0xff] }
 0x159   :  { %v395_v0 = vsel %vm99_vm4, %v391_v29, 0.0  ;;  %v1018_v55 = vadd.f32 %v1009_v53, %v976_v27  ;;  %v1019_v54 = vadd.f32 %v1008_v56, %v977_v49  ;;  %v5219_v4 = vmov %v5216_v24 }
 0x15a   :  { %v399_v31 = vadd.f32 %v395_v0, %v383_v1  ;;  %v375_v59 = vsel %vm140_vm3, %v5219_v4, %v368_v46  ;;  %v970_v6 = vmul.f32 %v2805_v14, %v2911_v47  ;;  %v335_v9 = vmul.f32 %v2694_v61, %v2798_v41  ;;  %v5230_v4 = vld [vmem:[#allocation30_spill] sm:$0xff] }
 0x15b   :  { %v1034_v25 = vadd.f32 %v1024_v34, %v1018_v55  ;;  %v376_v52 = vsel %vm92_vm5, %v375_v59, 0.0  ;;  %v964_v12 = vadd.f32 %v2777_v36, %v954_v63  ;;  %v1031_v22 = vsel %vm99_vm4, %v1027_v42, 0.0  ;;  %v5228_v55 = vld [vmem:[#allocation17_spill] sm:$0xff] }
 0x15c   :  { %v3028_v8 = vadd.f32 %v2814_v43, %v399_v31  ;;  %v380_v58 = vadd.f32 %v376_v52, %v338_v39  ;;  %v1035_v28 = vadd.f32 %v1031_v22, %v1019_v54  ;;  %v5220_v24 = vrot.slane %v2882_v37, 1  ;;  %v5227_v31 = vld [vmem:[#allocation29_spill] sm:$0xff]  ;;  %v5229_v54 = vld [vmem:[#allocation23_spill] sm:$0xff] }
 0x15d   :  { %v3040_v47 = vadd.f32 %v2829_v44, %v1034_v25  ;;  %v1011_v41 = vsel %vm140_vm3, %v1007_v62, %v1004_v19  ;;  %v1021_v61 = vrot.slane %v3015_v7, 1  ;;  %v329_v63 = vadd.f32 %v5222_v23, %v5221_v18  ;;  %v5233_v52 = vld [vmem:[#allocation27_spill] sm:$0xff] }
 0x15e   :  { %592 = vrot.lane.b32.xlu1 %v3028_v8, %s5117_s29  ;;  %v390_v48 = vsel %vm157_vm2, %v384_v32, %v5220_v24  ;;  %v1012_v39 = vsel %vm92_vm5, %v1011_v41, 0.0  ;;  %v974_v16 = vadd.f32 %v970_v6, %v964_v12  ;;  %v237_v32 = vsel %vm2504_vm0, %v5223_v20, -inf }
 0x15f   :  { %v396_v36 = vadd.f32 %v390_v48, %v380_v58  ;;  %1250 = vrot.lane.b32.xlu0 %v3040_v47, %s5117_s29  ;;  %v5225_v62 = vsel %vm2504_vm0, %v2705_v5, -inf  ;;  %v242_v1 = vsel %vm2508_vm1, %v2773_v35, -inf  ;;  %v5226_v3 = vrot.slane %v2848_v2, 7  ;;  %v5235_v48 = vld [vmem:[#allocation18_spill] sm:$0xff] }
 0x160   :  { %v238_v27 = vmax.f32 %v5225_v62, %v5224_v17  ;;  %v339_v49 = vadd.f32 %v335_v9, %v329_v63  ;;  %v3073_v0 = vadd.f32 %v2829_v44, %v1035_v28  ;;  %v1016_v5 = vadd.f32 %v1012_v39, %v974_v16  ;;  %v5240_v62 = vld [vmem:[#allocation26_spill] sm:$0xff] }
 0x161   :  { %v374_v29 = vsel %vm140_vm3, %v368_v46, %v5226_v3  ;;  %v3076_v53 = vadd.f32 %v2814_v43, %v396_v36  ;;  %v245_v35 = vsel %vm2508_vm1, %v5227_v31, -inf  ;;  %v1026_v2 = vsel %vm157_vm2, %v1020_v60, %v1021_v61  ;;  %v5237_v36 = vld [vmem:[#allocation24_spill] sm:$0xff]  ;;  %v5242_v3 = vld [vmem:[#allocation22_spill] sm:$0xff] }
 0x162   :  { %600 = vrot.lane.b32.xlu1 %v3028_v8, %s5120_s13  ;;  %v241_v46 = vmax.f32 %v237_v32, %v5228_v55  ;;  %v3084_v56 = vmax.f32 %v238_v27, %v242_v1  ;;  %v955_v42 = vmul.f32 %v2724_v15, %v2925_v50  ;;  %v381_v7 = vadd.f32 %v374_v29, %v339_v49  ;;  %v5239_v32 = vld [vmem:[#allocation37_spill] sm:$0xff]  ;;  %v5243_v49 = vld [vmem:[#allocation16_spill] sm:$0xff] }
 0x163   :  { %586 = vrot.lane.b32.xlu0 %v3076_v53, %s5117_s29  ;;  %v961_v59 = vmul.f32 %v5230_v4, %v5229_v54  ;;  %v971_v6 = vmul.f32 %v2805_v14, %v2958_v57  ;;  %v1032_v60 = vadd.f32 %v1026_v2, %v1016_v5  ;;  %v5231_v25 = vrot.slane %v2831_v40, 1  ;;  %v5234_v57 = vld [vmem:[#allocation32_spill] sm:$0xff]  ;;  %v5241_v1 = vld [vmem:[#allocation21_spill] sm:$0xff] }
 0x164   :  { %v3090_v34 = vmax.f32 %v241_v46, %v245_v35  ;;  %v5232_v15 = vmov %v5220_v24  ;;  %v235_v9 = vsel %vm2504_vm0, %v5233_v52, -inf  ;;  %v250_v12 = vrot.slane %v3084_v56, 7  ;;  %v5244_v2 = vld [vmem:[#allocation28_spill] sm:$0xff] }
 0x165   :  { %v389_v50 = vsel %vm157_vm2, %v5232_v15, %v5231_v25  ;;  %v965_v22 = vadd.f32 %v961_v59, %v955_v42  ;;  %v1010_v40 = vsel %vm140_vm3, %v1004_v19, %v1005_v33  ;;  %v243_v58 = vsel %vm2508_vm1, %v5234_v57, -inf  ;;  %v5236_v33 = vld [vmem:[#allocation33_spill] sm:$0xff]  ;;  %v5247_v15 = vld [vmem:[#allocation19_spill] sm:$0xff] }
 0x166   :  { %1252 = vrot.lane.b32.xlu1 %v3073_v0, %s5117_s29  ;;  %v397_v14 = vadd.f32 %v389_v50, %v381_v7  ;;  %v253_v37 = vrot.slane %v3090_v34, 7  ;;  %v3121_v24 = vadd.f32 %v2829_v44, %v1032_v60  ;;  %v239_v41 = vmax.f32 %v235_v9, %v5235_v48  ;;  %v5245_v60 = vld [vmem:[#allocation35_spill] sm:$0xff] }
 0x167   :  { %594 = vrot.lane.b32.xlu0 %v3076_v53, %s5120_s13  ;;  %v975_v28 = vadd.f32 %v971_v6, %v965_v22  ;;  %v873_v51 = vsel %vm2504_vm0, %v2800_v45, inf  ;;  %v870_v19 = vsel %vm2504_vm0, %v5236_v33, inf  ;;  %v236_v39 = vsel %vm2504_vm0, %v5237_v36, -inf  ;;  %v5238_v45 = vld [vmem:[#allocation36_spill] sm:$0xff] }
 0x168   :  { %v257_v18 = vsel %vm140_vm3, %v253_v37, %v250_v12  ;;  %v3136_v23 = vadd.f32 %v2814_v43, %v397_v14  ;;  %v247_v16 = vmax.f32 %v239_v41, %v243_v58  ;;  %v878_v20 = vsel %vm2508_vm1, %v5238_v45, inf }
 0x169   :  { %v1017_v63 = vadd.f32 %v1010_v40, %v975_v28  ;;  %v881_v17 = vsel %vm2508_vm1, %v5239_v32, inf  ;;  %v244_v27 = vsel %vm2508_vm1, %v5240_v62, -inf  ;;  %v877_v43 = vmin.f32 %v873_v51, %v5241_v1  ;;  %v5248_v40 = vld [vmem:[#allocation39_spill] sm:$0xff] }
 0x16a   :  { %1260 = vrot.lane.b32.xlu1 %v3073_v0, %s5120_s13  ;;  %v874_v29 = vmin.f32 %v870_v19, %v5242_v3  ;;  %v240_v5 = vmax.f32 %v236_v39, %v5243_v49  ;;  %v258_v31 = vsel %vm92_vm5, %v257_v18, -inf  ;;  %v1025_v35 = vsel %vm157_vm2, %v1021_v61, %v1022_v21  ;;  %v5246_v61 = vld [vmem:[#allocation38_spill] sm:$0xff] }
 0x16b   :  { %1246 = vrot.lane.b32.xlu0 %v3121_v24, %s5117_s29  ;;  %v872_v55 = vsel %vm2504_vm0, %v5244_v2, inf  ;;  %v3163_v42 = vmin.f32 %v877_v43, %v881_v17  ;;  %v1033_v7 = vadd.f32 %v1025_v35, %v1017_v63  ;;  %v251_v59 = vrot.slane %v247_v16, 7 }
 0x16c   :  { %v882_v46 = vmin.f32 %v874_v29, %v878_v20  ;;  %v248_v4 = vmax.f32 %v240_v5, %v244_v27  ;;  %v266_v6 = vrot.slane %v3084_v56, 1  ;;  %v262_v30 = vmax.f32 %v258_v31, %v3084_v56 }
 0x16d   :  { %v871_v21 = vsel %vm2504_vm0, %v5245_v60, inf  ;;  %v880_v25 = vsel %vm2508_vm1, %v5246_v61, inf  ;;  %v876_v50 = vmin.f32 %v872_v55, %v5247_v15  ;;  %v269_v52 = vrot.slane %v3090_v34, 1 }
 0x16e   :  { %588 = vrot.lane.b32.xlu1 %v3136_v23, %s5117_s29  ;;  %v267_v9 = vrot.slane %v247_v16, 1  ;;  %v256_v22 = vsel %vm140_vm3, %v250_v12, %v251_v59  ;;  %v886_v56 = vrot.slane %v882_v46, 7  ;;  %v889_v14 = vrot.slane %v3163_v42, 7 }
 0x16f   :  { %1254 = vrot.lane.b32.xlu0 %v3121_v24, %s5120_s13  ;;  %v879_v57 = vsel %vm2508_vm1, %v5248_v40, inf  ;;  %v3186_v58 = vadd.f32 %v2829_v44, %v1033_v7  ;;  %v252_v28 = vrot.slane %v248_v4, 7  ;;  %v875_v41 = vmin.f32 %v871_v21, %v5229_v54 }
 0x170   :  { %v272_v48 = vsel %vm157_vm2, %v266_v6, %v267_v9  ;;  %v884_v12 = vmin.f32 %v876_v50, %v880_v25  ;;  %v263_v51 = vmax.f32 %v256_v22, %v247_v16  ;;  %v273_v33 = vsel %vm157_vm2, %v269_v52, %v266_v6 }
 0x171   :  { %v3195_v19 = vmax.f32 %v262_v30, %v272_v48  ;;  %v268_v44 = vrot.slane %v248_v4, 1  ;;  %v254_v36 = vsel %vm140_vm3, %v252_v28, %v253_v37  ;;  %v883_v39 = vmin.f32 %v875_v41, %v879_v57 }
 0x172   :  { %596 = vrot.lane.b32.xlu1 %v3136_v23, %s5120_s13  ;;  %v893_v18 = vsel %vm140_vm3, %v889_v14, %v886_v56  ;;  %v277_v63 = vsel %vm99_vm4, %v273_v33, -inf  ;;  %v888_v16 = vrot.slane %v884_v12, 7  ;;  %v265_v45 = vmax.f32 %v254_v36, %v3090_v34 }
 0x173   :  { %1258 = vrot.lane.b32.xlu0 %v3040_v47, %s5120_s13  ;;  %v271_v54 = vsel %vm157_vm2, %v267_v9, %v268_v44  ;;  %v894_v37 = vsel %vm92_vm5, %v893_v18, inf  ;;  %v903_v32 = vrot.slane %v883_v39, 1  ;;  %v902_v62 = vrot.slane %v882_v46, 1 }
 0x174   :  { %v3210_v20 = vmax.f32 %v263_v51, %v271_v54  ;;  %v3216_v17 = vmax.f32 %v265_v45, %v277_v63  ;;  %v905_v27 = vrot.slane %v3163_v42, 1  ;;  %v890_v34 = vsel %vm140_vm3, %v888_v16, %v889_v14 }
 0x175   :  { %v898_v1 = vmin.f32 %v894_v37, %v882_v46  ;;  %v255_v43 = vsel %vm140_vm3, %v251_v59, %v252_v28  ;;  %v887_v3 = vrot.slane %v883_v39, 7  ;;  %v908_v29 = vsel %vm157_vm2, %v902_v62, %v903_v32 }
 0x176   :  { %1248 = vrot.lane.b32.xlu1 %v3186_v58, %s5117_s29  ;;  %v909_v49 = vsel %vm157_vm2, %v905_v27, %v902_v62  ;;  %v901_v5 = vmin.f32 %v890_v34, %v3163_v42  ;;  %v264_v31 = vmax.f32 %v255_v43, %v248_v4  ;;  %v270_v42 = vsel %vm157_vm2, %v268_v44, %v269_v52 }
 0x177   :  { %406 = vrot.lane.b32.xlu0 %v3195_v19, %s5117_s29  ;;  %v3234_v35 = vmin.f32 %v898_v1, %v908_v29  ;;  %v913_v2 = vsel %vm99_vm4, %v909_v49, inf  ;;  %v892_v55 = vsel %vm140_vm3, %v886_v56, %v887_v3  ;;  %v904_v7 = vrot.slane %v884_v12, 1 }
 0x178   :  { %v3242_v46 = vmin.f32 %v901_v5, %v913_v2  ;;  %v3248_v4 = vmax.f32 %v264_v31, %v270_v42  ;;  %v899_v59 = vmin.f32 %v892_v55, %v883_v39  ;;  %v891_v60 = vsel %vm140_vm3, %v887_v3, %v888_v16 }
 0x179   :  { %v907_v6 = vsel %vm157_vm2, %v903_v32, %v904_v7  ;;  %v900_v21 = vmin.f32 %v891_v60, %v884_v12  ;;  %v906_v61 = vsel %vm157_vm2, %v904_v7, %v905_v27 }
 0x17a   :  { %1256 = vrot.lane.b32.xlu1 %v3186_v58, %s5120_s13  ;;  %v3256_v30 = vmin.f32 %v899_v59, %v907_v6 }
 0x17b   :  { %408 = vrot.lane.b32.xlu0 %v3210_v20, %s5117_s29  ;;  %v3272_v25 = vmin.f32 %v900_v21, %v906_v61 }
 0x17e   :  { %412 = vrot.lane.b32.xlu1 %v3216_v17, %s5117_s29 }
 0x17f   :  { %414 = vrot.lane.b32.xlu0 %v3195_v19, %s5120_s13 }
 0x182   :  { %420 = vrot.lane.b32.xlu1 %v3216_v17, %s5120_s13 }
 0x183   :  { %1042 = vrot.lane.b32.xlu0 %v3234_v35, %s5117_s29 }
 0x186   :  { %1048 = vrot.lane.b32.xlu1 %v3242_v46, %s5117_s29 }
 0x187   :  { %410 = vrot.lane.b32.xlu0 %v3248_v4, %s5117_s29 }
 0x18a   :  { %416 = vrot.lane.b32.xlu1 %v3210_v20, %s5120_s13 }
 0x18b   :  { %1044 = vrot.lane.b32.xlu0 %v3256_v30, %s5117_s29 }
 0x18e   :  { %1050 = vrot.lane.b32.xlu1 %v3234_v35, %s5120_s13 }
 0x18f   :  { %1056 = vrot.lane.b32.xlu0 %v3242_v46, %s5120_s13 }
 0x192   :  { %418 = vrot.lane.b32.xlu1 %v3248_v4, %s5120_s13 }
 0x193   :  { %1052 = vrot.lane.b32.xlu0 %v3256_v30, %s5120_s13 }
 0x196   :  { %1046 = vrot.lane.b32.xlu1 %v3272_v25, %s5117_s29 }
 0x197   :  { %1054 = vrot.lane.b32.xlu0 %v3272_v25, %s5120_s13 }
 0x1c3   :  { %v591_v15 = vpop.permute.xlu0 %590 }
 0x1c4   :  { %v604_v22 = vsel %vm2504_vm0, %v591_v15, inf }
 0x1c5   :  { %v608_v28 = vmin.f32 %v604_v22, %v2953_v10 }
 0x1c7   :  { %v599_v50 = vpop.permute.xlu0 %598 }
 0x1c8   :  { %v612_v40 = vsel %vm2508_vm1, %v599_v50, inf }
 0x1c9   :  { %v3292_v51 = vmin.f32 %v608_v28, %v612_v40 }
 0x1cb   :  { %v620_v18 = vrot.slane %v3292_v51, 7 }
 0x1d0   :  { %v593_v52 = vpop.permute.xlu1 %592 }
 0x1d1   :  { %v605_v9 = vsel %vm2504_vm0, %v593_v52, inf  ;;  %v1251_v56 = vpop.permute.xlu0 %1250 }
 0x1d2   :  { %v609_v14 = vmin.f32 %v605_v9, %v3028_v8  ;;  %v1264_v2 = vsel %vm2504_vm0, %v1251_v56, -inf }
 0x1d3   :  { %v1268_v61 = vmax.f32 %v1264_v2, %v3040_v47  ;;  %v3442_v2 = vstv %s3382_s6  ;;  %s3578_s6 = sld [smem:[#allocation8 + $0x2e]] }
 0x1d4   :  { %v601_v57 = vpop.permute.xlu1 %600 }
 0x1d5   :  { %v613_v48 = vsel %vm2508_vm1, %v601_v57, inf  ;;  %v587_v12 = vpop.permute.xlu0 %586 }
 0x1d6   :  { %v3290_v41 = vmin.f32 %v609_v14, %v613_v48  ;;  %v602_v33 = vsel %vm2504_vm0, %v587_v12, inf }
 0x1d7   :  { %v606_v36 = vmin.f32 %v602_v33, %v3076_v53 }
 0x1d8   :  { %v1253_v44 = vpop.permute.xlu1 %1252  ;;  %v621_v8 = vrot.slane %v3290_v41, 7  ;;  %v637_v45 = vrot.slane %v3290_v41, 1 }
 0x1d9   :  { %v595_v39 = vpop.permute.xlu0 %594  ;;  %v1265_v3 = vsel %vm2504_vm0, %v1253_v44, -inf }
 0x1da   :  { %v610_v10 = vsel %vm2508_vm1, %v595_v39, inf  ;;  %v622_v16 = vsel %vm140_vm3, %v620_v18, %v621_v8  ;;  %v1269_v59 = vmax.f32 %v1265_v3, %v3073_v0  ;;  %v636_v0 = vrot.slane %v3292_v51, 1 }
 0x1db   :  { %v3301_v63 = vmin.f32 %v606_v36, %v610_v10  ;;  %v633_v53 = vmin.f32 %v622_v16, %v3290_v41 }
 0x1dc   :  { %v1261_v54 = vpop.permute.xlu1 %1260  ;;  %v638_v14 = vsel %vm157_vm2, %v636_v0, %v637_v45 }
 0x1dd   :  { %v634_v37 = vrot.slane %v3301_v63, 1  ;;  %v1247_v32 = vpop.permute.xlu0 %1246  ;;  %v1273_v55 = vsel %vm2508_vm1, %v1261_v54, -inf  ;;  %v618_v48 = vrot.slane %v3301_v63, 7 }
 0x1de   :  { %v1262_v34 = vsel %vm2504_vm0, %v1247_v32, -inf  ;;  %v3340_v15 = vmax.f32 %v1269_v59, %v1273_v55  ;;  %v3466_v59 = vstv %s3397_s0  ;;  %s3602_s0 = sld [smem:[#allocation8 + $0x34]] }
 0x1df   :  { %v641_v62 = vsel %vm157_vm2, %v637_v45, %v634_v37  ;;  %v1266_v5 = vmax.f32 %v1262_v34, %v3121_v24  ;;  %v625_v16 = vsel %vm140_vm3, %v621_v8, %v618_v48 }
 0x1e0   :  { %v589_v27 = vpop.permute.xlu1 %588  ;;  %v645_v1 = vsel %vm99_vm4, %v641_v62, inf  ;;  %v1297_v40 = vrot.slane %v3340_v15, 1  ;;  %v1281_v28 = vrot.slane %v3340_v15, 7  ;;  %v626_v8 = vsel %vm92_vm5, %v625_v16, inf }
 0x1e1   :  { %v603_v43 = vsel %vm2504_vm0, %v589_v27, inf  ;;  %v3322_v29 = vmin.f32 %v633_v53, %v645_v1  ;;  %v1255_v49 = vpop.permute.xlu0 %1254 }
 0x1e2   :  { %v1270_v31 = vsel %vm2508_vm1, %v1255_v49, -inf  ;;  %v607_v42 = vmin.f32 %v603_v43, %v3136_v23  ;;  %v630_v43 = vmin.f32 %v626_v8, %v3301_v63  ;;  %v3613_v8 = vmul.f32 %v3466_v59, %v3210_v20 }
 0x1e3   :  { %656 = vrot.lane.b32.xlu1 %v3322_v29, %s5117_s29  ;;  %v3337_v6 = vmax.f32 %v1266_v5, %v1270_v31  ;;  %v3439_v31 = vstv %s3380_s4  ;;  %s3558_s4 = sld [smem:[#allocation8 + $0x10]] }
 0x1e4   :  { %v597_v7 = vpop.permute.xlu1 %596  ;;  %v3588_v16 = vmul.f32 %v3439_v31, %v3210_v20 }
 0x1e5   :  { %v611_v24 = vsel %vm2508_vm1, %v597_v7, inf  ;;  %v1259_v21 = vpop.permute.xlu0 %1258  ;;  %v1294_v9 = vrot.slane %v3337_v6, 1  ;;  %v1278_v27 = vrot.slane %v3337_v6, 7 }
 0x1e6   :  { %v615_v60 = vmin.f32 %v607_v42, %v611_v24  ;;  %v1272_v23 = vsel %vm2508_vm1, %v1259_v21, -inf  ;;  %v3456_v42 = vstv %s3389_s12  ;;  %v3469_v24 = vstv %s3399_s14  ;;  %s3598_s12 = sld [smem:[#allocation8 + $0x1b]]  ;;  %s3615_s14 = sld [smem:[#allocation8 + $0x1e]] }
 0x1e7   :  { %664 = vrot.lane.b32.xlu1 %v3322_v29, %s5120_s13  ;;  %v3350_v56 = vmax.f32 %v1268_v61, %v1272_v23  ;;  %v1301_v39 = vsel %vm157_vm2, %v1297_v40, %v1294_v9  ;;  %v1285_v5 = vsel %vm140_vm3, %v1281_v28, %v1278_v27  ;;  %v3483_v23 = vstv %s3405_s16  ;;  %s3635_s16 = sld [smem:[#allocation8 + $0x3f]] }
 0x1e8   :  { %v619_v50 = vrot.slane %v615_v60, 7  ;;  %v1249_v52 = vpop.permute.xlu1 %1248  ;;  %v635_v45 = vrot.slane %v615_v60, 1  ;;  %v1305_v32 = vsel %vm99_vm4, %v1301_v39, -inf  ;;  %v1286_v61 = vsel %vm92_vm5, %v1285_v5, -inf }
 0x1e9   :  { %v1263_v22 = vsel %vm2504_vm0, %v1249_v52, -inf  ;;  %v1280_v33 = vrot.slane %v3350_v56, 7  ;;  %v1296_v63 = vrot.slane %v3350_v56, 1  ;;  %v3493_v52 = vstv %s3410_s5  ;;  %s3647_s5 = sld [smem:[#allocation8 + $0x45]] }
 0x1ea   :  { %v623_v47 = vsel %vm140_vm3, %v619_v50, %v620_v18  ;;  %v1267_v12 = vmax.f32 %v1263_v22, %v3186_v58  ;;  %v624_v18 = vsel %vm140_vm3, %v618_v48, %v619_v50  ;;  %v639_v34 = vsel %vm157_vm2, %v635_v45, %v636_v0 }
 0x1eb   :  { %v632_v57 = vmin.f32 %v623_v47, %v3292_v51  ;;  %v1282_v58 = vsel %vm140_vm3, %v1280_v33, %v1281_v28  ;;  %v631_v53 = vmin.f32 %v624_v18, %v615_v60  ;;  %v640_v49 = vsel %vm157_vm2, %v634_v37, %v635_v45 }
 0x1ec   :  { %v1257_v44 = vpop.permute.xlu1 %1256  ;;  %v1293_v54 = vmax.f32 %v1282_v58, %v3340_v15  ;;  %v3453_v37 = vstv %s3387_s11  ;;  %v3472_v60 = vstv %s3403_s15  ;;  %v3474_v21 = vmin.f32 %v630_v43, %v640_v49  ;;  %s3580_s11 = sld [smem:[#allocation8 + $0x31]] }
 0x1ed   :  { %v3362_v36 = vmin.f32 %v632_v57, %v638_v14  ;;  %v1271_v51 = vsel %vm2508_vm1, %v1257_v44, -inf  ;;  %v3425_v1 = vmin.f32 %v631_v53, %v639_v34  ;;  %v3486_v50 = vstv %s3408_s17  ;;  %s3617_s15 = sld [smem:[#allocation8 + $0x21]]  ;;  %s3637_s17 = sld [smem:[#allocation8 + $0x42]] }
 0x1ee   :  { %v3378_v10 = vmax.f32 %v1267_v12, %v1271_v51  ;;  %v3401_v62 = vmax.f32 %v1293_v54, %v1305_v32  ;;  %5252 = vst [vmem:[#allocation20_spill] sm:$0xff] %v3474_v21  ;;  %v3496_v0 = vstv %s3417_s3  ;;  %v3499_v22 = vstv %s3419_s18  ;;  %s3657_s3 = sld [smem:[#allocation8 + $0x1d]]  ;;  %s3679_s18 = sld [smem:[#allocation8 + $0x20]] }
 0x1ef   :  { %5249 = vst [vmem:[#allocation34_spill] sm:$0xff] %v3362_v36  ;;  %654 = vrot.lane.b32.xlu0 %v3362_v36, %s5117_s29  ;;  %5251 = vst [vmem:[#allocation25_spill] sm:$0xff] %v3425_v1  ;;  %v3509_v14 = vmul.f32 %v3439_v31, %v3195_v19  ;;  %v3513_v57 = vmul.f32 %v3442_v2, %v3195_v19  ;;  %v3517_v28 = vmul.f32 %v3453_v37, %v3195_v19 }
 0x1f0   :  { %5250 = vst [vmem:[#allocation31_spill] sm:$0xff] %v3401_v62  ;;  %v1279_v41 = vrot.slane %v3378_v10, 7  ;;  %1324 = vrot.lane.b32.xlu1 %v3401_v62, %s5120_s13  ;;  %v1295_v55 = vrot.slane %v3378_v10, 1  ;;  %v1290_v48 = vmax.f32 %v1286_v61, %v3337_v6  ;;  %v3530_v44 = vmul.f32 %v3456_v42, %v3195_v19 }
 0x1f1   :  { %v3534_v39 = vmul.f32 %v3466_v59, %v3195_v19  ;;  %v3550_v58 = vmul.f32 %v3469_v24, %v3195_v19  ;;  %v3566_v6 = vmul.f32 %v3453_v37, %v3216_v17  ;;  %v3570_v19 = vmul.f32 %v3456_v42, %v3216_v17 }
 0x1f2   :  { %v1284_v3 = vsel %vm140_vm3, %v1278_v27, %v1279_v41  ;;  %v1299_v47 = vsel %vm157_vm2, %v1295_v55, %v1296_v63  ;;  %v1283_v51 = vsel %vm140_vm3, %v1279_v41, %v1280_v33  ;;  %v1300_v18 = vsel %vm157_vm2, %v1294_v9, %v1295_v55 }
 0x1f3   :  { %1316 = vrot.lane.b32.xlu0 %v3401_v62, %s5117_s29  ;;  %v1291_v7 = vmax.f32 %v1284_v3, %v3378_v10  ;;  %v3554_v10 = vmul.f32 %v3439_v31, %v3216_v17  ;;  %v3562_v33 = vmul.f32 %v3442_v2, %v3216_v17  ;;  %v3574_v9 = vmul.f32 %v3466_v59, %v3216_v17 }
 0x1f4   :  { %652 = vrot.lane.b32.xlu1 %v3425_v1, %s5117_s29  ;;  %v3584_v54 = vmul.f32 %v3469_v24, %v3216_v17  ;;  %v3592_v45 = vmul.f32 %v3442_v2, %v3210_v20  ;;  %v3596_v32 = vmul.f32 %v3453_v37, %v3210_v20  ;;  %v1292_v17 = vmax.f32 %v1283_v51, %v3350_v56 }
 0x1f5   :  { %v3526_v12 = vmax.f32 %v1291_v7, %v1299_v47  ;;  %v3605_v53 = vmax.f32 %v1290_v48, %v1300_v18  ;;  %v3609_v41 = vmul.f32 %v3456_v42, %v3210_v20  ;;  %v3621_v27 = vmul.f32 %v3469_v24, %v3210_v20 }
 0x1f6   :  { %v3625_v34 = vmul.f32 %v3472_v60, %v3242_v46  ;;  %v3629_v43 = vmul.f32 %v3483_v23, %v3242_v46  ;;  %v3633_v3 = vmul.f32 %v3486_v50, %v3242_v46  ;;  %v3641_v20 = vmul.f32 %v3493_v52, %v3242_v46 }
 0x1f7   :  { %662 = vrot.lane.b32.xlu0 %v3362_v36, %s5120_s13  ;;  %5253 = vst [vmem:[#allocation29_spill] sm:$0xff] %v3526_v12  ;;  %5254 = vst [vmem:[#allocation17_spill] sm:$0xff] %v3605_v53  ;;  %v3645_v49 = vmul.f32 %v3496_v0, %v3242_v46  ;;  %v3651_v5 = vmul.f32 %v3499_v22, %v3242_v46  ;;  %v3655_v55 = vmul.f32 %v3472_v60, %v3234_v35 }
 0x1f8   :  { %660 = vrot.lane.b32.xlu1 %v3425_v1, %s5120_s13  ;;  %v1298_v7 = vsel %vm157_vm2, %v1296_v63, %v1297_v40  ;;  %v3669_v46 = vmul.f32 %v3483_v23, %v3234_v35  ;;  %v3673_v61 = vmul.f32 %v3486_v50, %v3234_v35  ;;  %v3677_v47 = vmul.f32 %v3493_v52, %v3234_v35 }
 0x1f9   :  { %5255 = vst [vmem:[#allocation23_spill] sm:$0xff] %v3645_v49  ;;  %5256 = vst [vmem:[#allocation30_spill] sm:$0xff] %v3651_v5  ;;  %v3685_v15 = vmax.f32 %v1292_v17, %v1298_v7  ;;  %v3689_v56 = vmul.f32 %v3496_v0, %v3234_v35  ;;  %v3693_v40 = vmul.f32 %v3499_v22, %v3234_v35  ;;  %v3823_v1 = vstv %s3488_s7  ;;  %s3852_s7 = sld [smem:[#allocation8 + $0x11]] }
 0x1fa   :  { %5257 = vst [vmem:[#allocation27_spill] sm:$0xff] %v3655_v55  ;;  %5258 = vst [vmem:[#allocation32_spill] sm:$0xff] %v3669_v46  ;;  %v3697_v63 = vmul.f32 %v3439_v31, %v3248_v4  ;;  %v3705_v48 = vmul.f32 %v3442_v2, %v3248_v4  ;;  %v3709_v51 = vmul.f32 %v3453_v37, %v3248_v4  ;;  %v3826_v62 = vstv %s3490_s8  ;;  %s5298_s8 = sld [smem:[#allocation42_spill]] }
 0x1fb   :  { %650 = vrot.lane.b32.xlu0 %v3474_v21, %s5117_s29  ;;  %5259 = vst [vmem:[#allocation18_spill] sm:$0xff] %v3673_v61  ;;  %5260 = vst [vmem:[#allocation33_spill] sm:$0xff] %v3677_v47  ;;  %v3713_v35 = vmul.f32 %v3456_v42, %v3248_v4  ;;  %v3717_v31 = vmul.f32 %v3466_v59, %v3248_v4  ;;  %v3725_v2 = vmul.f32 %v3469_v24, %v3248_v4 }
 0x1fc   :  { %1312 = vrot.lane.b32.xlu1 %v3526_v12, %s5117_s29  ;;  %5262 = vst [vmem:[#allocation24_spill] sm:$0xff] %v3685_v15  ;;  %5263 = vst [vmem:[#allocation36_spill] sm:$0xff] %v3689_v56  ;;  %v3729_v37 = vmul.f32 %v3472_v60, %v3256_v30  ;;  %v3733_v42 = vmul.f32 %v3483_v23, %v3256_v30  ;;  %v3737_v59 = vmul.f32 %v3486_v50, %v3256_v30 }
 0x1fd   :  { %5264 = vst [vmem:[#allocation37_spill] sm:$0xff] %v3693_v40  ;;  %5265 = vst [vmem:[#allocation26_spill] sm:$0xff] %v3697_v63  ;;  %v3747_v4 = vmul.f32 %v3493_v52, %v3256_v30  ;;  %v3751_v24 = vmul.f32 %v3496_v0, %v3256_v30  ;;  %v3755_v18 = vmul.f32 %v3499_v22, %v3256_v30  ;;  %v3829_v36 = vstv %s3519_s26 }
 0x1fe   :  { %5268 = vst [vmem:[#allocation21_spill] sm:$0xff] %v3705_v48  ;;  %5269 = vst [vmem:[#allocation22_spill] sm:$0xff] %v3709_v51  ;;  %v3759_v17 = vmul.f32 %v3472_v60, %v3272_v25  ;;  %v3769_v7 = vmul.f32 %v3483_v23, %v3272_v25  ;;  %v3773_v30 = vmul.f32 %v3486_v50, %v3272_v25  ;;  %v3788_v23 = vstv %s3436_s19  ;;  %s3818_s19 = sld [smem:[#allocation8 + $0x37]] }
 0x1ff   :  { %658 = vrot.lane.b32.xlu0 %v3474_v21, %s5120_s13  ;;  %5270 = vst [vmem:[#allocation16_spill] sm:$0xff] %v3713_v35  ;;  %5271 = vst [vmem:[#allocation28_spill] sm:$0xff] %v3717_v31  ;;  %v3777_v60 = vmul.f32 %v3493_v52, %v3272_v25  ;;  %v3781_v38 = vmul.f32 %v3496_v0, %v3272_v25  ;;  %v3791_v50 = vstv %s3448_s20  ;;  %v3797_v52 = vstv %s3461_s22  ;;  %s3820_s20 = sld [smem:[#allocation8 + $0x3a]]  ;;  %s3836_s22 = sld [smem:[#allocation8 + $0x3d]] }
 0x200   :  { %1310 = vrot.lane.b32.xlu1 %v3605_v53, %s5117_s29  ;;  %s3681_s29 = sld [smem:[#allocation8 + $0x23]]  ;;  %5274 = vst [vmem:[#allocation35_spill] sm:$0xff] %v3725_v2  ;;  %5275 = vst [vmem:[#allocation38_spill] sm:$0xff] %v3729_v37  ;;  %v3804_v0 = vstv %s3463_s23  ;;  %v3814_v21 = vmul.f32 %v3499_v22, %v3272_v25  ;;  %v3832_v25 = vstv %s3521_s27  ;;  %v3839_v22 = vstv %s3536_s28  ;;  %s5303_s27 = sld [smem:[#allocation44_spill]] }
 0x201   :  { %5276 = vst [vmem:[#allocation19_spill] sm:$0xff] %v3733_v42  ;;  %5277 = vst [vmem:[#allocation39_spill] sm:$0xff] %v3737_v59  ;;  %s3866_s28 = sld [smem:[#allocation8 + $0x2f]]  ;;  %v3875_v59 = vstv %s3635_s16  ;;  %v3878_v42 = vstv %s3637_s17  ;;  %v3881_v37 = vstv %s3647_s5  ;;  %v3884_v2 = vstv %s3657_s3  ;;  %s4280_s16 = sld [smem:[#allocation8 + $0x39]] }
 0x202   :  { %5281 = vst [vmem:[#allocation47_spill] sm:$0xff] %v3747_v4  ;;  %5282 = vst [vmem:[#allocation48_spill] sm:$0xff] %v3751_v24  ;;  %v3869_v24 = vstv %s3615_s14  ;;  %v3872_v4 = vstv %s3617_s15  ;;  %v3887_v31 = vstv %s3679_s18  ;;  %v3896_v48 = vstv %s5298_s8  ;;  %s4272_s14 = sld [smem:[#allocation8 + $0x18]]  ;;  %s4274_s15 = sld [smem:[#allocation8 + $0x36]] }
 0x203   :  { %1318 = vrot.lane.b32.xlu0 %v3605_v53, %s5120_s13  ;;  %s3719_s13 = sld [smem:[#allocation8 + $0x47]]  ;;  %5283 = vst [vmem:[#allocation49_spill] sm:$0xff] %v3755_v18  ;;  %5284 = vst [vmem:[#allocation50_spill] sm:$0xff] %v3759_v17  ;;  %v3807_v53 = vstv %s3478_s24  ;;  %s3850_s24 = sld [smem:[#allocation8 + $0xe]]  ;;  %v3864_v17 = vstv %s3602_s0  ;;  %v407_v18 = vpop.permute.xlu0 %406  ;;  %v3926_v47 = vstv %s3785_s1 }
 0x204   :  { %1314 = vrot.lane.b32.xlu1 %v3685_v15, %s5278_s2  ;;  %s5285_s2 = smov 127   ;;  %5288 = vst [vmem:[#allocation53_spill] sm:$0xff] %v3769_v7  ;;  %5289 = vst [vmem:[#allocation54_spill] sm:$0xff] %v3773_v30  ;;  %v3858_v30 = vstv %s3578_s6  ;;  %v3861_v7 = vstv %s3580_s11  ;;  %s5307_s6 = sld [smem:[#allocation52_spill]]  ;;  %v3945_v55 = vstv %s3834_s21 }
 0x205   :  { %5290 = vst [vmem:[#allocation55_spill] sm:$0xff] %v3777_v60  ;;  %5291 = vst [vmem:[#allocation56_spill] sm:$0xff] %v3781_v38  ;;  %v3848_v38 = vstv %s3558_s4  ;;  %v3855_v60 = vstv %s3598_s12  ;;  %s3901_s11 = sld [smem:[#allocation8 + $0x32]]  ;;  %s3903_s12 = sld [smem:[#allocation8 + $0x35]]  ;;  %v3941_v46 = vstv %s3836_s22 }
 0x206   :  { %5261 = sst [smem:[#allocation40_spill]] %s3681_s29  ;;  %s3801_s29 = sld [smem:[#allocation8 + $0x19]]  ;;  %5292 = vst [vmem:[#allocation57_spill] sm:$0xff] %v3814_v21  ;;  %v3845_v21 = vstv %s3556_s10  ;;  %5295 = vst [vmem:[#allocation60_spill] sm:$0xff] %v3848_v38 }
 0x207   :  { %1320 = vrot.lane.b32.xlu0 %v3526_v12, %s5285_s2  ;;  %v3810_v12 = vstv %s3480_s25  ;;  %5294 = vst [vmem:[#allocation59_spill] sm:$0xff] %v3845_v21  ;;  %s5296_s23 = sld [smem:[#allocation40_spill]]  ;;  %s5297_s25 = sld [smem:[#allocation41_spill]]  ;;  %5300 = vst [vmem:[#allocation61_spill] sm:$0xff] %v3858_v30 }
 0x208   :  { %1322 = vrot.lane.b32.xlu1 %v3685_v15, %s5285_s2  ;;  %v3842_v15 = vstv %s3538_s30  ;;  %5301 = vst [vmem:[#allocation62_spill] sm:$0xff] %v3861_v7  ;;  %5302 = vst [vmem:[#allocation63_spill] sm:$0xff] %v3864_v17  ;;  %s5304_s30 = sld [smem:[#allocation45_spill]]  ;;  %s4282_s17 = sld [smem:[#allocation8 + $0x3c]] }
 0x209   :  { %5272 = sst [smem:[#allocation43_spill]] %s3719_s13  ;;  %s3743_s13 = sld [smem:[#allocation8 + $0x16]]  ;;  %5293 = vst [vmem:[#allocation58_spill] sm:$0xff] %v3842_v15  ;;  %5308 = vst [vmem:[#allocation64_spill] sm:$0xff] %v3884_v2  ;;  %v3906_v2 = vstv %s5303_s27 }
 0x20a   :  { %s5299_s26 = sld [smem:[#allocation43_spill]]  ;;  %5309 = vst [vmem:[#allocation65_spill] sm:$0xff] %v3887_v31  ;;  %5312 = vst [vmem:[#allocation68_spill] sm:$0xff] %v3896_v48  ;;  %v3920_v40 = vstv %s5307_s6  ;;  %s4266_s0 = sld [smem:[#allocation8 + $0x15]] }
 0x20b   :  { %5314 = vst [vmem:[#allocation70_spill] sm:$0xff] %v3906_v2  ;;  %5318 = vst [vmem:[#allocation74_spill] sm:$0xff] %v3920_v40  ;;  %v3929_v2 = vstv %s3799_s9  ;;  %v3948_v40 = vstv %s3850_s24  ;;  %s4288_s5 = sld [smem:[#allocation8 + $0x14]]  ;;  %s4290_s3 = sld [smem:[#allocation8 + $0x17]] }
 0x20c   :  { %5320 = vst [vmem:[#allocation76_spill] sm:$0xff] %v3926_v47  ;;  %5321 = vst [vmem:[#allocation77_spill] sm:$0xff] %v3929_v2  ;;  %v3932_v61 = vstv %s3801_s29  ;;  %v3955_v2 = vmul.f32 %v3842_v15, %v3322_v29  ;;  %v3959_v47 = vmul.f32 %v3845_v21, %v3322_v29  ;;  %v3986_v21 = vmul.f32 %v3864_v17, %v3322_v29  ;;  %s5372_s29 = sld [smem:[#allocation113_spill]]  ;;  %s4296_s18 = sld [smem:[#allocation8 + $0x1a]] }
 0x20d   :  { %v3890_v35 = vstv %s5296_s23  ;;  %v3893_v51 = vstv %s5297_s25  ;;  %5322 = vst [vmem:[#allocation78_spill] sm:$0xff] %v3932_v61  ;;  %5325 = vst [vmem:[#allocation81_spill] sm:$0xff] %v3941_v46  ;;  %v3963_v46 = vmul.f32 %v3848_v38, %v3322_v29  ;;  %v3992_v15 = vstv %s3903_s12  ;;  %s4298_s2 = sld [smem:[#allocation8 + $0x38]]  ;;  %s4526_s22 = sld [smem:[#allocation9 + $0x1]] }
 0x20e   :  { %5310 = vst [vmem:[#allocation66_spill] sm:$0xff] %v3890_v35  ;;  %5311 = vst [vmem:[#allocation67_spill] sm:$0xff] %v3893_v51  ;;  %v422_v35 = vsel %vm2504_vm0, %v407_v18, 0.0  ;;  %v3911_v31 = vstv %s5304_s30  ;;  %v3935_v18 = vstv %s3818_s19  ;;  %s4312_s19 = sld [smem:[#allocation8 + $0x3b]]  ;;  %s4524_s21 = sld [smem:[#allocation9]] }
 0x20f   :  { %5280 = sst [smem:[#allocation46_spill]] %s3743_s13  ;;  %s3763_s13 = sld [smem:[#allocation8 + $0xc]]  ;;  %5315 = vst [vmem:[#allocation71_spill] sm:$0xff] %v3911_v31  ;;  %5323 = vst [vmem:[#allocation79_spill] sm:$0xff] %v3935_v18  ;;  %v3938_v31 = vstv %s3820_s20  ;;  %v536_v18 = vmul.f32 %v3804_v0, %v422_v35  ;;  %v562_v61 = vmul.f32 %v3807_v53, %v422_v35 }
 0x210   :  { %s5306_s4 = sld [smem:[#allocation46_spill]]  ;;  %v3899_v63 = vstv %s5299_s26  ;;  %5324 = vst [vmem:[#allocation80_spill] sm:$0xff] %v3938_v31  ;;  %5326 = vst [vmem:[#allocation82_spill] sm:$0xff] %v3945_v55  ;;  %v3966_v31 = vstv %s3866_s28  ;;  %v510_v55 = vmul.f32 %v3797_v52, %v422_v35  ;;  %s5594_s27 = sld [smem:[#allocation115_spill]] }
 0x211   :  { %5313 = vst [vmem:[#allocation69_spill] sm:$0xff] %v3899_v63  ;;  %v413_v63 = vpop.permute.xlu1 %412  ;;  %5327 = vst [vmem:[#allocation83_spill] sm:$0xff] %v3948_v40  ;;  %v458_v40 = vmul.f32 %v3791_v50, %v422_v35  ;;  %v572_v17 = vadd.f32 %v3550_v58, %v562_v61  ;;  %s4314_s20 = sld [smem:[#allocation8 + $0x3e]]  ;;  %s2409_s28 = smov 112  }
 0x212   :  { %5329 = vst [vmem:[#allocation85_spill] sm:$0xff] %v3955_v2  ;;  %5330 = vst [vmem:[#allocation86_spill] sm:$0xff] %v3959_v47  ;;  %v425_v2 = vsel %vm2504_vm0, %v413_v63, 0.0  ;;  %v3977_v47 = vmul.f32 %v3858_v30, %v3322_v29  ;;  %v3989_v63 = vstv %s3901_s11  ;;  %s5593_s25 = sld [smem:[#allocation114_spill]]  ;;  %s2411_s9 = smov 80  }
 0x213   :  { %5331 = vst [vmem:[#allocation87_spill] sm:$0xff] %v3963_v46  ;;  %5332 = vst [vmem:[#allocation88_spill] sm:$0xff] %v3966_v31  ;;  %v3981_v31 = vmul.f32 %v3861_v7, %v3322_v29  ;;  %v461_v30 = vmul.f32 %v3791_v50, %v425_v2  ;;  %v520_v29 = vadd.f32 %v3530_v44, %v510_v55 }
 0x214   :  { %5333 = vst [vmem:[#allocation89_spill] sm:$0xff] %v3977_v47  ;;  %5335 = vst [vmem:[#allocation91_spill] sm:$0xff] %v3986_v21  ;;  %v487_v47 = vmul.f32 %v3794_v26, %v425_v2  ;;  %v513_v21 = vmul.f32 %v3797_v52, %v425_v2  ;;  %v539_v7 = vmul.f32 %v3804_v0, %v425_v2 }
 0x215   :  { %5286 = sst [smem:[#allocation51_spill]] %s3763_s13  ;;  %s3783_s13 = sld [smem:[#allocation8 + $0x2d]]  ;;  %5334 = vst [vmem:[#allocation90_spill] sm:$0xff] %v3981_v31  ;;  %v421_v38 = vpop.permute.xlu1 %420  ;;  %5336 = vst [vmem:[#allocation92_spill] sm:$0xff] %v3989_v63  ;;  %v565_v5 = vmul.f32 %v3807_v53, %v425_v2  ;;  %v471_v55 = vadd.f32 %v3562_v33, %v461_v30 }
 0x216   :  { %s5305_s10 = sld [smem:[#allocation51_spill]]  ;;  %v3917_v48 = vstv %s5306_s4  ;;  %5337 = vst [vmem:[#allocation93_spill] sm:$0xff] %v3992_v15  ;;  %v546_v15 = vadd.f32 %v3534_v39, %v536_v18  ;;  %v497_v39 = vadd.f32 %v3566_v6, %v487_v47  ;;  %v523_v61 = vadd.f32 %v3570_v19, %v513_v21  ;;  %s2410_s4 = smov 96  }
 0x217   :  { %5317 = vst [vmem:[#allocation73_spill] sm:$0xff] %v3917_v48  ;;  %v409_v48 = vpop.permute.xlu0 %408 }
 0x218   :  { %v423_v31 = vsel %vm2504_vm0, %v409_v48, 0.0 }
 0x219   :  { %v433_v49 = vmul.f32 %v3788_v23, %v423_v31  ;;  %v459_v48 = vmul.f32 %v3791_v50, %v423_v31  ;;  %v1049_v18 = vpop.permute.xlu1 %1048 }
 0x21b   :  { %v3923_v56 = vstv %s3783_s13  ;;  %v415_v63 = vpop.permute.xlu0 %414  ;;  %v4026_v47 = vadd.f32 %v3588_v16, %v433_v49  ;;  %v4029_v21 = vadd.f32 %v3592_v45, %v459_v48  ;;  %s4264_s13 = sld [smem:[#allocation8 + $0x12]] }
 0x21c   :  { %v3914_v51 = vstv %s5305_s10  ;;  %5319 = vst [vmem:[#allocation75_spill] sm:$0xff] %v3923_v56  ;;  %v3951_v56 = vstv %s3852_s7  ;;  %v426_v58 = vsel %vm2508_vm1, %v415_v63, 0.0 }
 0x21d   :  { %5316 = vst [vmem:[#allocation72_spill] sm:$0xff] %v3914_v51  ;;  %v432_v51 = vmul.f32 %v3788_v23, %v422_v35  ;;  %5328 = vst [vmem:[#allocation84_spill] sm:$0xff] %v3951_v56  ;;  %v484_v56 = vmul.f32 %v3794_v26, %v422_v35  ;;  %v435_v35 = vmul.f32 %v3788_v23, %v425_v2 }
 0x21e   :  { %v563_v2 = vmul.f32 %v3807_v53, %v423_v31  ;;  %v474_v48 = vmul.f32 %v3823_v1, %v426_v58 }
 0x21f   :  { %v442_v46 = vadd.f32 %v3509_v14, %v432_v51  ;;  %v468_v14 = vadd.f32 %v3513_v57, %v458_v40  ;;  %v494_v51 = vadd.f32 %v3517_v28, %v484_v56  ;;  %v485_v57 = vmul.f32 %v3794_v26, %v423_v31 }
 0x220   :  { %v429_v28 = vsel %vm2508_vm1, %v421_v38, 0.0  ;;  %v445_v44 = vadd.f32 %v3554_v10, %v435_v35  ;;  %v511_v56 = vmul.f32 %v3797_v52, %v423_v31  ;;  %v537_v40 = vmul.f32 %v3804_v0, %v423_v31 }
 0x221   :  { %v549_v38 = vadd.f32 %v3574_v9, %v539_v7  ;;  %v575_v10 = vadd.f32 %v3584_v54, %v565_v5  ;;  %v451_v33 = vmul.f32 %v3810_v12, %v429_v28  ;;  %v477_v6 = vmul.f32 %v3823_v1, %v429_v28  ;;  %v1043_v7 = vpop.permute.xlu0 %1042 }
 0x222   :  { %v4032_v19 = vadd.f32 %v3596_v32, %v485_v57  ;;  %v448_v31 = vmul.f32 %v3810_v12, %v426_v58  ;;  %v503_v30 = vmul.f32 %v3826_v62, %v429_v28  ;;  %v529_v9 = vmul.f32 %v3829_v36, %v429_v28 }
 0x223   :  { %v555_v54 = vmul.f32 %v3832_v25, %v429_v28  ;;  %v1061_v5 = vsel %vm2504_vm0, %v1049_v18, 0.0  ;;  %v4041_v16 = vadd.f32 %v3609_v41, %v511_v56  ;;  %v4044_v45 = vadd.f32 %v3613_v8, %v537_v40 }
 0x224   :  { %v4047_v32 = vadd.f32 %v3621_v27, %v563_v2  ;;  %v581_v49 = vmul.f32 %v3839_v22, %v429_v28  ;;  %v4050_v63 = vadd.f32 %v451_v33, %v445_v44  ;;  %v4052_v35 = vadd.f32 %v477_v6, %v471_v55 }
 0x225   :  { %v500_v57 = vmul.f32 %v3826_v62, %v426_v58  ;;  %v526_v18 = vmul.f32 %v3829_v36, %v426_v58  ;;  %v552_v41 = vmul.f32 %v3832_v25, %v426_v58  ;;  %v578_v8 = vmul.f32 %v3839_v22, %v426_v58  ;;  %v417_v58 = vpop.permute.xlu1 %416 }
 0x226   :  { %5338 = vst [vmem:[#allocation94_spill] sm:$0xff] %v4052_v35  ;;  %v1071_v56 = vmul.f32 %v3855_v60, %v1061_v5  ;;  %v4060_v27 = vadd.f32 %v503_v30, %v497_v39  ;;  %v4062_v40 = vadd.f32 %v529_v9, %v523_v61  ;;  %v4064_v28 = vadd.f32 %v555_v54, %v549_v38 }
 0x227   :  { %v4066_v44 = vadd.f32 %v448_v31, %v442_v46  ;;  %v4068_v55 = vadd.f32 %v581_v49, %v575_v10  ;;  %v1101_v2 = vmul.f32 %v3869_v24, %v1061_v5  ;;  %v1131_v33 = vmul.f32 %v3872_v4, %v1061_v5  ;;  %v411_v46 = vpop.permute.xlu0 %410 }
 0x228   :  { %v1058_v6 = vsel %vm2504_vm0, %v1043_v7, 0.0  ;;  %v4074_v35 = vadd.f32 %v474_v48, %v468_v14  ;;  %v4076_v39 = vadd.f32 %v500_v57, %v494_v51  ;;  %v1161_v61 = vmul.f32 %v3875_v59, %v1061_v5 }
 0x229   :  { %5339 = vst [vmem:[#allocation95_spill] sm:$0xff] %v4066_v44  ;;  %5340 = vst [vmem:[#allocation96_spill] sm:$0xff] %v4068_v55  ;;  %v1191_v38 = vmul.f32 %v3878_v42, %v1061_v5  ;;  %v4080_v31 = vadd.f32 %v526_v18, %v520_v29  ;;  %v4082_v10 = vadd.f32 %v552_v41, %v546_v15  ;;  %v427_v7 = vsel %vm2508_vm1, %v417_v58, 0.0  ;;  %v5349_v58 = vld [vmem:[#allocation32_spill] sm:$0xff] }
 0x22a   :  { %5341 = vst [vmem:[#allocation97_spill] sm:$0xff] %v4074_v35  ;;  %5342 = vst [vmem:[#allocation98_spill] sm:$0xff] %v4076_v39  ;;  %v4084_v30 = vadd.f32 %v578_v8, %v572_v17  ;;  %v4087_v9 = vadd.f32 %v3625_v34, %v1071_v56  ;;  %v1221_v54 = vmul.f32 %v3881_v37, %v1061_v5  ;;  %v5346_v5 = vld [vmem:[#allocation23_spill] sm:$0xff]  ;;  %v424_v8 = vsel %vm2504_vm0, %v411_v46, 0.0  ;;  %v5347_v56 = vld [vmem:[#allocation30_spill] sm:$0xff] }
 0x22b   :  { %5343 = vst [vmem:[#allocation99_spill] sm:$0xff] %v4080_v31  ;;  %5344 = vst [vmem:[#allocation100_spill] sm:$0xff] %v4082_v10  ;;  %v1068_v14 = vmul.f32 %v3855_v60, %v1058_v6  ;;  %v1098_v51 = vmul.f32 %v3869_v24, %v1058_v6  ;;  %v4095_v49 = vadd.f32 %v3629_v43, %v1101_v2  ;;  %v5350_v10 = vld [vmem:[#allocation18_spill] sm:$0xff]  ;;  %v5352_v46 = vld [vmem:[#allocation36_spill] sm:$0xff] }
 0x22c   :  { %5345 = vst [vmem:[#allocation101_spill] sm:$0xff] %v4084_v30  ;;  %v4098_v15 = vadd.f32 %v3633_v3, %v1131_v33  ;;  %v1128_v17 = vmul.f32 %v3872_v4, %v1058_v6  ;;  %v1158_v34 = vmul.f32 %v3875_v59, %v1058_v6  ;;  %v4103_v29 = vadd.f32 %v3641_v20, %v1161_v61  ;;  %v5348_v20 = vld [vmem:[#allocation27_spill] sm:$0xff]  ;;  %v5351_v30 = vld [vmem:[#allocation33_spill] sm:$0xff] }
 0x22d   :  { %v4106_v48 = vadd.f32 %v5346_v5, %v1191_v38  ;;  %v1188_v57 = vmul.f32 %v3878_v42, %v1058_v6  ;;  %v1218_v18 = vmul.f32 %v3881_v37, %v1058_v6  ;;  %v449_v43 = vmul.f32 %v3810_v12, %v427_v7  ;;  %v1051_v5 = vpop.permute.xlu1 %1050  ;;  %v1045_v6 = vpop.permute.xlu0 %1044 }
 0x22e   :  { %v475_v41 = vmul.f32 %v3823_v1, %v427_v7  ;;  %v501_v3 = vmul.f32 %v3826_v62, %v427_v7  ;;  %v4116_v2 = vadd.f32 %v5347_v56, %v1221_v54  ;;  %v1078_v33 = vadd.f32 %v5348_v20, %v1068_v14  ;;  %v5353_v54 = vld [vmem:[#allocation37_spill] sm:$0xff] }
 0x22f   :  { %v1108_v61 = vadd.f32 %v5349_v58, %v1098_v51  ;;  %v527_v38 = vmul.f32 %v3829_v36, %v427_v7  ;;  %v1138_v35 = vadd.f32 %v5350_v10, %v1128_v17  ;;  %v1168_v31 = vadd.f32 %v5351_v30, %v1158_v34 }
 0x230   :  { %v553_v39 = vmul.f32 %v3832_v25, %v427_v7  ;;  %v579_v44 = vmul.f32 %v3839_v22, %v427_v7  ;;  %v1198_v55 = vadd.f32 %v5352_v46, %v1188_v57  ;;  %v1228_v56 = vadd.f32 %v5353_v54, %v1218_v18  ;;  %v5360_v57 = vld [vmem:[#allocation26_spill] sm:$0xff]  ;;  %v5361_v18 = vld [vmem:[#allocation21_spill] sm:$0xff] }
 0x231   :  { %v434_v14 = vmul.f32 %v3788_v23, %v424_v8  ;;  %v460_v51 = vmul.f32 %v3791_v50, %v424_v8  ;;  %v4130_v20 = vadd.f32 %v449_v43, %v4026_v47  ;;  %v4133_v58 = vadd.f32 %v475_v41, %v4029_v21  ;;  %v5368_v54 = vld [vmem:[#allocation22_spill] sm:$0xff] }
 0x232   :  { %v4136_v10 = vadd.f32 %v501_v3, %v4032_v19  ;;  %v1062_v30 = vsel %vm2508_vm1, %v1051_v5, 0.0  ;;  %v4141_v7 = vadd.f32 %v527_v38, %v4041_v16  ;;  %v486_v17 = vmul.f32 %v3794_v26, %v424_v8  ;;  %v5362_v26 = vld [vmem:[#allocation64_spill] sm:$0xff]  ;;  %v1057_v38 = vpop.permute.xlu0 %1056  ;;  %v5365_v5 = vld [vmem:[#allocation67_spill] sm:$0xff] }
 0x233   :  { %5354 = vst [vmem:[#allocation23_spill] sm:$0xff] %v4130_v20  ;;  %5355 = vst [vmem:[#allocation30_spill] sm:$0xff] %v4133_v58  ;;  %v512_v23 = vmul.f32 %v3797_v52, %v424_v8  ;;  %v538_v50 = vmul.f32 %v3804_v0, %v424_v8  ;;  %v4147_v47 = vadd.f32 %v553_v39, %v4044_v45  ;;  %v1059_v34 = vsel %vm2504_vm0, %v1045_v6, 0.0  ;;  %v5363_v52 = vld [vmem:[#allocation65_spill] sm:$0xff]  ;;  %v419_v0 = vpop.permute.xlu1 %418  ;;  %v5364_v45 = vld [vmem:[#allocation66_spill] sm:$0xff] }
 0x234   :  { %5356 = vst [vmem:[#allocation27_spill] sm:$0xff] %v4136_v10  ;;  %5357 = vst [vmem:[#allocation32_spill] sm:$0xff] %v4141_v7  ;;  %v4150_v21 = vadd.f32 %v579_v44, %v4047_v32  ;;  %v564_v19 = vmul.f32 %v3807_v53, %v424_v8  ;;  %v444_v16 = vadd.f32 %v5360_v57, %v434_v14  ;;  %v5366_v44 = vld [vmem:[#allocation68_spill] sm:$0xff]  ;;  %v5367_v53 = vld [vmem:[#allocation69_spill] sm:$0xff] }
 0x235   :  { %5358 = vst [vmem:[#allocation18_spill] sm:$0xff] %v4147_v47  ;;  %v470_v43 = vadd.f32 %v5361_v18, %v460_v51  ;;  %v1084_v41 = vmul.f32 %v5362_v26, %v1062_v30  ;;  %v1114_v3 = vmul.f32 %v5363_v52, %v1062_v30  ;;  %v1144_v39 = vmul.f32 %v5364_v45, %v1062_v30  ;;  %v5369_v47 = vld [vmem:[#allocation16_spill] sm:$0xff]  ;;  %v5371_v58 = vld [vmem:[#allocation35_spill] sm:$0xff]  ;;  %v1552_v20 = vld [vmem:[%s5372_s29] sm:$0xff] }
 0x236   :  { %5359 = vst [vmem:[#allocation33_spill] sm:$0xff] %v4150_v21  ;;  %v1174_v32 = vmul.f32 %v5365_v5, %v1062_v30  ;;  %v1204_v46 = vmul.f32 %v5366_v44, %v1062_v30  ;;  %v1234_v8 = vmul.f32 %v5367_v53, %v1062_v30  ;;  %v496_v6 = vadd.f32 %v5368_v54, %v486_v17  ;;  %v5370_v57 = vld [vmem:[#allocation28_spill] sm:$0xff] }
 0x237   :  { %v522_v14 = vadd.f32 %v5369_v47, %v512_v23  ;;  %v548_v51 = vadd.f32 %v5370_v57, %v538_v50  ;;  %v1069_v18 = vmul.f32 %v3855_v60, %v1059_v34  ;;  %v574_v21 = vadd.f32 %v5371_v58, %v564_v19  ;;  %2176 = vmatprep.mubr.msk.f32.mxu1 %vm1554_vm6, %v1552_v20  ;;  %v1047_v57 = vpop.permute.xlu1 %1046 }
 0x238   :  { %v1099_v7 = vmul.f32 %v3869_v24, %v1059_v34  ;;  %v1129_v10 = vmul.f32 %v3872_v4, %v1059_v34  ;;  %v4173_v30 = vadd.f32 %v1084_v41, %v1078_v33  ;;  %v4175_v17 = vadd.f32 %v1114_v3, %v1108_v61  ;;  %2222 = vmatprep.mubr.msk.f32.mxu0 %vm1554_vm6, %v1552_v20  ;;  %v5379_v33 = vld [vmem:[#allocation38_spill] sm:$0xff]  ;;  %v1053_v20 = vpop.permute.xlu0 %1052 }
 0x239   :  { %v1159_v23 = vmul.f32 %v3875_v59, %v1059_v34  ;;  %v428_v50 = vsel %vm2508_vm1, %v419_v0, 0.0  ;;  %v4182_v58 = vadd.f32 %v1144_v39, %v1138_v35  ;;  %v4184_v47 = vadd.f32 %v1174_v32, %v1168_v31  ;;  %v5380_v35 = vld [vmem:[#allocation19_spill] sm:$0xff] }
 0x23a   :  { %5373 = vst [vmem:[#allocation36_spill] sm:$0xff] %v4173_v30  ;;  %5374 = vst [vmem:[#allocation37_spill] sm:$0xff] %v4175_v17  ;;  %v4186_v19 = vadd.f32 %v1204_v46, %v1198_v55  ;;  %v4188_v54 = vadd.f32 %v1234_v8, %v1228_v56  ;;  %v4191_v61 = vadd.f32 %v5379_v33, %v1069_v18  ;;  %v1065_v0 = vsel %vm2508_vm1, %v1057_v38, 0.0  ;;  %v5381_v31 = vld [vmem:[#allocation39_spill] sm:$0xff]  ;;  %v5382_v46 = vld [vmem:[#allocation47_spill] sm:$0xff] }
 0x23b   :  { %5375 = vst [vmem:[#allocation26_spill] sm:$0xff] %v4182_v58  ;;  %5376 = vst [vmem:[#allocation21_spill] sm:$0xff] %v4184_v47  ;;  %v1189_v41 = vmul.f32 %v3878_v42, %v1059_v34  ;;  %v1219_v3 = vmul.f32 %v3881_v37, %v1059_v34  ;;  %v4198_v39 = vadd.f32 %v5380_v35, %v1099_v7  ;;  %v5383_v35 = vld [vmem:[#allocation48_spill] sm:$0xff]  ;;  %v5438_v30 = vld [vmem:[#allocation20_spill] sm:$0xff] }
 0x23c   :  { %5377 = vst [vmem:[#allocation64_spill] sm:$0xff] %v4186_v19  ;;  %5378 = vst [vmem:[#allocation65_spill] sm:$0xff] %v4188_v54  ;;  %v4201_v55 = vadd.f32 %v5381_v31, %v1129_v10  ;;  %v450_v56 = vmul.f32 %v3810_v12, %v428_v50  ;;  %v476_v32 = vmul.f32 %v3823_v1, %v428_v50  ;;  %v1060_v12 = vsel %vm2504_vm0, %v1047_v57, 0.0 }
 0x23d   :  { %v4206_v8 = vadd.f32 %v5382_v46, %v1159_v23  ;;  %v502_v34 = vmul.f32 %v3826_v62, %v428_v50  ;;  %v528_v18 = vmul.f32 %v3829_v36, %v428_v50  ;;  %v554_v38 = vmul.f32 %v3832_v25, %v428_v50  ;;  %v5384_v36 = vld [vmem:[#allocation49_spill] sm:$0xff] }
 0x23e   :  { %v580_v33 = vmul.f32 %v3839_v22, %v428_v50  ;;  %v1087_v7 = vmul.f32 %v5362_v26, %v1065_v0  ;;  %v1117_v10 = vmul.f32 %v5363_v52, %v1065_v0  ;;  %v1199_v1 = vadd.f32 %v5383_v35, %v1189_v41  ;;  %v1055_v35 = vpop.permute.xlu0 %1054 }
 0x23f   :  { %v1147_v23 = vmul.f32 %v5364_v45, %v1065_v0  ;;  %v1177_v31 = vmul.f32 %v5365_v5, %v1065_v0  ;;  %v1207_v62 = vmul.f32 %v5366_v44, %v1065_v0  ;;  %v1229_v46 = vadd.f32 %v5384_v36, %v1219_v3 }
 0x240   :  { %v4221_v25 = vadd.f32 %v450_v56, %v444_v16  ;;  %v4223_v22 = vadd.f32 %v476_v32, %v470_v43  ;;  %v1237_v50 = vmul.f32 %v5367_v53, %v1065_v0  ;;  %v4226_v54 = vadd.f32 %v502_v34, %v496_v6 }
 0x241   :  { %v4228_v19 = vadd.f32 %v528_v18, %v522_v14  ;;  %v1070_v41 = vmul.f32 %v3855_v60, %v1060_v12  ;;  %v1100_v57 = vmul.f32 %v3869_v24, %v1060_v12  ;;  %v4232_v47 = vadd.f32 %v554_v38, %v548_v51  ;;  %v5391_v51 = vld [vmem:[#allocation50_spill] sm:$0xff]  ;;  %v5393_v18 = vld [vmem:[#allocation54_spill] sm:$0xff]  ;;  %v5557_v13 = vld [vmem:[#allocation36_spill] sm:$0xff] }
 0x242   :  { %5385 = vst [vmem:[#allocation66_spill] sm:$0xff] %v4221_v25  ;;  %5386 = vst [vmem:[#allocation67_spill] sm:$0xff] %v4223_v22  ;;  %v4234_v58 = vadd.f32 %v580_v33, %v574_v21  ;;  %v4237_v16 = vadd.f32 %v1087_v7, %v4087_v9  ;;  %v4240_v43 = vadd.f32 %v1117_v10, %v4095_v49  ;;  %v1063_v24 = vsel %vm2508_vm1, %v1053_v20, 0.0  ;;  %v5394_v33 = vld [vmem:[#allocation55_spill] sm:$0xff] }
 0x243   :  { %5387 = vst [vmem:[#allocation68_spill] sm:$0xff] %v4226_v54  ;;  %5388 = vst [vmem:[#allocation69_spill] sm:$0xff] %v4228_v19  ;;  %v4243_v6 = vadd.f32 %v1147_v23, %v4098_v15  ;;  %v4246_v14 = vadd.f32 %v1177_v31, %v4103_v29  ;;  %v4249_v60 = vadd.f32 %v1207_v62, %v4106_v48  ;;  %v1064_v15 = vsel %vm2508_vm1, %v1055_v35, 0.0  ;;  %v5392_v29 = vld [vmem:[#allocation53_spill] sm:$0xff]  ;;  %v5395_v23 = vld [vmem:[#allocation56_spill] sm:$0xff] }
 0x244   :  { %5389 = vst [vmem:[#allocation22_spill] sm:$0xff] %v4232_v47  ;;  %5390 = vst [vmem:[#allocation16_spill] sm:$0xff] %v4234_v58  ;;  %v4254_v21 = vadd.f32 %v1237_v50, %v4116_v2  ;;  %v1130_v9 = vmul.f32 %v3872_v4, %v1060_v12  ;;  %v1160_v49 = vmul.f32 %v3875_v59, %v1060_v12  ;;  %v5396_v31 = vld [vmem:[#allocation57_spill] sm:$0xff]  ;;  %v5408_v35 = vld [vmem:[#allocation58_spill] sm:$0xff] }
 0x245   :  { %v1080_v3 = vadd.f32 %v5391_v51, %v1070_v41  ;;  %v1110_v0 = vadd.f32 %v5392_v29, %v1100_v57  ;;  %v1190_v48 = vmul.f32 %v3878_v42, %v1060_v12  ;;  %v1220_v56 = vmul.f32 %v3881_v37, %v1060_v12  ;;  %v5407_v57 = vld [vmem:[#allocation34_spill] sm:$0xff]  ;;  %v5463_v58 = vld [vmem:[#allocation77_spill] sm:$0xff] }
 0x246   :  { %v1085_v2 = vmul.f32 %v5362_v26, %v1063_v24  ;;  %v1115_v4 = vmul.f32 %v5363_v52, %v1063_v24  ;;  %v1145_v59 = vmul.f32 %v5364_v45, %v1063_v24  ;;  %v1175_v20 = vmul.f32 %v5365_v5, %v1063_v24 }
 0x247   :  { %v1205_v42 = vmul.f32 %v5366_v44, %v1063_v24  ;;  %v1235_v37 = vmul.f32 %v5367_v53, %v1063_v24  ;;  %v1086_v32 = vmul.f32 %v5362_v26, %v1064_v15  ;;  %v1116_v34 = vmul.f32 %v5363_v52, %v1064_v15 }
 0x248   :  { %v1140_v38 = vadd.f32 %v5393_v18, %v1130_v9  ;;  %v1170_v7 = vadd.f32 %v5394_v33, %v1160_v49  ;;  %v1146_v10 = vmul.f32 %v5364_v45, %v1064_v15  ;;  %v1176_v12 = vmul.f32 %v5365_v5, %v1064_v15 }
 0x249   :  { %v1200_v26 = vadd.f32 %v5395_v23, %v1190_v48  ;;  %v1230_v52 = vadd.f32 %v5396_v31, %v1220_v56  ;;  %v1206_v62 = vmul.f32 %v5366_v44, %v1064_v15  ;;  %v1236_v36 = vmul.f32 %v5367_v53, %v1064_v15  ;;  %v5412_v15 = vld [vmem:[#allocation60_spill] sm:$0xff]  ;;  %v5415_v56 = vld [vmem:[#allocation63_spill] sm:$0xff] }
 0x24a   :  { %v4301_v45 = vadd.f32 %v1085_v2, %v4191_v61  ;;  %v4304_v5 = vadd.f32 %v1115_v4, %v4198_v39  ;;  %v4307_v50 = vadd.f32 %v1145_v59, %v4201_v55  ;;  %v4310_v41 = vadd.f32 %v1175_v20, %v4206_v8  ;;  %v5416_v59 = vld [vmem:[#allocation31_spill] sm:$0xff]  ;;  %v5417_v20 = vld [vmem:[#allocation70_spill] sm:$0xff] }
 0x24b   :  { %v4316_v44 = vadd.f32 %v1205_v42, %v1199_v1  ;;  %v4318_v53 = vadd.f32 %v1235_v37, %v1229_v46  ;;  %v4320_v61 = vadd.f32 %v1086_v32, %v1080_v3  ;;  %v4322_v39 = vadd.f32 %v1116_v34, %v1110_v0  ;;  %v5409_v1 = vld [vmem:[#allocation59_spill] sm:$0xff]  ;;  %v5413_v3 = vld [vmem:[#allocation61_spill] sm:$0xff]  ;;  %v5414_v0 = vld [vmem:[#allocation62_spill] sm:$0xff] }
 0x24c   :  { %5397 = vst [vmem:[#allocation28_spill] sm:$0xff] %v4301_v45  ;;  %5398 = vst [vmem:[#allocation35_spill] sm:$0xff] %v4304_v5  ;;  %v4324_v55 = vadd.f32 %v1146_v10, %v1140_v38  ;;  %v4326_v8 = vadd.f32 %v1176_v12, %v1170_v7  ;;  %v4330_v24 = vmul.f32 %v5408_v35, %v5407_v57  ;;  %v4357_v4 = vstv %s4264_s13  ;;  %v5419_v32 = vld [vmem:[#allocation73_spill] sm:$0xff]  ;;  %v5421_v38 = vld [vmem:[#allocation78_spill] sm:$0xff] }
 0x24d   :  { %5399 = vst [vmem:[#allocation38_spill] sm:$0xff] %v4307_v50  ;;  %5400 = vst [vmem:[#allocation19_spill] sm:$0xff] %v4310_v41  ;;  %v4334_v9 = vmul.f32 %v5409_v1, %v5407_v57  ;;  %v4336_v46 = vadd.f32 %v1206_v62, %v1200_v26  ;;  %v4338_v49 = vadd.f32 %v1236_v36, %v1230_v52  ;;  %v4364_v37 = vstv %s4266_s0  ;;  %v5423_v10 = vld [vmem:[#allocation79_spill] sm:$0xff]  ;;  %v5425_v26 = vld [vmem:[#allocation80_spill] sm:$0xff] }
 0x24e   :  { %5401 = vst [vmem:[#allocation39_spill] sm:$0xff] %v4316_v44  ;;  %5402 = vst [vmem:[#allocation47_spill] sm:$0xff] %v4318_v53  ;;  %v4342_v51 = vmul.f32 %v5412_v15, %v5407_v57  ;;  %v4346_v29 = vmul.f32 %v5413_v3, %v5407_v57  ;;  %v4350_v48 = vmul.f32 %v5414_v0, %v5407_v57  ;;  %v4371_v18 = vstv %s4272_s14  ;;  %v5427_v62 = vld [vmem:[#allocation81_spill] sm:$0xff]  ;;  %v5431_v41 = vld [vmem:[#allocation25_spill] sm:$0xff] }
 0x24f   :  { %5403 = vst [vmem:[#allocation48_spill] sm:$0xff] %v4320_v61  ;;  %5404 = vst [vmem:[#allocation49_spill] sm:$0xff] %v4322_v39  ;;  %v4354_v2 = vmul.f32 %v5415_v56, %v5407_v57  ;;  %v4361_v42 = vmul.f32 %v5417_v20, %v5416_v59  ;;  %v4368_v34 = vmul.f32 %v5419_v32, %v5416_v59  ;;  %v4378_v7 = vstv %s4274_s15 }
 0x250   :  { %5405 = vst [vmem:[#allocation50_spill] sm:$0xff] %v4324_v55  ;;  %5406 = vst [vmem:[#allocation53_spill] sm:$0xff] %v4326_v8  ;;  %v4375_v33 = vmul.f32 %v5421_v38, %v5416_v59  ;;  %v4382_v12 = vmul.f32 %v5423_v10, %v5416_v59  ;;  %v4385_v23 = vstv %s4280_s16  ;;  %v4389_v31 = vmul.f32 %v5425_v26, %v5416_v59 }
 0x251   :  { %5410 = vst [vmem:[#allocation54_spill] sm:$0xff] %v4336_v46  ;;  %5411 = vst [vmem:[#allocation55_spill] sm:$0xff] %v4338_v49  ;;  %v4392_v52 = vstv %s4282_s17  ;;  %v4396_v36 = vmul.f32 %v5427_v62, %v5416_v59  ;;  %v4399_v57 = vstv %s4288_s5  ;;  %v4402_v46 = vstv %s4290_s3 }
 0x252   :  { %5418 = vst [vmem:[#allocation56_spill] sm:$0xff] %v4361_v42  ;;  %5420 = vst [vmem:[#allocation57_spill] sm:$0xff] %v4368_v34  ;;  %v4405_v39 = vstv %s4296_s18  ;;  %v4408_v49 = vstv %s4298_s2  ;;  %v4411_v53 = vstv %s4312_s19  ;;  %v4414_v44 = vstv %s4314_s20  ;;  %v5478_v34 = vld [vmem:[#allocation90_spill] sm:$0xff] }
 0x253   :  { %5422 = vst [vmem:[#allocation34_spill] sm:$0xff] %v4375_v33  ;;  %5424 = vst [vmem:[#allocation58_spill] sm:$0xff] %v4382_v12  ;;  %v4418_v55 = vmul.f32 %v5408_v35, %v5431_v41  ;;  %v4422_v59 = vmul.f32 %v5409_v1, %v5431_v41  ;;  %v4426_v50 = vmul.f32 %v5412_v15, %v5431_v41  ;;  %v5476_v12 = vld [vmem:[#allocation84_spill] sm:$0xff] }
 0x254   :  { %5426 = vst [vmem:[#allocation59_spill] sm:$0xff] %v4389_v31  ;;  %5428 = vst [vmem:[#allocation60_spill] sm:$0xff] %v4396_v36  ;;  %v4430_v5 = vmul.f32 %v5413_v3, %v5431_v41  ;;  %v4434_v17 = vmul.f32 %v5414_v0, %v5431_v41  ;;  %v4438_v45 = vmul.f32 %v5415_v56, %v5431_v41 }
 0x255   :  { %5429 = vst [vmem:[#allocation61_spill] sm:$0xff] %v4411_v53  ;;  %5430 = vst [vmem:[#allocation62_spill] sm:$0xff] %v4414_v44  ;;  %v4442_v8 = vmul.f32 %v5408_v35, %v5438_v30  ;;  %v4446_v61 = vmul.f32 %v5409_v1, %v5438_v30  ;;  %v4458_v41 = vmul.f32 %v5414_v0, %v5438_v30  ;;  %v5473_v44 = vld [vmem:[#allocation89_spill] sm:$0xff] }
 0x256   :  { %5432 = vst [vmem:[#allocation63_spill] sm:$0xff] %v4418_v55  ;;  %5433 = vst [vmem:[#allocation31_spill] sm:$0xff] %v4422_v59  ;;  %v4462_v35 = vmul.f32 %v5415_v56, %v5438_v30 }
 0x257   :  { %5434 = vst [vmem:[#allocation70_spill] sm:$0xff] %v4426_v50  ;;  %5435 = vst [vmem:[#allocation73_spill] sm:$0xff] %v4430_v5  ;;  %v4450_v50 = vmul.f32 %v5412_v15, %v5438_v30  ;;  %v4454_v5 = vmul.f32 %v5413_v3, %v5438_v30 }
 0x258   :  { %5436 = vst [vmem:[#allocation78_spill] sm:$0xff] %v4434_v17  ;;  %5437 = vst [vmem:[#allocation79_spill] sm:$0xff] %v4438_v45  ;;  %v5461_v45 = vld [vmem:[#allocation75_spill] sm:$0xff]  ;;  %v5462_v17 = vld [vmem:[#allocation76_spill] sm:$0xff] }
 0x259   :  { %5439 = vst [vmem:[#allocation80_spill] sm:$0xff] %v4442_v8  ;;  %5440 = vst [vmem:[#allocation81_spill] sm:$0xff] %v4446_v61  ;;  %v5445_v8 = vld [vmem:[#allocation29_spill] sm:$0xff] }
 0x25a   :  { %5441 = vst [vmem:[#allocation25_spill] sm:$0xff] %v4450_v50  ;;  %5442 = vst [vmem:[#allocation20_spill] sm:$0xff] %v4454_v5  ;;  %v4466_v1 = vmul.f32 %v5417_v20, %v5445_v8  ;;  %v4470_v15 = vmul.f32 %v5419_v32, %v5445_v8  ;;  %v4474_v3 = vmul.f32 %v5421_v38, %v5445_v8  ;;  %v5459_v5 = vld [vmem:[#allocation72_spill] sm:$0xff] }
 0x25b   :  { %5443 = vst [vmem:[#allocation102_spill] sm:$0xff] %v4458_v41  ;;  %5444 = vst [vmem:[#allocation103_spill] sm:$0xff] %v4462_v35  ;;  %v4478_v0 = vmul.f32 %v5423_v10, %v5445_v8  ;;  %v657_v41 = vpop.permute.xlu1 %656  ;;  %v4482_v30 = vmul.f32 %v5425_v26, %v5445_v8  ;;  %v4486_v56 = vmul.f32 %v5427_v62, %v5445_v8 }
 0x25c   :  { %5446 = vst [vmem:[#allocation29_spill] sm:$0xff] %v4466_v1  ;;  %5447 = vst [vmem:[#allocation104_spill] sm:$0xff] %v4470_v15  ;;  %v5452_v1 = vld [vmem:[#allocation17_spill] sm:$0xff] }
 0x25d   :  { %5448 = vst [vmem:[#allocation105_spill] sm:$0xff] %v4474_v3  ;;  %5449 = vst [vmem:[#allocation106_spill] sm:$0xff] %v4478_v0  ;;  %v4490_v15 = vmul.f32 %v5417_v20, %v5452_v1  ;;  %v4494_v3 = vmul.f32 %v5419_v32, %v5452_v1  ;;  %v669_v0 = vsel %vm2504_vm0, %v657_v41, 0.0  ;;  %v4500_v35 = vmul.f32 %v5421_v38, %v5452_v1 }
 0x25e   :  { %5450 = vst [vmem:[#allocation107_spill] sm:$0xff] %v4482_v30  ;;  %5451 = vst [vmem:[#allocation108_spill] sm:$0xff] %v4486_v56  ;;  %v4504_v30 = vmul.f32 %v5423_v10, %v5452_v1  ;;  %v4508_v8 = vmul.f32 %v5425_v26, %v5452_v1  ;;  %v709_v50 = vmul.f32 %v5459_v5, %v669_v0 }
 0x25f   :  { %5453 = vst [vmem:[#allocation17_spill] sm:$0xff] %v4490_v15  ;;  %5454 = vst [vmem:[#allocation109_spill] sm:$0xff] %v4494_v3  ;;  %v5458_v15 = vld [vmem:[#allocation71_spill] sm:$0xff]  ;;  %v5460_v3 = vld [vmem:[#allocation74_spill] sm:$0xff]  ;;  %v769_v41 = vmul.f32 %v5461_v45, %v669_v0  ;;  %v799_v59 = vmul.f32 %v5462_v17, %v669_v0  ;;  %v4518_v47 = vmul.f32 %v5427_v62, %v5452_v1  ;;  %v665_v54 = vpop.permute.xlu1 %664 }
 0x260   :  { %5455 = vst [vmem:[#allocation110_spill] sm:$0xff] %v4500_v35  ;;  %5456 = vst [vmem:[#allocation111_spill] sm:$0xff] %v4504_v30  ;;  %v679_v56 = vmul.f32 %v5458_v15, %v669_v0  ;;  %v739_v61 = vmul.f32 %v5460_v3, %v669_v0  ;;  %v829_v35 = vmul.f32 %v5463_v58, %v669_v0  ;;  %v5465_v30 = vld [vmem:[#allocation24_spill] sm:$0xff] }
 0x261   :  { %5457 = vst [vmem:[#allocation112_spill] sm:$0xff] %v4508_v8  ;;  %5464 = vst [vmem:[#allocation71_spill] sm:$0xff] %v4518_v47  ;;  %v4522_v55 = vmul.f32 %v5417_v20, %v5465_v30  ;;  %v5467_v8 = vld [vmem:[#allocation85_spill] sm:$0xff]  ;;  %v4531_v22 = vmul.f32 %v5419_v32, %v5465_v30  ;;  %v4535_v0 = vmul.f32 %v5421_v38, %v5465_v30  ;;  %v5471_v20 = vld [vmem:[#allocation86_spill] sm:$0xff] }
 0x262   :  { %v689_v19 = vadd.f32 %v5467_v8, %v679_v56  ;;  %v4539_v1 = vmul.f32 %v5423_v10, %v5465_v30  ;;  %v5472_v47 = vld [vmem:[#allocation87_spill] sm:$0xff]  ;;  %v779_v36 = vadd.f32 %v5473_v44, %v769_v41  ;;  %v673_v56 = vsel %vm2508_vm1, %v665_v54, 0.0  ;;  %v5474_v8 = vld [vmem:[#allocation82_spill] sm:$0xff] }
 0x263   :  { %5466 = vst [vmem:[#allocation72_spill] sm:$0xff] %v4522_v55  ;;  %5468 = vst [vmem:[#allocation74_spill] sm:$0xff] %v4531_v22  ;;  %v719_v55 = vadd.f32 %v5471_v20, %v709_v50  ;;  %v749_v25 = vadd.f32 %v5472_v47, %v739_v61  ;;  %v695_v32 = vmul.f32 %v5474_v8, %v673_v56  ;;  %v5475_v22 = vld [vmem:[#allocation83_spill] sm:$0xff]  ;;  %v5480_v50 = vld [vmem:[#allocation92_spill] sm:$0xff] }
 0x264   :  { %5469 = vst [vmem:[#allocation75_spill] sm:$0xff] %v4535_v0  ;;  %5470 = vst [vmem:[#allocation76_spill] sm:$0xff] %v4539_v1  ;;  %v725_v31 = vmul.f32 %v5475_v22, %v673_v56  ;;  %v755_v38 = vmul.f32 %v5476_v12, %v673_v56  ;;  %v5477_v0 = vld [vmem:[#allocation88_spill] sm:$0xff]  ;;  %v809_v10 = vadd.f32 %v5478_v34, %v799_v59  ;;  %v5479_v1 = vld [vmem:[#allocation91_spill] sm:$0xff] }
 0x265   :  { %v785_v33 = vmul.f32 %v5477_v0, %v673_v56  ;;  %v839_v42 = vadd.f32 %v5479_v1, %v829_v35  ;;  %v815_v20 = vmul.f32 %v5480_v50, %v673_v56  ;;  %v5481_v47 = vld [vmem:[#allocation93_spill] sm:$0xff]  ;;  %v699_v44 = vadd.f32 %v695_v32, %v689_v19  ;;  %v5482_v35 = vld [vmem:[#allocation94_spill] sm:$0xff] }
 0x266   :  { %v845_v61 = vmul.f32 %v5481_v47, %v673_v56  ;;  %v729_v54 = vadd.f32 %v725_v31, %v719_v55  ;;  %v759_v41 = vadd.f32 %v755_v38, %v749_v25  ;;  %v4556_v12 = vmul.f32 %v5425_v26, %v5465_v30  ;;  %v655_v31 = vpop.permute.xlu0 %654 }
 0x267   :  { %v789_v8 = vadd.f32 %v785_v33, %v779_v36  ;;  %v819_v53 = vadd.f32 %v815_v20, %v809_v10  ;;  %v4560_v34 = vmul.f32 %v5427_v62, %v5465_v30  ;;  %v703_v59 = vadd.f32 %v699_v44, %v4050_v63  ;;  %v5483_v33 = vld [vmem:[#allocation96_spill] sm:$0xff]  ;;  %v1325_v20 = vpop.permute.xlu1 %1324 }
 0x268   :  { %v849_v22 = vadd.f32 %v845_v61, %v839_v42  ;;  %v733_v1 = vadd.f32 %v729_v54, %v5482_v35  ;;  %v763_v19 = vadd.f32 %v759_v41, %v4060_v27  ;;  %v4569_v36 = vstv %s4524_s21 }
 0x269   :  { %v793_v55 = vadd.f32 %v789_v8, %v4062_v40  ;;  %v823_v25 = vadd.f32 %v819_v53, %v4064_v28  ;;  %5484 = vst [vmem:[#allocation77_spill] sm:$0xff] %v4569_v36  ;;  %v4572_v26 = vstv %s4526_s22  ;;  %v668_v62 = vsel %vm2504_vm0, %v655_v31, 0.0 }
 0x26a   :  { %v853_v42 = vadd.f32 %v849_v22, %v5483_v33  ;;  %5485 = vst [vmem:[#allocation24_spill] sm:$0xff] %v4572_v26  ;;  %v1095_v63 = vadd.f32 %v4237_v16, %v703_v59  ;;  %v1155_v30 = vadd.f32 %v4243_v6, %v763_v19  ;;  %v678_v40 = vmul.f32 %v5458_v15, %v668_v62  ;;  %v1317_v54 = vpop.permute.xlu0 %1316  ;;  %v5488_v19 = vld [vmem:[#allocation61_spill] sm:$0xff]  ;;  %v5495_v26 = vld [vmem:[#allocation62_spill] sm:$0xff] }
 0x26b   :  { %v1185_v27 = vadd.f32 %v4246_v14, %v793_v55  ;;  %v708_v28 = vmul.f32 %v5459_v5, %v668_v62  ;;  %v738_v22 = vmul.f32 %v5460_v3, %v668_v62  ;;  %v768_v53 = vmul.f32 %v5461_v45, %v668_v62  ;;  %v5550_v11 = vld [vmem:[#allocation74_spill] sm:$0xff] }
 0x26c   :  { %v798_v56 = vmul.f32 %v5462_v17, %v668_v62  ;;  %v828_v8 = vmul.f32 %v5463_v58, %v668_v62  ;;  %v1245_v32 = vadd.f32 %v4254_v21, %v853_v42  ;;  %v4587_v16 = vadd.f32 %v4240_v43, %v733_v1  ;;  %v5490_v42 = vld [vmem:[#allocation57_spill] sm:$0xff]  ;;  %v5491_v62 = vld [vmem:[#allocation34_spill] sm:$0xff] }
 0x26d   :  { %v688_v6 = vadd.f32 %v4330_v24, %v678_v40  ;;  %v718_v14 = vadd.f32 %v4334_v9, %v708_v28  ;;  %v748_v38 = vadd.f32 %v4342_v51, %v738_v22  ;;  %v778_v10 = vadd.f32 %v4346_v29, %v768_v53  ;;  %v5492_v28 = vld [vmem:[#allocation58_spill] sm:$0xff] }
 0x26e   :  { %5486 = vst [vmem:[#allocation85_spill] sm:$0xff] %v4587_v16  ;;  %v808_v61 = vadd.f32 %v4350_v48, %v798_v56  ;;  %v838_v44 = vadd.f32 %v4354_v2, %v828_v8  ;;  %v1333_v21 = vsel %vm2508_vm1, %v1325_v20, 0.0  ;;  %v4598_v43 = vadd.f32 %v4249_v60, %v823_v25  ;;  %v5489_v25 = vld [vmem:[#allocation56_spill] sm:$0xff]  ;;  %v663_v53 = vpop.permute.xlu0 %662  ;;  %v5493_v56 = vld [vmem:[#allocation59_spill] sm:$0xff] }
 0x26f   :  { %v1329_v24 = vsel %vm2504_vm0, %v1317_v54, 0.0  ;;  %v1355_v9 = vmul.f32 %v4399_v57, %v1333_v21  ;;  %v1385_v51 = vmul.f32 %v4402_v46, %v1333_v21  ;;  %v1415_v29 = vmul.f32 %v4405_v39, %v1333_v21  ;;  %v5494_v20 = vld [vmem:[#allocation60_spill] sm:$0xff] }
 0x270   :  { %5487 = vst [vmem:[#allocation86_spill] sm:$0xff] %v4598_v43  ;;  %v1339_v48 = vmul.f32 %v4357_v4, %v1329_v24  ;;  %v1369_v2 = vmul.f32 %v4364_v37, %v1329_v24  ;;  %v1399_v41 = vmul.f32 %v4371_v18, %v1329_v24  ;;  %v1429_v59 = vmul.f32 %v4378_v7, %v1329_v24 }
 0x271   :  { %v1459_v60 = vmul.f32 %v4385_v23, %v1329_v24  ;;  %v1489_v35 = vmul.f32 %v4392_v52, %v1329_v24  ;;  %v1445_v1 = vmul.f32 %v4408_v49, %v1333_v21  ;;  %v1475_v55 = vmul.f32 %v5488_v19, %v1333_v21 }
 0x272   :  { %v1349_v33 = vadd.f32 %v5489_v25, %v1339_v48  ;;  %v1379_v31 = vadd.f32 %v5490_v42, %v1369_v2  ;;  %v1409_v40 = vadd.f32 %v5491_v62, %v1399_v41  ;;  %v1439_v22 = vadd.f32 %v5492_v28, %v1429_v59  ;;  %v653_v2 = vpop.permute.xlu1 %652  ;;  %v5498_v59 = vld [vmem:[#allocation82_spill] sm:$0xff]  ;;  %v5499_v28 = vld [vmem:[#allocation83_spill] sm:$0xff] }
 0x273   :  { %v1469_v8 = vadd.f32 %v5493_v56, %v1459_v60  ;;  %v1499_v54 = vadd.f32 %v5494_v20, %v1489_v35  ;;  %v1505_v43 = vmul.f32 %v5495_v26, %v1333_v21  ;;  %v672_v24 = vsel %vm2508_vm1, %v663_v53, 0.0  ;;  %v5502_v53 = vld [vmem:[#allocation84_spill] sm:$0xff] }
 0x274   :  { %v1359_v16 = vadd.f32 %v1355_v9, %v1349_v33  ;;  %v4622_v36 = vadd.f32 %v1385_v51, %v1379_v31  ;;  %v1419_v48 = vadd.f32 %v1415_v29, %v1409_v40  ;;  %v1449_v25 = vadd.f32 %v1445_v1, %v1439_v22 }
 0x275   :  { %v4624_v42 = vadd.f32 %v1475_v55, %v1469_v8  ;;  %v1509_v41 = vadd.f32 %v1505_v43, %v1499_v54  ;;  %v694_v62 = vmul.f32 %v5498_v59, %v672_v24  ;;  %v724_v60 = vmul.f32 %v5499_v28, %v672_v24  ;;  %v651_v54 = vpop.permute.xlu0 %650 }
 0x276   :  { %5496 = vst [vmem:[#allocation87_spill] sm:$0xff] %v4622_v36  ;;  %v4628_v56 = vadd.f32 %v1359_v16, %v1095_v63  ;;  %v4630_v35 = vadd.f32 %v1419_v48, %v1155_v30  ;;  %v4632_v21 = vadd.f32 %v1449_v25, %v1185_v27  ;;  %v754_v9 = vmul.f32 %v5502_v53, %v672_v24  ;;  %v5504_v30 = vld [vmem:[#allocation66_spill] sm:$0xff]  ;;  %v5505_v27 = vld [vmem:[#allocation67_spill] sm:$0xff]  ;;  %v5508_v48 = vld [vmem:[#allocation69_spill] sm:$0xff] }
 0x277   :  { %5497 = vst [vmem:[#allocation89_spill] sm:$0xff] %v4624_v42  ;;  %v4635_v51 = vadd.f32 %v1509_v41, %v1245_v32  ;;  %v698_v29 = vadd.f32 %v694_v62, %v688_v6  ;;  %v728_v1 = vadd.f32 %v724_v60, %v718_v14  ;;  %v784_v55 = vmul.f32 %v5477_v0, %v672_v24  ;;  %v5507_v14 = vld [vmem:[#allocation68_spill] sm:$0xff]  ;;  %v5510_v60 = vld [vmem:[#allocation22_spill] sm:$0xff] }
 0x278   :  { %5500 = vst [vmem:[#allocation88_spill] sm:$0xff] %v4630_v35  ;;  %5501 = vst [vmem:[#allocation90_spill] sm:$0xff] %v4632_v21  ;;  %v758_v33 = vadd.f32 %v754_v9, %v748_v38  ;;  %v814_v43 = vmul.f32 %v5480_v50, %v672_v24  ;;  %v844_v31 = vmul.f32 %v5481_v47, %v672_v24  ;;  %v667_v63 = vsel %vm2504_vm0, %v653_v2, 0.0  ;;  %v661_v24 = vpop.permute.xlu1 %660  ;;  %v5509_v2 = vld [vmem:[#allocation63_spill] sm:$0xff] }
 0x279   :  { %5503 = vst [vmem:[#allocation91_spill] sm:$0xff] %v4635_v51  ;;  %v4643_v16 = vadd.f32 %v698_v29, %v5504_v30  ;;  %v4646_v40 = vadd.f32 %v728_v1, %v5505_v27  ;;  %v788_v32 = vadd.f32 %v784_v55, %v778_v10  ;;  %v677_v6 = vmul.f32 %v5458_v15, %v667_v63  ;;  %v5512_v29 = vld [vmem:[#allocation16_spill] sm:$0xff] }
 0x27a   :  { %v4650_v22 = vadd.f32 %v758_v33, %v5507_v14  ;;  %v818_v38 = vadd.f32 %v814_v43, %v808_v61  ;;  %v848_v8 = vadd.f32 %v844_v31, %v838_v44  ;;  %v707_v20 = vmul.f32 %v5459_v5, %v667_v63  ;;  %v5514_v61 = vld [vmem:[#allocation31_spill] sm:$0xff]  ;;  %v5515_v33 = vld [vmem:[#allocation70_spill] sm:$0xff]  ;;  %v5516_v31 = vld [vmem:[#allocation73_spill] sm:$0xff] }
 0x27b   :  { %5506 = vst [vmem:[#allocation92_spill] sm:$0xff] %v4646_v40  ;;  %v4654_v25 = vadd.f32 %v788_v32, %v5508_v48  ;;  %v687_v41 = vadd.f32 %v5509_v2, %v677_v6  ;;  %v737_v62 = vmul.f32 %v5460_v3, %v667_v63  ;;  %v767_v10 = vmul.f32 %v5461_v45, %v667_v63  ;;  %v5517_v6 = vld [vmem:[#allocation78_spill] sm:$0xff]  ;;  %v5546_v40 = vld [vmem:[#allocation111_spill] sm:$0xff] }
 0x27c   :  { %v4660_v9 = vadd.f32 %v818_v38, %v5510_v60  ;;  %v4663_v1 = vadd.f32 %v848_v8, %v5512_v29  ;;  %v717_v44 = vadd.f32 %v5514_v61, %v707_v20  ;;  %v797_v55 = vmul.f32 %v5462_v17, %v667_v63  ;;  %v5518_v20 = vld [vmem:[#allocation79_spill] sm:$0xff]  ;;  %v5520_v61 = vld [vmem:[#allocation81_spill] sm:$0xff] }
 0x27d   :  { %v747_v43 = vadd.f32 %v5515_v33, %v737_v62  ;;  %v777_v30 = vadd.f32 %v5516_v31, %v767_v10  ;;  %v827_v27 = vmul.f32 %v5463_v58, %v667_v63  ;;  %v666_v32 = vsel %vm2504_vm0, %v651_v54, 0.0  ;;  %v5519_v63 = vld [vmem:[#allocation80_spill] sm:$0xff]  ;;  %v5521_v33 = vld [vmem:[#allocation25_spill] sm:$0xff]  ;;  %v1313_v31 = vpop.permute.xlu1 %1312 }
 0x27e   :  { %5511 = vst [vmem:[#allocation93_spill] sm:$0xff] %v4660_v9  ;;  %5513 = vst [vmem:[#allocation94_spill] sm:$0xff] %v4663_v1  ;;  %v807_v14 = vadd.f32 %v5517_v6, %v797_v55  ;;  %v676_v38 = vmul.f32 %v5458_v15, %v666_v32  ;;  %v706_v8 = vmul.f32 %v5459_v5, %v666_v32  ;;  %v671_v15 = vsel %vm2508_vm1, %v661_v24, 0.0  ;;  %v659_v5 = vpop.permute.xlu0 %658 }
 0x27f   :  { %v736_v48 = vmul.f32 %v5460_v3, %v666_v32  ;;  %v837_v2 = vadd.f32 %v5518_v20, %v827_v27  ;;  %v766_v60 = vmul.f32 %v5461_v45, %v666_v32  ;;  %v796_v62 = vmul.f32 %v5462_v17, %v666_v32  ;;  %v5522_v3 = vld [vmem:[#allocation20_spill] sm:$0xff]  ;;  %v5523_v27 = vld [vmem:[#allocation102_spill] sm:$0xff]  ;;  %v5524_v45 = vld [vmem:[#allocation103_spill] sm:$0xff] }
 0x280   :  { %v826_v10 = vmul.f32 %v5463_v58, %v666_v32  ;;  %v686_v29 = vadd.f32 %v5519_v63, %v676_v38  ;;  %v716_v54 = vadd.f32 %v5520_v61, %v706_v8  ;;  %v693_v17 = vmul.f32 %v5498_v59, %v671_v15 }
 0x281   :  { %v746_v55 = vadd.f32 %v5521_v33, %v736_v48  ;;  %v776_v6 = vadd.f32 %v5522_v3, %v766_v60  ;;  %v806_v20 = vadd.f32 %v5523_v27, %v796_v62  ;;  %v723_v58 = vmul.f32 %v5499_v28, %v671_v15  ;;  %v5525_v3 = vld [vmem:[#allocation23_spill] sm:$0xff] }
 0x282   :  { %v836_v51 = vadd.f32 %v5524_v45, %v826_v10  ;;  %v753_v32 = vmul.f32 %v5502_v53, %v671_v15  ;;  %v783_v38 = vmul.f32 %v5477_v0, %v671_v15  ;;  %v813_v8 = vmul.f32 %v5480_v50, %v671_v15 }
 0x283   :  { %v697_v48 = vadd.f32 %v693_v17, %v687_v41  ;;  %v843_v24 = vmul.f32 %v5481_v47, %v671_v15  ;;  %v670_v60 = vsel %vm2508_vm1, %v659_v5, 0.0  ;;  %v1327_v62 = vsel %vm2504_vm0, %v1313_v31, 0.0  ;;  %v5526_v17 = vld [vmem:[#allocation27_spill] sm:$0xff]  ;;  %v5527_v5 = vld [vmem:[#allocation32_spill] sm:$0xff] }
 0x284   :  { %v4698_v10 = vadd.f32 %v723_v58, %v717_v44  ;;  %v757_v63 = vadd.f32 %v753_v32, %v747_v43  ;;  %v787_v61 = vadd.f32 %v783_v38, %v777_v30  ;;  %v4700_v33 = vadd.f32 %v813_v8, %v807_v14  ;;  %v5528_v30 = vld [vmem:[#allocation33_spill] sm:$0xff] }
 0x285   :  { %v4703_v27 = vadd.f32 %v697_v48, %v5525_v3  ;;  %v847_v45 = vadd.f32 %v843_v24, %v837_v2  ;;  %v692_v41 = vmul.f32 %v5498_v59, %v670_v60  ;;  %v722_v15 = vmul.f32 %v5499_v28, %v670_v60  ;;  %v1319_v2 = vpop.permute.xlu0 %1318  ;;  %v5530_v48 = vld [vmem:[#allocation95_spill] sm:$0xff]  ;;  %v5534_v3 = vld [vmem:[#allocation104_spill] sm:$0xff] }
 0x286   :  { %v4708_v42 = vadd.f32 %v757_v63, %v5526_v17  ;;  %v4711_v9 = vadd.f32 %v787_v61, %v5527_v5  ;;  %v752_v44 = vmul.f32 %v5502_v53, %v670_v60  ;;  %v782_v43 = vmul.f32 %v5477_v0, %v670_v60  ;;  %v5531_v63 = vld [vmem:[#allocation98_spill] sm:$0xff]  ;;  %v5536_v5 = vld [vmem:[#allocation101_spill] sm:$0xff] }
 0x287   :  { %v4716_v14 = vadd.f32 %v847_v45, %v5528_v30  ;;  %v696_v31 = vadd.f32 %v692_v41, %v686_v29  ;;  %v4718_v58 = vadd.f32 %v722_v15, %v716_v54  ;;  %v812_v59 = vmul.f32 %v5480_v50, %v670_v60  ;;  %v1311_v54 = vpop.permute.xlu1 %1310  ;;  %v5532_v50 = vld [vmem:[#allocation99_spill] sm:$0xff]  ;;  %v5535_v41 = vld [vmem:[#allocation105_spill] sm:$0xff] }
 0x288   :  { %v756_v28 = vadd.f32 %v752_v44, %v746_v55  ;;  %v786_v32 = vadd.f32 %v782_v43, %v776_v6  ;;  %v842_v38 = vmul.f32 %v5481_v47, %v670_v60  ;;  %v1337_v8 = vmul.f32 %v4357_v4, %v1327_v62  ;;  %v5533_v47 = vld [vmem:[#allocation29_spill] sm:$0xff] }
 0x289   :  { %5529 = vst [vmem:[#allocation96_spill] sm:$0xff] %v4716_v14  ;;  %v4724_v24 = vadd.f32 %v696_v31, %v5530_v48  ;;  %v4726_v53 = vadd.f32 %v812_v59, %v806_v20  ;;  %v1367_v0 = vmul.f32 %v4364_v37, %v1327_v62  ;;  %v1397_v29 = vmul.f32 %v4371_v18, %v1327_v62  ;;  %v5537_v31 = vld [vmem:[#allocation106_spill] sm:$0xff]  ;;  %v1321_v48 = vpop.permute.xlu0 %1320 }
 0x28a   :  { %v4731_v61 = vadd.f32 %v756_v28, %v5531_v63  ;;  %v4734_v55 = vadd.f32 %v786_v32, %v5532_v50  ;;  %v846_v6 = vadd.f32 %v842_v38, %v836_v51  ;;  %v1347_v60 = vadd.f32 %v5533_v47, %v1337_v8  ;;  %v5538_v28 = vld [vmem:[#allocation107_spill] sm:$0xff] }
 0x28b   :  { %v4738_v45 = vadd.f32 %v5534_v3, %v1367_v0  ;;  %v1407_v20 = vadd.f32 %v5535_v41, %v1397_v29  ;;  %v1427_v15 = vmul.f32 %v4378_v7, %v1327_v62  ;;  %v1457_v17 = vmul.f32 %v4385_v23, %v1327_v62  ;;  %v5540_v0 = vld [vmem:[#allocation108_spill] sm:$0xff] }
 0x28c   :  { %v4744_v44 = vadd.f32 %v846_v6, %v5536_v5  ;;  %v1487_v43 = vmul.f32 %v4392_v52, %v1327_v62  ;;  %v1330_v30 = vsel %vm2508_vm1, %v1319_v2, 0.0  ;;  %v1326_v51 = vsel %vm2504_vm0, %v1311_v54, 0.0  ;;  %v1315_v5 = vpop.permute.xlu1 %1314 }
 0x28d   :  { %v1437_v59 = vadd.f32 %v5537_v31, %v1427_v15  ;;  %v4753_v32 = vadd.f32 %v5538_v28, %v1457_v17  ;;  %v1352_v38 = vmul.f32 %v4399_v57, %v1330_v30  ;;  %v4757_v8 = vmul.f32 %v4402_v46, %v1330_v30 }
 0x28e   :  { %v1497_v29 = vadd.f32 %v5540_v0, %v1487_v43  ;;  %v4761_v62 = vmul.f32 %v4405_v39, %v1330_v30  ;;  %v1442_v2 = vmul.f32 %v4408_v49, %v1330_v30  ;;  %v4765_v54 = vmul.f32 %v5488_v19, %v1330_v30  ;;  %v5543_v43 = vld [vmem:[#allocation17_spill] sm:$0xff] }
 0x28f   :  { %5539 = vst [vmem:[#allocation61_spill] sm:$0xff] %v4753_v32  ;;  %v4768_v63 = vmul.f32 %v5495_v26, %v1330_v30  ;;  %v1336_v50 = vmul.f32 %v4357_v4, %v1326_v51  ;;  %v1366_v6 = vmul.f32 %v4364_v37, %v1326_v51  ;;  %v1396_v47 = vmul.f32 %v4371_v18, %v1326_v51  ;;  %v5544_v30 = vld [vmem:[#allocation109_spill] sm:$0xff]  ;;  %v5545_v0 = vld [vmem:[#allocation110_spill] sm:$0xff] }
 0x290   :  { %5541 = vst [vmem:[#allocation56_spill] sm:$0xff] %v4765_v54  ;;  %v1426_v3 = vmul.f32 %v4378_v7, %v1326_v51  ;;  %v1456_v41 = vmul.f32 %v4385_v23, %v1326_v51  ;;  %v1486_v15 = vmul.f32 %v4392_v52, %v1326_v51  ;;  %v1331_v17 = vsel %vm2508_vm1, %v1321_v48, 0.0  ;;  %v5548_v54 = vld [vmem:[#allocation71_spill] sm:$0xff] }
 0x291   :  { %5542 = vst [vmem:[#allocation57_spill] sm:$0xff] %v4768_v63  ;;  %v1346_v31 = vadd.f32 %v5543_v43, %v1336_v50  ;;  %v1376_v28 = vadd.f32 %v5544_v30, %v1366_v6  ;;  %v1406_v35 = vadd.f32 %v5545_v0, %v1396_v47  ;;  %v1353_v36 = vmul.f32 %v4399_v57, %v1331_v17  ;;  %v5547_v63 = vld [vmem:[#allocation112_spill] sm:$0xff]  ;;  %v5552_v30 = vld [vmem:[#allocation75_spill] sm:$0xff] }
 0x292   :  { %v1436_v21 = vadd.f32 %v5546_v40, %v1426_v3  ;;  %v4784_v32 = vadd.f32 %v5547_v63, %v1456_v41  ;;  %v4787_v1 = vadd.f32 %v5548_v54, %v1486_v15  ;;  %v1383_v51 = vmul.f32 %v4402_v46, %v1331_v17  ;;  %v1323_v15 = vpop.permute.xlu1 %1322 }
 0x293   :  { %v1356_v48 = vadd.f32 %v1352_v38, %v1346_v31  ;;  %v1357_v14 = vadd.f32 %v1353_v36, %v1347_v60  ;;  %v1413_v50 = vmul.f32 %v4405_v39, %v1331_v17  ;;  %v1443_v6 = vmul.f32 %v4408_v49, %v1331_v17 }
 0x294   :  { %v4792_v43 = vadd.f32 %v1442_v2, %v1436_v21  ;;  %v4795_v47 = vmul.f32 %v5488_v19, %v1331_v17  ;;  %v1503_v40 = vmul.f32 %v5495_v26, %v1331_v17  ;;  %v1328_v63 = vsel %vm2504_vm0, %v1315_v5, 0.0  ;;  %v5549_v17 = vld [vmem:[#allocation72_spill] sm:$0xff] }
 0x295   :  { %v1417_v54 = vadd.f32 %v1413_v50, %v1407_v20  ;;  %v4800_v3 = vadd.f32 %v1443_v6, %v1437_v59  ;;  %v1338_v38 = vmul.f32 %v4357_v4, %v1328_v63  ;;  %v1368_v36 = vmul.f32 %v4364_v37, %v1328_v63  ;;  %v5551_v59 = vld [vmem:[#allocation48_spill] sm:$0xff] }
 0x296   :  { %v4804_v60 = vadd.f32 %v1503_v40, %v1497_v29  ;;  %v1398_v21 = vmul.f32 %v4371_v18, %v1328_v63  ;;  %v1428_v2 = vmul.f32 %v4378_v7, %v1328_v63  ;;  %v1458_v41 = vmul.f32 %v4385_v23, %v1328_v63  ;;  %v5553_v29 = vld [vmem:[#allocation76_spill] sm:$0xff]  ;;  %v5554_v7 = vld [vmem:[#allocation53_spill] sm:$0xff] }
 0x297   :  { %v1348_v31 = vadd.f32 %v5549_v17, %v1338_v38  ;;  %v1378_v5 = vadd.f32 %v5550_v11, %v1368_v36  ;;  %v1488_v20 = vmul.f32 %v4392_v52, %v1328_v63  ;;  %v1094_v4 = vadd.f32 %v5551_v59, %v4643_v16  ;;  %v5555_v40 = vld [vmem:[#allocation97_spill] sm:$0xff]  ;;  %v5556_v63 = vld [vmem:[#allocation30_spill] sm:$0xff]  ;;  %v5559_v11 = vld [vmem:[#allocation37_spill] sm:$0xff] }
 0x298   :  { %v1408_v37 = vadd.f32 %v5552_v30, %v1398_v21  ;;  %v1438_v0 = vadd.f32 %v5553_v29, %v1428_v2  ;;  %v1468_v18 = vadd.f32 %v4556_v12, %v1458_v41  ;;  %v1184_v50 = vadd.f32 %v5554_v7, %v4654_v25 }
 0x299   :  { %v1498_v23 = vadd.f32 %v4560_v34, %v1488_v20  ;;  %v1332_v6 = vsel %vm2508_vm1, %v1323_v15, 0.0  ;;  %v730_v52 = vadd.f32 %v4718_v58, %v5555_v40  ;;  %v731_v16 = vadd.f32 %v4698_v10, %v5556_v63  ;;  %v5558_v58 = vld [vmem:[#allocation28_spill] sm:$0xff]  ;;  %v5560_v20 = vld [vmem:[#allocation35_spill] sm:$0xff] }
 0x29a   :  { %v1354_v38 = vmul.f32 %v4399_v57, %v1332_v6  ;;  %v1384_v36 = vmul.f32 %v4402_v46, %v1332_v6  ;;  %v1414_v12 = vmul.f32 %v4405_v39, %v1332_v6  ;;  %v1444_v21 = vmul.f32 %v4408_v49, %v1332_v6  ;;  %v5564_v63 = vld [vmem:[#allocation100_spill] sm:$0xff] }
 0x29b   :  { %v1474_v25 = vmul.f32 %v5488_v19, %v1332_v6  ;;  %v1504_v34 = vmul.f32 %v5495_v26, %v1332_v6  ;;  %v1092_v2 = vadd.f32 %v5557_v13, %v4724_v24  ;;  %v1093_v41 = vadd.f32 %v5558_v58, %v4703_v27  ;;  %v5561_v24 = vld [vmem:[#allocation26_spill] sm:$0xff] }
 0x29c   :  { %v1358_v15 = vadd.f32 %v1354_v38, %v1348_v31  ;;  %v4836_v10 = vadd.f32 %v1384_v36, %v1378_v5  ;;  %v1418_v57 = vadd.f32 %v1414_v12, %v1408_v37  ;;  %v1448_v17 = vadd.f32 %v1444_v21, %v1438_v0  ;;  %v5562_v27 = vld [vmem:[#allocation38_spill] sm:$0xff]  ;;  %v5563_v5 = vld [vmem:[#allocation50_spill] sm:$0xff]  ;;  %v5567_v36 = vld [vmem:[#allocation21_spill] sm:$0xff] }
 0x29d   :  { %v4838_v46 = vadd.f32 %v1474_v25, %v1468_v18  ;;  %v1508_v39 = vadd.f32 %v1504_v34, %v1498_v23  ;;  %v1122_v49 = vadd.f32 %v5559_v11, %v730_v52  ;;  %v1123_v19 = vadd.f32 %v5560_v20, %v731_v16  ;;  %v5572_v11 = vld [vmem:[#allocation96_spill] sm:$0xff] }
 0x29e   :  { %v4842_v59 = vadd.f32 %v1358_v15, %v1094_v4  ;;  %v4844_v26 = vadd.f32 %v1448_v17, %v1184_v50  ;;  %v1152_v30 = vadd.f32 %v5561_v24, %v4731_v61  ;;  %v1153_v31 = vadd.f32 %v5562_v27, %v4708_v42  ;;  %v5575_v24 = vld [vmem:[#allocation55_spill] sm:$0xff] }
 0x29f   :  { %v1154_v37 = vadd.f32 %v5563_v5, %v4650_v22  ;;  %v1360_v29 = vadd.f32 %v1356_v48, %v1092_v2  ;;  %v4852_v0 = vadd.f32 %v1357_v14, %v1093_v41  ;;  %v1386_v18 = vadd.f32 %v4757_v8, %v1376_v28  ;;  %v5569_v2 = vld [vmem:[#allocation64_spill] sm:$0xff] }
 0x2a0   :  { %v1516_v7 = vrot.slane %v4842_v59, 7  ;;  %v1763_v4 = vrot.slane %v4844_v26, 7  ;;  %v1387_v50 = vadd.f32 %v1383_v51, %v4738_v45  ;;  %v1416_v23 = vadd.f32 %v4761_v62, %v1406_v35  ;;  %v5565_v51 = vld [vmem:[#allocation18_spill] sm:$0xff]  ;;  %v5570_v41 = vld [vmem:[#allocation39_spill] sm:$0xff]  ;;  %v1639_v62 = vld [vmem:[%s5593_s25 + $0x18] sm:$0xff] }
 0x2a1   :  { %v1390_v61 = vadd.f32 %v1386_v18, %v1122_v49  ;;  %v1421_v6 = vadd.f32 %v1417_v54, %v1153_v31  ;;  %v4859_v40 = vadd.f32 %v1418_v57, %v1154_v37  ;;  %v1514_v42 = vrot.slane %v1360_v29, 7  ;;  %v5571_v57 = vld [vmem:[#allocation65_spill] sm:$0xff]  ;;  %v5576_v5 = vld [vmem:[#allocation56_spill] sm:$0xff]  ;;  %v1636_v26 = vld [vmem:[%s5593_s25] sm:$0xff] }
 0x2a2   :  { %v1391_v52 = vadd.f32 %v1387_v50, %v1123_v19  ;;  %v4861_v22 = vadd.f32 %v1416_v23, %v1152_v30  ;;  %v1515_v14 = vrot.slane %v4852_v0, 7  ;;  %v1517_v8 = vrot.slane %v4628_v56, 7  ;;  %v5573_v49 = vld [vmem:[#allocation47_spill] sm:$0xff]  ;;  %v5574_v19 = vld [vmem:[#allocation94_spill] sm:$0xff] }
 0x2a3   :  { %v1531_v28 = vrot.slane %v1421_v6, 1  ;;  %v1532_v48 = vrot.slane %v4859_v40, 1  ;;  %v820_v45 = vadd.f32 %v4726_v53, %v5564_v63  ;;  %v821_v35 = vadd.f32 %v4700_v33, %v5565_v51  ;;  %v5568_v53 = vld [vmem:[#allocation19_spill] sm:$0xff]  ;;  %v5577_v29 = vld [vmem:[#allocation77_spill] sm:$0xff]  ;;  %v5580_v63 = vld [vmem:[#allocation90_spill] sm:$0xff] }
 0x2a4   :  { %v1520_v54 = vsel %vm140_vm3, %v1514_v42, %v1515_v14  ;;  %v1521_v16 = vsel %vm140_vm3, %v1517_v8, %v1514_v42  ;;  %v1530_v38 = vrot.slane %v4861_v22, 1  ;;  %v1182_v56 = vadd.f32 %v5567_v36, %v4734_v55  ;;  %v5578_v18 = vld [vmem:[#allocation61_spill] sm:$0xff] }
 0x2a5   :  { %v1522_v12 = vsel %vm92_vm5, %v1521_v16, 0.0  ;;  %v1527_v21 = vadd.f32 %v1520_v54, %v1391_v52  ;;  %v1535_v33 = vsel %vm157_vm2, %v1531_v28, %v1532_v48  ;;  %v1183_v25 = vadd.f32 %v5568_v53, %v4711_v9  ;;  %v5581_v54 = vld [vmem:[#allocation92_spill] sm:$0xff] }
 0x2a6   :  { %v1526_v34 = vadd.f32 %v1522_v12, %v1390_v61  ;;  %v1536_v13 = vsel %vm157_vm2, %v1530_v38, %v1531_v28  ;;  %v1212_v58 = vadd.f32 %v5569_v2, %v820_v45  ;;  %v1213_v55 = vadd.f32 %v5570_v41, %v821_v35 }
 0x2a7   :  { %v1543_v15 = vadd.f32 %v1535_v33, %v1527_v21  ;;  %v1242_v17 = vadd.f32 %v5571_v57, %v4744_v44  ;;  %v1243_v20 = vadd.f32 %v5573_v49, %v5572_v11  ;;  %v1244_v30 = vadd.f32 %v5575_v24, %v5574_v19  ;;  %v5579_v44 = vld [vmem:[#allocation57_spill] sm:$0xff]  ;;  %v5585_v57 = vld [vmem:[#allocation88_spill] sm:$0xff]  ;;  %v5587_v49 = vld [vmem:[#allocation54_spill] sm:$0xff] }
 0x2a8   :  { %v1542_v27 = vadd.f32 %v1536_v13, %v1526_v34  ;;  %v1450_v9 = vadd.f32 %v4792_v43, %v1182_v56  ;;  %v1451_v31 = vadd.f32 %v4800_v3, %v1183_v25  ;;  %v1476_v37 = vadd.f32 %v5576_v5, %v4784_v32  ;;  %v5584_v56 = vld [vmem:[#allocation87_spill] sm:$0xff]  ;;  %v5586_v11 = vld [vmem:[#allocation93_spill] sm:$0xff]  ;;  %v5588_v19 = vld [vmem:[#allocation86_spill] sm:$0xff] }
 0x2a9   :  { %v1549_v0 = vadd.f32 %v5577_v29, %v1543_v15  ;;  %v1477_v50 = vadd.f32 %v4795_v47, %v5578_v18  ;;  %v1506_v23 = vadd.f32 %v5579_v44, %v4787_v1  ;;  %v1511_v61 = vadd.f32 %v4804_v60, %v1243_v20  ;;  %v5582_v47 = vld [vmem:[#allocation49_spill] sm:$0xff]  ;;  %v5589_v24 = vld [vmem:[#allocation89_spill] sm:$0xff] }
 0x2aa   :  { %v1548_v6 = vadd.f32 %v5577_v29, %v1542_v27  ;;  %v1480_v42 = vadd.f32 %v1476_v37, %v1212_v58  ;;  %v1512_v52 = vadd.f32 %v1508_v39, %v1244_v30  ;;  %v1761_v43 = vrot.slane %v1450_v9, 7  ;;  %v5583_v39 = vld [vmem:[#allocation85_spill] sm:$0xff]  ;;  %v5592_v44 = vld [vmem:[#allocation91_spill] sm:$0xff] }
 0x2ab   :  { %v1481_v22 = vadd.f32 %v1477_v50, %v1213_v55  ;;  %v1510_v3 = vadd.f32 %v1506_v23, %v1242_v17  ;;  %v1762_v28 = vrot.slane %v1451_v31, 7  ;;  %v1764_v32 = vrot.slane %v5580_v63, 7 }
 0x2ac   :  { %v2260_v45 = vpack.c.bf16 %v1549_v0, %v1548_v6  ;;  %v1778_v51 = vrot.slane %v1511_v61, 1  ;;  %v1779_v35 = vrot.slane %v1512_v52, 1  ;;  %v1124_v16 = vadd.f32 %v5582_v47, %v5581_v54  ;;  %v1640_v54 = vld [vmem:[%s5593_s25 + $0x20] sm:$0xff]  ;;  %v1641_v47 = vld [vmem:[%s5593_s25 + $0x28] sm:$0xff] }
 0x2ad   :  { %v1767_v1 = vsel %vm140_vm3, %v1761_v43, %v1762_v28  ;;  %v1768_v60 = vsel %vm140_vm3, %v1764_v32, %v1761_v43  ;;  %v1777_v36 = vrot.slane %v1510_v3, 1  ;;  %v1393_v12 = vadd.f32 %v5584_v56, %v5583_v39  ;;  %v1644_v39 = vld [vmem:[%s5593_s25 + $0x40] sm:$0xff]  ;;  %v1645_v56 = vld [vmem:[%s5593_s25 + $0x48] sm:$0xff] }
 0x2ae   :  { %2261 = vmatprep.subr.bf16.mxu1 %v2260_v45  ;;  %v1769_v21 = vsel %vm92_vm5, %v1768_v60, 0.0  ;;  %v1774_v33 = vadd.f32 %v1767_v1, %v1481_v22  ;;  %v1782_v53 = vsel %vm157_vm2, %v1778_v51, %v1779_v35  ;;  %v1392_v25 = vadd.f32 %v4836_v10, %v1124_v16  ;;  %v1642_v1 = vld [vmem:[%s5593_s25 + $0x30] sm:$0xff]  ;;  %v1643_v60 = vld [vmem:[%s5593_s25 + $0x38] sm:$0xff] }
 0x2af   :  { %v1773_v34 = vadd.f32 %v1769_v21, %v1480_v42  ;;  %v1783_v13 = vsel %vm157_vm2, %v1777_v36, %v1778_v51  ;;  %2263 = vmatpush3.bf16.msra.mxu1 %v2260_v45  ;;  %v1518_v2 = vsel %vm140_vm3, %v1516_v7, %v1517_v8  ;;  %v1519_v58 = vsel %vm140_vm3, %v1515_v14, %v1516_v7  ;;  %v5590_v8 = vld [vmem:[#allocation24_spill] sm:$0xff]  ;;  %v1553_v45 = vld [vmem:[%s5372_s29 + $0x8] sm:$0xff] }
 0x2b0   :  { %v1790_v41 = vadd.f32 %v1782_v53, %v1774_v33  ;;  %v1528_v55 = vadd.f32 %v1519_v58, %v1392_v25  ;;  %v1529_v15 = vadd.f32 %v1518_v2, %v1393_v12  ;;  %v1533_v10 = vrot.slane %v5585_v57, 1  ;;  %v1646_v21 = vld [vmem:[%s5593_s25 + $0x50] sm:$0xff]  ;;  %v1647_v33 = vld [vmem:[%s5593_s25 + $0x58] sm:$0xff]  ;;  %v1648_v25 = vld [vmem:[%s5593_s25 + $0x60] sm:$0xff] }
 0x2b1   :  { %v1789_v17 = vadd.f32 %v1783_v13, %v1773_v34  ;;  %v1214_v20 = vadd.f32 %v5587_v49, %v5586_v11  ;;  %v1483_v30 = vadd.f32 %v5589_v24, %v5588_v19  ;;  %v1765_v59 = vsel %vm140_vm3, %v1763_v4, %v1764_v32  ;;  %v1649_v34 = vld [vmem:[%s5593_s25 + $0x68] sm:$0xff]  ;;  %v1650_v2 = vld [vmem:[%s5593_s25 + $0x70] sm:$0xff]  ;;  %v1651_v58 = vld [vmem:[%s5593_s25 + $0x78] sm:$0xff] }
 0x2b2   :  { %v1796_v27 = vadd.f32 %v5590_v8, %v1790_v41  ;;  %v1534_v7 = vsel %vm157_vm2, %v1532_v48, %v1533_v10  ;;  %v1537_v14 = vsel %vm157_vm2, %v1533_v10, %v1530_v38  ;;  %v1766_v9 = vsel %vm140_vm3, %v1762_v28, %v1763_v4  ;;  %v1637_v4 = vld [vmem:[%s5593_s25 + $0x8] sm:$0xff] }
 0x2b3   :  { %v1795_v31 = vadd.f32 %v5590_v8, %v1789_v17  ;;  %v1541_v37 = vsel %vm99_vm4, %v1537_v14, 0.0  ;;  %v1544_v0 = vadd.f32 %v1534_v7, %v1528_v55  ;;  %v1482_v18 = vadd.f32 %v4838_v46, %v1214_v20 }
 0x2b4   :  { %v1545_v40 = vadd.f32 %v1541_v37, %v1529_v15  ;;  %v1776_v50 = vadd.f32 %v1765_v59, %v1483_v30  ;;  %v1780_v48 = vrot.slane %v5592_v44, 1  ;;  %v2268_v28 = vpack.c.bf16 %v1637_v4, %v1636_v26 }
 0x2b5   :  { %v2300_v23 = vpack.c.bf16 %v1796_v27, %v1795_v31  ;;  %v1550_v38 = vadd.f32 %v5577_v29, %v1544_v0  ;;  %v1775_v61 = vadd.f32 %v1766_v9, %v1482_v18  ;;  %v2276_v16 = vpack.c.bf16 %v1641_v47, %v1640_v54 }
 0x2b6   :  { %v1551_v6 = vadd.f32 %v5577_v29, %v1545_v40  ;;  %v1781_v46 = vsel %vm157_vm2, %v1779_v35, %v1780_v48  ;;  %v1784_v42 = vsel %vm157_vm2, %v1780_v48, %v1777_v36  ;;  %v1638_v29 = vld [vmem:[%s5593_s25 + $0x10] sm:$0xff]  ;;  %v2280_v36 = vpack.c.bf16 %v1643_v60, %v1642_v1 }
 0x2b7   :  { %2301 = vmatprep.subr.bf16.mxu0 %v2300_v23  ;;  %v1788_v52 = vsel %vm99_vm4, %v1784_v42, 0.0  ;;  %v1791_v43 = vadd.f32 %v1781_v46, %v1775_v61  ;;  %v2272_v35 = vpack.c.bf16 %v1639_v62, %v1638_v29  ;;  %v2284_v12 = vpack.c.bf16 %v1645_v56, %v1644_v39 }
 0x2b8   :  { %2303 = vmatpush3.bf16.msra.mxu0 %v2300_v23  ;;  %v2264_v22 = vpack.c.bf16 %v1551_v6, %v1550_v38  ;;  %v1792_v3 = vadd.f32 %v1788_v52, %v1776_v50  ;;  %v2288_v53 = vpack.c.bf16 %v1647_v33, %v1646_v21  ;;  %v2292_v13 = vpack.c.bf16 %v1649_v34, %v1648_v25 }
 0x2b9   :  { %v1797_v63 = vadd.f32 %v5590_v8, %v1791_v43  ;;  %v2296_v41 = vpack.c.bf16 %v1651_v58, %v1650_v2 }
 0x2ba   :  { %2265 = vmatprep.subr.bf16.mxu1 %v2264_v22  ;;  %v1798_v32 = vadd.f32 %v5590_v8, %v1792_v3 }
 0x2bb   :  { %2267 = vmatpush3.bf16.msra.mxu1 %v2264_v22 }
 0x2bc   :  { %v2304_v51 = vpack.c.bf16 %v1798_v32, %v1797_v63  ;;  %2269 = vmatprep.subr.bf16.mxu1 %v2268_v28 }
 0x2be   :  { %2305 = vmatprep.subr.bf16.mxu0 %v2304_v51  ;;  %2177 = vmatmul.mubr.msk.f32.vlgmr.msra.gmra.mrb[0].mxu1 %vm1554_vm6, %v1553_v45 }
 0x2bf   :  { %2307 = vmatpush3.bf16.msra.mxu0 %v2304_v51  ;;  %2271 = vmatpush3.bf16.msra.mxu1 %v2268_v28 }
 0x2c0   :  { %2273 = vmatprep.subr.bf16.mxu1 %v2272_v35  ;;  %2309 = vmatprep.subr.bf16.mxu0 %v2268_v28 }
 0x2c2   :  { %2223 = vmatmul.mubr.msk.f32.vlgmr.msra.gmra.mrb[0].mxu0 %vm1554_vm6, %v1553_v45 }
 0x2c3   :  { %2275 = vmatpush3.bf16.msra.mxu1 %v2272_v35  ;;  %2311 = vmatpush3.bf16.msra.mxu0 %v2268_v28 }
 0x2c4   :  { %2277 = vmatprep.subr.bf16.mxu1 %v2276_v16  ;;  %2313 = vmatprep.subr.bf16.mxu0 %v2272_v35 }
 0x2c7   :  { %2279 = vmatpush3.bf16.msra.mxu1 %v2276_v16  ;;  %2315 = vmatpush3.bf16.msra.mxu0 %v2272_v35 }
 0x2c8   :  { %2281 = vmatprep.subr.bf16.mxu1 %v2280_v36  ;;  %2317 = vmatprep.subr.bf16.mxu0 %v2276_v16 }
 0x2cb   :  { %2283 = vmatpush3.bf16.msra.mxu1 %v2280_v36  ;;  %2319 = vmatpush3.bf16.msra.mxu0 %v2276_v16 }
 0x2cc   :  { %2285 = vmatprep.subr.bf16.mxu1 %v2284_v12  ;;  %2321 = vmatprep.subr.bf16.mxu0 %v2280_v36 }
 0x2cf   :  { %2287 = vmatpush3.bf16.msra.mxu1 %v2284_v12  ;;  %2323 = vmatpush3.bf16.msra.mxu0 %v2280_v36 }
 0x2d0   :  { %2289 = vmatprep.subr.bf16.mxu1 %v2288_v53  ;;  %2325 = vmatprep.subr.bf16.mxu0 %v2284_v12 }
 0x2d3   :  { %2291 = vmatpush3.bf16.msra.mxu1 %v2288_v53  ;;  %2327 = vmatpush3.bf16.msra.mxu0 %v2284_v12 }
 0x2d4   :  { %2293 = vmatprep.subr.bf16.mxu1 %v2292_v13  ;;  %2329 = vmatprep.subr.bf16.mxu0 %v2288_v53 }
 0x2d7   :  { %2295 = vmatpush3.bf16.msra.mxu1 %v2292_v13  ;;  %2331 = vmatpush3.bf16.msra.mxu0 %v2288_v53 }
 0x2d8   :  { %2297 = vmatprep.subr.bf16.mxu1 %v2296_v41  ;;  %2333 = vmatprep.subr.bf16.mxu0 %v2292_v13 }
 0x2db   :  { %2299 = vmatpush3.bf16.msra.mxu1 %v2296_v41  ;;  %2335 = vmatpush3.bf16.msra.mxu0 %v2292_v13 }
 0x2dc   :  { %2337 = vmatprep.subr.bf16.mxu0 %v2296_v41 }
 0x2df   :  { %2339 = vmatpush3.bf16.msra.mxu0 %v2296_v41 }
 0x391   :  { %v2178_v55 = vpop.f32.mrb[0].mxu1 }
 0x392   :  { %v1627_v15 = vpop.f32.mrb[1].mxu1 }
 0x393   :  { %2211 = vmatprep.mubr.f32.mxu1 %v1627_v15 }
 0x394   :  { %2212 = vmatmul.mubr.f32.vlgmr.msra.gmra.mrb[2].mxu1 %v2178_v55 }
 0x395   :  { %v2224_v57 = vpop.f32.mrb[0].mxu0 }
 0x396   :  { %v1873_v10 = vpop.f32.mrb[1].mxu0 }
 0x397   :  { %2257 = vmatprep.mubr.f32.mxu0 %v1873_v10 }
 0x398   :  { %2258 = vmatmul.mubr.f32.vlgmr.msra.gmra.mrb[2].mxu0 %v2224_v57 }
 0x467   :  { %v2213_v17 = vpop.f32.mrb[2].mxu1 }
 0x468   :  { %v1728_v11 = vmax.f32 %v2213_v17, 0.0  ;;  %v1718_v49 = vpop.f32.mrb[3].mxu1 }
 0x469   :  { %v1727_v20 = vmax.f32 %v1718_v49, 0.0 }
 0x46a   :  { %1731 = vst.msk [vmem:[%s5594_s27 + $0x8] sm:$0xff] %vm1729_vm7, %v1728_v11  ;;  %1736 = vrot.lane.b32.xlu1 %v1728_v11, %s2409_s28 }
 0x46b   :  { %1730 = vst.msk [vmem:[%s5594_s27] sm:$0xff] %vm1729_vm7, %v1727_v20  ;;  %1734 = vrot.lane.b32.xlu0 %v1727_v20, %s2409_s28  ;;  %v2259_v19 = vpop.f32.mrb[2].mxu0 }
 0x46c   :  { %v1974_v24 = vmax.f32 %v2259_v19, 0.0  ;;  %v1964_v30 = vpop.f32.mrb[3].mxu0 }
 0x46d   :  { %v1973_v59 = vmax.f32 %v1964_v30, 0.0 }
 0x46e   :  { %1745 = vrot.lane.b32.xlu1 %v1728_v11, %s2410_s4  ;;  %2113 = vst.msk [vmem:[%s5594_s27 + $0x18] sm:$0xff] %vm1729_vm7, %v1974_v24 }
 0x46f   :  { %1743 = vrot.lane.b32.xlu0 %v1727_v20, %s2410_s4  ;;  %2112 = vst.msk [vmem:[%s5594_s27 + $0x10] sm:$0xff] %vm1729_vm7, %v1973_v59 }
 0x472   :  { %1754 = vrot.lane.b32.xlu1 %v1728_v11, %s2411_s9 }
 0x473   :  { %1752 = vrot.lane.b32.xlu0 %v1727_v20, %s2411_s9 }
 0x476   :  { %1982 = vrot.lane.b32.xlu1 %v1974_v24, %s2409_s28 }
 0x477   :  { %1980 = vrot.lane.b32.xlu0 %v1973_v59, %s2409_s28 }
 0x47a   :  { %1991 = vrot.lane.b32.xlu1 %v1974_v24, %s2410_s4 }
 0x47b   :  { %1989 = vrot.lane.b32.xlu0 %v1973_v59, %s2410_s4 }
 0x47e   :  { %2000 = vrot.lane.b32.xlu1 %v1974_v24, %s2411_s9 }
 0x47f   :  { %1998 = vrot.lane.b32.xlu0 %v1973_v59, %s2411_s9 }
 0x4dc   :  { %v1737_v8 = vpop.permute.xlu1 %1736 }
 0x4dd   :  { %2104 = vst.msk [vmem:[%s5594_s27 + $0x28] sm:$0xff] %vm1729_vm7, %v1737_v8  ;;  %v1735_v27 = vpop.permute.xlu0 %1734 }
 0x4de   :  { %2103 = vst.msk [vmem:[%s5594_s27 + $0x20] sm:$0xff] %vm1729_vm7, %v1735_v27 }
 0x4e0   :  { %v1746_v7 = vpop.permute.xlu1 %1745 }
 0x4e1   :  { %2106 = vst.msk [vmem:[%s5594_s27 + $0x48] sm:$0xff] %vm1729_vm7, %v1746_v7  ;;  %v1744_v14 = vpop.permute.xlu0 %1743 }
 0x4e2   :  { %2105 = vst.msk [vmem:[%s5594_s27 + $0x40] sm:$0xff] %vm1729_vm7, %v1744_v14 }
 0x4e4   :  { %v1755_v9 = vpop.permute.xlu1 %1754 }
 0x4e5   :  { %2108 = vst.msk [vmem:[%s5594_s27 + $0x68] sm:$0xff] %vm1729_vm7, %v1755_v9  ;;  %v1753_v31 = vpop.permute.xlu0 %1752 }
 0x4e6   :  { %2107 = vst.msk [vmem:[%s5594_s27 + $0x60] sm:$0xff] %vm1729_vm7, %v1753_v31 }
 0x4e8   :  { %v1983_v5 = vpop.permute.xlu1 %1982 }
 0x4e9   :  { %2115 = vst.msk [vmem:[%s5594_s27 + $0x38] sm:$0xff] %vm1729_vm7, %v1983_v5  ;;  %v1981_v37 = vpop.permute.xlu0 %1980 }
 0x4ea   :  { %2114 = vst.msk [vmem:[%s5594_s27 + $0x30] sm:$0xff] %vm1729_vm7, %v1981_v37 }
 0x4ec   :  { %v1992_v0 = vpop.permute.xlu1 %1991 }
 0x4ed   :  { %2117 = vst.msk [vmem:[%s5594_s27 + $0x58] sm:$0xff] %vm1729_vm7, %v1992_v0  ;;  %v1990_v18 = vpop.permute.xlu0 %1989 }
 0x4ee   :  { %2116 = vst.msk [vmem:[%s5594_s27 + $0x50] sm:$0xff] %vm1729_vm7, %v1990_v18 }
 0x4f0   :  { %v2001_v40 = vpop.permute.xlu1 %2000 }
 0x4f1   :  { %2119 = vst.msk [vmem:[%s5594_s27 + $0x78] sm:$0xff] %vm1729_vm7, %v2001_v40  ;;  %v1999_v50 = vpop.permute.xlu0 %1998 }
 0x4f2   :  { %2118 = vst.msk [vmem:[%s5594_s27 + $0x70] sm:$0xff] %vm1729_vm7, %v1999_v50 }
 0x4f3   :  { %2011 = vsyncpa [#allocation5], 1 }
 0x4f4   :  { %2012 = vsyncpa [#allocation7], 1 }
 0x4f5   :  { %2013 = vsyncpa [#allocation10], 1 }

</bundles_post_ra>
